<compile_context>
chip_gen: v6e
topology: v6e:2x2x1
jax: 0.10.0
libtpu: 0.0.40
codegen_flags: <defaults>
</compile_context>

<pallas_src>
import jax
import jax.numpy as jnp
from jax import lax
from jax.experimental import pallas as pl
from jax.experimental.pallas import tpu as pltpu


def _generator_kernel(xp_all_ref, latent_ref, wz_w_ref, wz_b_ref,
                      w_h_ref, b_hn_ref, w_dec_ref, b_dec_ref,
                      w_out_ref, b_out_ref, scores_ref):
    f32 = jnp.float32
    B = latent_ref.shape[0]
    TB = xp_all_ref.shape[0]
    T = TB // B
    P = w_h_ref.shape[0]          # hidden / per-gate lane pitch (H, or 128-aligned)
    NV = w_out_ref.shape[1]       # lane-padded vocab width
    S = scores_ref.shape[1]

    xp_all = xp_all_ref[...]
    w_h = w_h_ref[...]
    b_hn = b_hn_ref[...]
    w_dec = w_dec_ref[...]
    b_dec = b_dec_ref[...]
    w_out = w_out_ref[...]
    b_out = b_out_ref[...]

    def sigmoid(x):
        # 0.5*(tanh(x/2)+1): tanh runs on the EUP, so the VPU divide of
        # 1/(1+exp(-x)) disappears from the serial recurrence (2x per step).
        return 0.5 * jnp.tanh(0.5 * x) + 0.5

    def gru_tail(pre_r, pre_z, x_n, h_n, h):
        r = sigmoid(pre_r)
        z = sigmoid(pre_z)
        n = jnp.tanh(x_n + r * h_n)
        return (1.0 - z) * n + z * h

    # hidden = tanh(Wz(latent))   (n_layers = 1)
    h = jnp.tanh(jnp.dot(latent_ref[...], wz_w_ref[...],
                         preferred_element_type=f32) + wz_b_ref[...])

    # ---- prefix recurrence: input-side projections precomputed in the
    # wrapper, so each step is ONE h-side matmul + elementwise gates ----
    for t in range(T):
        xp = xp_all[t * B:(t + 1) * B, :]
        hp = jnp.dot(h, w_h, preferred_element_type=f32)             # (B, 3P)
        h = gru_tail(xp[:, 0:P] + hp[:, 0:P],
                     xp[:, P:2 * P] + hp[:, P:2 * P],
                     xp[:, 2 * P:3 * P],
                     hp[:, 2 * P:3 * P] + b_hn,
                     h)

    iota_bnv = lax.broadcasted_iota(jnp.int32, (B, NV), 1)

    tok = None
    for i in range(S):            # greedy decode loop (S small; static unroll)
        if i > 0:
            # ONE fused MXU op: embedding lookup + hidden-side gate matmul.
            onehot = (iota_bnv == tok).astype(f32)                   # (B, NV)
            lhs = jnp.concatenate([onehot, h], axis=1)               # (B, NV+P)
            g = jnp.dot(lhs, w_dec, preferred_element_type=f32) + b_dec  # (B, 4P)
            h = gru_tail(g[:, 0:P], g[:, P:2 * P],
                         g[:, 2 * P:3 * P], g[:, 3 * P:4 * P], h)

        score = jnp.dot(h, w_out, preferred_element_type=f32) + b_out    # (B, NV)
        mx = jnp.max(score, axis=1, keepdims=True)
        lse = mx + jnp.log(jnp.sum(jnp.exp(score - mx), axis=1, keepdims=True))
        scores_ref[:, i, :] = score - lse                            # lane-dense store

        if i + 1 < S:
            # argmax(log_softmax(score)) == argmax(score): reuse mx; first-index
            # tie-break like torch.max.  (Skip the unused final-step argmax.)
            tok = jnp.min(jnp.where(score == mx, iota_bnv, NV),
                          axis=1, keepdims=True)


def _round_up(x, m):
    return ((x + m - 1) // m) * m


def _default_pitch(H):
    """Per-gate / hidden lane pitch.

    v6e/v7x (256-wide MXU): pad each gate to a 128-lane boundary so gate slices
    are full-vreg aligned (pure VPU, no XLU rotations on the critical path);
    the extra MXU column tile is cheap.  v2-v5 (128-wide MXU, sequential MRF
    pops): extra column tiles/pops land on the serial path, keep packed.
    """
    try:
        kind = jax.devices()[0].device_kind.lower()
    except Exception:
        kind = ""
    if any(v in kind for v in ("v2", "v3", "v4", "v5")):
        return H
    return _round_up(H, 128)


def generator_forward(tokens, latent, params, seq_length, *, pitch=None):
    p = params
    B, T = tokens.shape
    V, H = p["emb"].shape
    L = latent.shape[1]
    NV = _round_up(V, 128)                    # lane-padded vocab width
    P = pitch if pitch is not None else _default_pitch(H)
    S = int(seq_length)
    f32 = jnp.float32

    def padc(x, w):                           # zero-pad columns (lanes) to w
        return jnp.zeros((x.shape[0], w), f32).at[:, :x.shape[1]].set(x)

    def padr(x, r):                           # zero-pad rows to r
        return jnp.zeros((r, x.shape[1]), f32).at[:x.shape[0], :].set(x)

    # ---- wrapper-side packing: all plain XLA, none of it enters the serial
    # kernel region ----
    wz_w_p = padc(p["wz_w"], P)                                           # (L, P)
    wz_b_p = padc(p["wz_b"], P)                                           # (1, P)

    w_h_p = padr(jnp.concatenate([padc(p["w_hr"], P), padc(p["w_hz"], P),
                                  padc(p["w_hn"], P)], axis=1), P)        # (P, 3P)
    b_hn_p = padc(p["b_hn"], P)                                           # (1, P)

    # Fused input projection of the embedding table (kernel never sees (V, H)).
    emb_wi = jnp.concatenate([padc(p["emb"] @ p["w_ir"], P),
                              padc(p["emb"] @ p["w_iz"], P),
                              padc(p["emb"] @ p["w_in"], P)], axis=1)     # (V, 3P)
    b_i = jnp.concatenate([padc(p["b_ir"] + p["b_hr"], P),
                           padc(p["b_iz"] + p["b_hz"], P),
                           padc(p["b_in"], P)], axis=1)                   # (1, 3P)

    # Prefix input-side work hoisted entirely out of the kernel: XLA gather,
    # t-major rows (row = t*B + b) so the kernel slices xp_all[t*B:(t+1)*B].
    tok_t_major = jnp.transpose(tokens).reshape(T * B).astype(jnp.int32)
    xp_all = emb_wi[tok_t_major] + b_i                                    # (T*B, 3P)

    # Decode-step fused RHS: [onehot | h] @ w_dec -> [pre_r | pre_z | x_n | h_n].
    top = padr(jnp.concatenate([emb_wi, jnp.zeros((V, P), f32)], axis=1), NV)   # (NV, 4P)
    bot = padr(jnp.concatenate([padc(p["w_hr"], P), padc(p["w_hz"], P),
                                jnp.zeros((H, P), f32), padc(p["w_hn"], P)],
                               axis=1), P)                                # (P, 4P)
    w_dec_p = jnp.concatenate([top, bot], axis=0)                         # (NV+P, 4P)
    b_dec_p = jnp.concatenate([b_i, b_hn_p], axis=1)                      # (1, 4P)

    # Output projection; padded vocab lanes get -1e30 bias so they never win
    # the max nor contribute to the softmax sum.
    w_out_p = padr(padc(p["w_out"], NV), P)                               # (P, NV)
    b_out_p = jnp.full((1, NV), -1e30, f32).at[:, :V].set(p["b_out"])     # (1, NV)

    args = (xp_all, latent.astype(f32), wz_w_p, wz_b_p,
            w_h_p, b_hn_p, w_dec_p, b_dec_p, w_out_p, b_out_p)

    # Advisory cost for XLA scheduling around this tiny, serial kernel.
    flops = (2 * B * L * P + T * 2 * B * P * 3 * P
             + (S - 1) * 2 * B * (NV + P) * 4 * P + S * 2 * B * P * NV)
    trans = B * P + (T + S - 1) * 3 * B * P + S * B * NV
    bytes_accessed = 4 * (sum(int(a.size) for a in args) + B * S * NV)

    # Everything fits comfortably in VMEM (weights are O(P*4P) + O(P*NV), no
    # vocab-sized arrays).  For production batch sizes (esp. v7x's 2 TCs) add
    # a grid axis over B with dimension_semantics=("parallel",).
    vmem = pl.BlockSpec(memory_space=pltpu.MemorySpace.VMEM)
    scores = pl.pallas_call(
        _generator_kernel,
        out_shape=jax.ShapeDtypeStruct((B, S, NV), f32),
        in_specs=[vmem] * len(args),
        out_specs=vmem,
        cost_estimate=pl.CostEstimate(flops=flops, transcendentals=trans,
                                      bytes_accessed=bytes_accessed),
    )(*args)

    # (B, S, NV) -> drop lane padding -> (B*S, V)  == PyTorch scores.view(B*S, -1)
    return scores[:, :, :V].reshape(B * S, V)


def generator_forward_ref(tokens, latent, params, seq_length):
    """Pure-JAX reference mirroring the PyTorch forward exactly."""
    p = params
    B, T = tokens.shape
    V, H = p["emb"].shape

    def gru_cell(x, h):
        r = jax.nn.sigmoid(x @ p["w_ir"] + p["b_ir"] + h @ p["w_hr"] + p["b_hr"])
        z = jax.nn.sigmoid(x @ p["w_iz"] + p["b_iz"] + h @ p["w_hz"] + p["b_hz"])
        n = jnp.tanh(x @ p["w_in"] + p["b_in"] + r * (h @ p["w_hn"] + p["b_hn"]))
        return (1.0 - z) * n + z * h

    h = jnp.tanh(latent @ p["wz_w"] + p["wz_b"])
    embedded = p["emb"][tokens]  # (B, T, H)
    decode = []
    for _ in range(seq_length):
        for t in range(embedded.shape[1]):
            h = gru_cell(embedded[:, t, :], h)
        score = h @ p["w_out"] + p["b_out"]
        logp = jax.nn.log_softmax(score, axis=1)
        decode.append(logp)
        nxt = jnp.argmax(logp, axis=1)
        embedded = p["emb"][nxt][:, None, :]
    scores = jnp.concatenate(decode, axis=1)
    return scores.reshape(B * seq_length, V)


def init_params(key, hidden_size, output_size, latent_size=10):
    H, V, L = hidden_size, output_size, latent_size
    ks = jax.random.split(key, 10)

    def u(k, shape, scale=0.1):
        return jax.random.uniform(k, shape, jnp.float32, -scale, scale)

    # PyTorch-shaped params, then transpose/split for the kernel layout.
    wz_w_pt = u(ks[0], (H, L));  wz_b_pt = u(ks[1], (H,))
    emb = u(ks[2], (V, H))
    w_ih = u(ks[3], (3 * H, H)); b_ih = u(ks[4], (3 * H,))   # [r; z; n]
    w_hh = u(ks[5], (3 * H, H)); b_hh = u(ks[6], (3 * H,))
    w_out_pt = u(ks[7], (V, H)); b_out_pt = u(ks[8], (V,))

    return {
        "wz_w": wz_w_pt.T, "wz_b": wz_b_pt[None, :],
        "emb": emb,
        "w_ir": w_ih[0 * H:1 * H].T, "w_iz": w_ih[1 * H:2 * H].T, "w_in": w_ih[2 * H:3 * H].T,
        "w_hr": w_hh[0 * H:1 * H].T, "w_hz": w_hh[1 * H:2 * H].T, "w_hn": w_hh[2 * H:3 * H].T,
        "b_ir": b_ih[None, 0 * H:1 * H], "b_iz": b_ih[None, 1 * H:2 * H], "b_in": b_ih[None, 2 * H:3 * H],
        "b_hr": b_hh[None, 0 * H:1 * H], "b_hz": b_hh[None, 1 * H:2 * H], "b_hn": b_hh[None, 2 * H:3 * H],
        "w_out": w_out_pt.T, "b_out": b_out_pt[None, :],
    }


if __name__ == "__main__":
    B, T, S = 2, 8, 5          # batch, input seq length, decode seq_length
    H, V, L = 32, 16, 10       # hidden_size, output_size (vocab), latent_size

    key = jax.random.PRNGKey(0)
    k_tok, k_lat, k_code, k_par = jax.random.split(key, 4)

    tokens = jax.random.randint(k_tok, (B, T), 0, V, dtype=jnp.int32)
    latent = jax.random.normal(k_lat, (B, L), jnp.float32)
    code = jax.random.normal(k_code, (B, 2), jnp.float32)   # unused by forward (as in PyTorch)
    lengths = jnp.full((B,), T, jnp.int32)                  # unused by forward (as in PyTorch)

    params = init_params(k_par, H, V, L)

    out = generator_forward(tokens, latent, params, S)
    out = jax.block_until_ready(out)
    assert out.shape == (B * S, V)

    ref = generator_forward_ref(tokens, latent, params, S)
    if not jnp.allclose(out, ref, atol=1e-3, rtol=1e-3):
        raise AssertionError(
            f"mismatch vs reference, max diff = {float(jnp.max(jnp.abs(out - ref)))}")

    print("KERNEL_OK")
</pallas_src>

<mosaic_0001>
module attributes {stable_mosaic.version = 11 : i64} {
  func.func @_generator_kernel(%arg0: memref<16x384xf32, #tpu.memory_space<vmem>>, %arg1: memref<2x10xf32, #tpu.memory_space<vmem>>, %arg2: memref<10x128xf32, #tpu.memory_space<vmem>>, %arg3: memref<1x128xf32, #tpu.memory_space<vmem>>, %arg4: memref<128x384xf32, #tpu.memory_space<vmem>>, %arg5: memref<1x128xf32, #tpu.memory_space<vmem>>, %arg6: memref<256x512xf32, #tpu.memory_space<vmem>>, %arg7: memref<1x512xf32, #tpu.memory_space<vmem>>, %arg8: memref<128x128xf32, #tpu.memory_space<vmem>>, %arg9: memref<1x128xf32, #tpu.memory_space<vmem>>, %arg10: memref<2x5x128xf32, #tpu.memory_space<vmem>>) attributes {dimension_semantics = [], scalar_prefetch = 0 : i64, scratch_operands = 0 : i64, tpu.core_type = #tpu.core_type<tc>} {
    %c0 = arith.constant 0 : index
    %c0_0 = arith.constant 0 : index
    %0 = vector.load %arg0[%c0, %c0_0] : memref<16x384xf32, #tpu.memory_space<vmem>>, vector<16x384xf32>
    %c0_1 = arith.constant 0 : index
    %c0_2 = arith.constant 0 : index
    %1 = vector.load %arg4[%c0_1, %c0_2] : memref<128x384xf32, #tpu.memory_space<vmem>>, vector<128x384xf32>
    %c0_3 = arith.constant 0 : index
    %c0_4 = arith.constant 0 : index
    %2 = vector.load %arg5[%c0_3, %c0_4] : memref<1x128xf32, #tpu.memory_space<vmem>>, vector<1x128xf32>
    %c0_5 = arith.constant 0 : index
    %c0_6 = arith.constant 0 : index
    %3 = vector.load %arg6[%c0_5, %c0_6] : memref<256x512xf32, #tpu.memory_space<vmem>>, vector<256x512xf32>
    %c0_7 = arith.constant 0 : index
    %c0_8 = arith.constant 0 : index
    %4 = vector.load %arg7[%c0_7, %c0_8] : memref<1x512xf32, #tpu.memory_space<vmem>>, vector<1x512xf32>
    %c0_9 = arith.constant 0 : index
    %c0_10 = arith.constant 0 : index
    %5 = vector.load %arg8[%c0_9, %c0_10] : memref<128x128xf32, #tpu.memory_space<vmem>>, vector<128x128xf32>
    %c0_11 = arith.constant 0 : index
    %c0_12 = arith.constant 0 : index
    %6 = vector.load %arg9[%c0_11, %c0_12] : memref<1x128xf32, #tpu.memory_space<vmem>>, vector<1x128xf32>
    %c0_13 = arith.constant 0 : index
    %c0_14 = arith.constant 0 : index
    %7 = vector.load %arg1[%c0_13, %c0_14] : memref<2x10xf32, #tpu.memory_space<vmem>>, vector<2x10xf32>
    %c0_15 = arith.constant 0 : index
    %c0_16 = arith.constant 0 : index
    %8 = vector.load %arg2[%c0_15, %c0_16] : memref<10x128xf32, #tpu.memory_space<vmem>>, vector<10x128xf32>
    %cst = arith.constant dense<0.000000e+00> : vector<2x128xf32>
    %9 = tpu.matmul %7, %8, %cst {dimension_numbers = #tpu.dot_dimension_numbers<[1], [0], [0], [1], [0, 0, 1, 1], [], []>} : vector<2x10xf32>, vector<10x128xf32>, vector<2x128xf32> -> vector<2x128xf32>
    %c0_17 = arith.constant 0 : index
    %c0_18 = arith.constant 0 : index
    %10 = vector.load %arg3[%c0_17, %c0_18] : memref<1x128xf32, #tpu.memory_space<vmem>>, vector<1x128xf32>
    %11 = vector.broadcast %10 : vector<1x128xf32> to vector<2x128xf32>
    %12 = arith.addf %9, %11 : vector<2x128xf32>
    %13 = math.tanh %12 : vector<2x128xf32>
    %14 = vector.extract_strided_slice %0 {offsets = [0, 0], sizes = [2, 384], strides = [1, 1]} : vector<16x384xf32> to vector<2x384xf32>
    %cst_19 = arith.constant dense<0.000000e+00> : vector<2x384xf32>
    %15 = tpu.matmul %13, %1, %cst_19 {dimension_numbers = #tpu.dot_dimension_numbers<[1], [0], [0], [1], [0, 0, 1, 1], [], []>} : vector<2x128xf32>, vector<128x384xf32>, vector<2x384xf32> -> vector<2x384xf32>
    %16 = vector.extract_strided_slice %14 {offsets = [0, 0], sizes = [2, 128], strides = [1, 1]} : vector<2x384xf32> to vector<2x128xf32>
    %17 = vector.extract_strided_slice %15 {offsets = [0, 0], sizes = [2, 128], strides = [1, 1]} : vector<2x384xf32> to vector<2x128xf32>
    %18 = arith.addf %16, %17 : vector<2x128xf32>
    %19 = vector.extract_strided_slice %14 {offsets = [0, 128], sizes = [2, 128], strides = [1, 1]} : vector<2x384xf32> to vector<2x128xf32>
    %20 = vector.extract_strided_slice %15 {offsets = [0, 128], sizes = [2, 128], strides = [1, 1]} : vector<2x384xf32> to vector<2x128xf32>
    %21 = arith.addf %19, %20 : vector<2x128xf32>
    %22 = vector.extract_strided_slice %14 {offsets = [0, 256], sizes = [2, 128], strides = [1, 1]} : vector<2x384xf32> to vector<2x128xf32>
    %23 = vector.extract_strided_slice %15 {offsets = [0, 256], sizes = [2, 128], strides = [1, 1]} : vector<2x384xf32> to vector<2x128xf32>
    %24 = vector.broadcast %2 : vector<1x128xf32> to vector<2x128xf32>
    %25 = arith.addf %23, %24 : vector<2x128xf32>
    %cst_20 = arith.constant 5.000000e-01 : f32
    %26 = vector.broadcast %cst_20 : f32 to vector<2x128xf32>
    %27 = arith.mulf %26, %18 : vector<2x128xf32>
    %28 = math.tanh %27 : vector<2x128xf32>
    %cst_21 = arith.constant 5.000000e-01 : f32
    %29 = vector.broadcast %cst_21 : f32 to vector<2x128xf32>
    %30 = arith.mulf %29, %28 : vector<2x128xf32>
    %cst_22 = arith.constant 5.000000e-01 : f32
    %31 = vector.broadcast %cst_22 : f32 to vector<2x128xf32>
    %32 = arith.addf %30, %31 : vector<2x128xf32>
    %cst_23 = arith.constant 5.000000e-01 : f32
    %33 = vector.broadcast %cst_23 : f32 to vector<2x128xf32>
    %34 = arith.mulf %33, %21 : vector<2x128xf32>
    %35 = math.tanh %34 : vector<2x128xf32>
    %cst_24 = arith.constant 5.000000e-01 : f32
    %36 = vector.broadcast %cst_24 : f32 to vector<2x128xf32>
    %37 = arith.mulf %36, %35 : vector<2x128xf32>
    %cst_25 = arith.constant 5.000000e-01 : f32
    %38 = vector.broadcast %cst_25 : f32 to vector<2x128xf32>
    %39 = arith.addf %37, %38 : vector<2x128xf32>
    %40 = arith.mulf %32, %25 : vector<2x128xf32>
    %41 = arith.addf %22, %40 : vector<2x128xf32>
    %42 = math.tanh %41 : vector<2x128xf32>
    %cst_26 = arith.constant 1.000000e+00 : f32
    %43 = vector.broadcast %cst_26 : f32 to vector<2x128xf32>
    %44 = arith.subf %43, %39 : vector<2x128xf32>
    %45 = arith.mulf %44, %42 : vector<2x128xf32>
    %46 = arith.mulf %39, %13 : vector<2x128xf32>
    %47 = arith.addf %45, %46 : vector<2x128xf32>
    %48 = vector.extract_strided_slice %0 {offsets = [2, 0], sizes = [2, 384], strides = [1, 1]} : vector<16x384xf32> to vector<2x384xf32>
    %cst_27 = arith.constant dense<0.000000e+00> : vector<2x384xf32>
    %49 = tpu.matmul %47, %1, %cst_27 {dimension_numbers = #tpu.dot_dimension_numbers<[1], [0], [0], [1], [0, 0, 1, 1], [], []>} : vector<2x128xf32>, vector<128x384xf32>, vector<2x384xf32> -> vector<2x384xf32>
    %50 = vector.extract_strided_slice %48 {offsets = [0, 0], sizes = [2, 128], strides = [1, 1]} : vector<2x384xf32> to vector<2x128xf32>
    %51 = vector.extract_strided_slice %49 {offsets = [0, 0], sizes = [2, 128], strides = [1, 1]} : vector<2x384xf32> to vector<2x128xf32>
    %52 = arith.addf %50, %51 : vector<2x128xf32>
    %53 = vector.extract_strided_slice %48 {offsets = [0, 128], sizes = [2, 128], strides = [1, 1]} : vector<2x384xf32> to vector<2x128xf32>
    %54 = vector.extract_strided_slice %49 {offsets = [0, 128], sizes = [2, 128], strides = [1, 1]} : vector<2x384xf32> to vector<2x128xf32>
    %55 = arith.addf %53, %54 : vector<2x128xf32>
    %56 = vector.extract_strided_slice %48 {offsets = [0, 256], sizes = [2, 128], strides = [1, 1]} : vector<2x384xf32> to vector<2x128xf32>
    %57 = vector.extract_strided_slice %49 {offsets = [0, 256], sizes = [2, 128], strides = [1, 1]} : vector<2x384xf32> to vector<2x128xf32>
    %58 = vector.broadcast %2 : vector<1x128xf32> to vector<2x128xf32>
    %59 = arith.addf %57, %58 : vector<2x128xf32>
    %cst_28 = arith.constant 5.000000e-01 : f32
    %60 = vector.broadcast %cst_28 : f32 to vector<2x128xf32>
    %61 = arith.mulf %60, %52 : vector<2x128xf32>
    %62 = math.tanh %61 : vector<2x128xf32>
    %cst_29 = arith.constant 5.000000e-01 : f32
    %63 = vector.broadcast %cst_29 : f32 to vector<2x128xf32>
    %64 = arith.mulf %63, %62 : vector<2x128xf32>
    %cst_30 = arith.constant 5.000000e-01 : f32
    %65 = vector.broadcast %cst_30 : f32 to vector<2x128xf32>
    %66 = arith.addf %64, %65 : vector<2x128xf32>
    %cst_31 = arith.constant 5.000000e-01 : f32
    %67 = vector.broadcast %cst_31 : f32 to vector<2x128xf32>
    %68 = arith.mulf %67, %55 : vector<2x128xf32>
    %69 = math.tanh %68 : vector<2x128xf32>
    %cst_32 = arith.constant 5.000000e-01 : f32
    %70 = vector.broadcast %cst_32 : f32 to vector<2x128xf32>
    %71 = arith.mulf %70, %69 : vector<2x128xf32>
    %cst_33 = arith.constant 5.000000e-01 : f32
    %72 = vector.broadcast %cst_33 : f32 to vector<2x128xf32>
    %73 = arith.addf %71, %72 : vector<2x128xf32>
    %74 = arith.mulf %66, %59 : vector<2x128xf32>
    %75 = arith.addf %56, %74 : vector<2x128xf32>
    %76 = math.tanh %75 : vector<2x128xf32>
    %cst_34 = arith.constant 1.000000e+00 : f32
    %77 = vector.broadcast %cst_34 : f32 to vector<2x128xf32>
    %78 = arith.subf %77, %73 : vector<2x128xf32>
    %79 = arith.mulf %78, %76 : vector<2x128xf32>
    %80 = arith.mulf %73, %47 : vector<2x128xf32>
    %81 = arith.addf %79, %80 : vector<2x128xf32>
    %82 = vector.extract_strided_slice %0 {offsets = [4, 0], sizes = [2, 384], strides = [1, 1]} : vector<16x384xf32> to vector<2x384xf32>
    %cst_35 = arith.constant dense<0.000000e+00> : vector<2x384xf32>
    %83 = tpu.matmul %81, %1, %cst_35 {dimension_numbers = #tpu.dot_dimension_numbers<[1], [0], [0], [1], [0, 0, 1, 1], [], []>} : vector<2x128xf32>, vector<128x384xf32>, vector<2x384xf32> -> vector<2x384xf32>
    %84 = vector.extract_strided_slice %82 {offsets = [0, 0], sizes = [2, 128], strides = [1, 1]} : vector<2x384xf32> to vector<2x128xf32>
    %85 = vector.extract_strided_slice %83 {offsets = [0, 0], sizes = [2, 128], strides = [1, 1]} : vector<2x384xf32> to vector<2x128xf32>
    %86 = arith.addf %84, %85 : vector<2x128xf32>
    %87 = vector.extract_strided_slice %82 {offsets = [0, 128], sizes = [2, 128], strides = [1, 1]} : vector<2x384xf32> to vector<2x128xf32>
    %88 = vector.extract_strided_slice %83 {offsets = [0, 128], sizes = [2, 128], strides = [1, 1]} : vector<2x384xf32> to vector<2x128xf32>
    %89 = arith.addf %87, %88 : vector<2x128xf32>
    %90 = vector.extract_strided_slice %82 {offsets = [0, 256], sizes = [2, 128], strides = [1, 1]} : vector<2x384xf32> to vector<2x128xf32>
    %91 = vector.extract_strided_slice %83 {offsets = [0, 256], sizes = [2, 128], strides = [1, 1]} : vector<2x384xf32> to vector<2x128xf32>
    %92 = vector.broadcast %2 : vector<1x128xf32> to vector<2x128xf32>
    %93 = arith.addf %91, %92 : vector<2x128xf32>
    %cst_36 = arith.constant 5.000000e-01 : f32
    %94 = vector.broadcast %cst_36 : f32 to vector<2x128xf32>
    %95 = arith.mulf %94, %86 : vector<2x128xf32>
    %96 = math.tanh %95 : vector<2x128xf32>
    %cst_37 = arith.constant 5.000000e-01 : f32
    %97 = vector.broadcast %cst_37 : f32 to vector<2x128xf32>
    %98 = arith.mulf %97, %96 : vector<2x128xf32>
    %cst_38 = arith.constant 5.000000e-01 : f32
    %99 = vector.broadcast %cst_38 : f32 to vector<2x128xf32>
    %100 = arith.addf %98, %99 : vector<2x128xf32>
    %cst_39 = arith.constant 5.000000e-01 : f32
    %101 = vector.broadcast %cst_39 : f32 to vector<2x128xf32>
    %102 = arith.mulf %101, %89 : vector<2x128xf32>
    %103 = math.tanh %102 : vector<2x128xf32>
    %cst_40 = arith.constant 5.000000e-01 : f32
    %104 = vector.broadcast %cst_40 : f32 to vector<2x128xf32>
    %105 = arith.mulf %104, %103 : vector<2x128xf32>
    %cst_41 = arith.constant 5.000000e-01 : f32
    %106 = vector.broadcast %cst_41 : f32 to vector<2x128xf32>
    %107 = arith.addf %105, %106 : vector<2x128xf32>
    %108 = arith.mulf %100, %93 : vector<2x128xf32>
    %109 = arith.addf %90, %108 : vector<2x128xf32>
    %110 = math.tanh %109 : vector<2x128xf32>
    %cst_42 = arith.constant 1.000000e+00 : f32
    %111 = vector.broadcast %cst_42 : f32 to vector<2x128xf32>
    %112 = arith.subf %111, %107 : vector<2x128xf32>
    %113 = arith.mulf %112, %110 : vector<2x128xf32>
    %114 = arith.mulf %107, %81 : vector<2x128xf32>
    %115 = arith.addf %113, %114 : vector<2x128xf32>
    %116 = vector.extract_strided_slice %0 {offsets = [6, 0], sizes = [2, 384], strides = [1, 1]} : vector<16x384xf32> to vector<2x384xf32>
    %cst_43 = arith.constant dense<0.000000e+00> : vector<2x384xf32>
    %117 = tpu.matmul %115, %1, %cst_43 {dimension_numbers = #tpu.dot_dimension_numbers<[1], [0], [0], [1], [0, 0, 1, 1], [], []>} : vector<2x128xf32>, vector<128x384xf32>, vector<2x384xf32> -> vector<2x384xf32>
    %118 = vector.extract_strided_slice %116 {offsets = [0, 0], sizes = [2, 128], strides = [1, 1]} : vector<2x384xf32> to vector<2x128xf32>
    %119 = vector.extract_strided_slice %117 {offsets = [0, 0], sizes = [2, 128], strides = [1, 1]} : vector<2x384xf32> to vector<2x128xf32>
    %120 = arith.addf %118, %119 : vector<2x128xf32>
    %121 = vector.extract_strided_slice %116 {offsets = [0, 128], sizes = [2, 128], strides = [1, 1]} : vector<2x384xf32> to vector<2x128xf32>
    %122 = vector.extract_strided_slice %117 {offsets = [0, 128], sizes = [2, 128], strides = [1, 1]} : vector<2x384xf32> to vector<2x128xf32>
    %123 = arith.addf %121, %122 : vector<2x128xf32>
    %124 = vector.extract_strided_slice %116 {offsets = [0, 256], sizes = [2, 128], strides = [1, 1]} : vector<2x384xf32> to vector<2x128xf32>
    %125 = vector.extract_strided_slice %117 {offsets = [0, 256], sizes = [2, 128], strides = [1, 1]} : vector<2x384xf32> to vector<2x128xf32>
    %126 = vector.broadcast %2 : vector<1x128xf32> to vector<2x128xf32>
    %127 = arith.addf %125, %126 : vector<2x128xf32>
    %cst_44 = arith.constant 5.000000e-01 : f32
    %128 = vector.broadcast %cst_44 : f32 to vector<2x128xf32>
    %129 = arith.mulf %128, %120 : vector<2x128xf32>
    %130 = math.tanh %129 : vector<2x128xf32>
    %cst_45 = arith.constant 5.000000e-01 : f32
    %131 = vector.broadcast %cst_45 : f32 to vector<2x128xf32>
    %132 = arith.mulf %131, %130 : vector<2x128xf32>
    %cst_46 = arith.constant 5.000000e-01 : f32
    %133 = vector.broadcast %cst_46 : f32 to vector<2x128xf32>
    %134 = arith.addf %132, %133 : vector<2x128xf32>
    %cst_47 = arith.constant 5.000000e-01 : f32
    %135 = vector.broadcast %cst_47 : f32 to vector<2x128xf32>
    %136 = arith.mulf %135, %123 : vector<2x128xf32>
    %137 = math.tanh %136 : vector<2x128xf32>
    %cst_48 = arith.constant 5.000000e-01 : f32
    %138 = vector.broadcast %cst_48 : f32 to vector<2x128xf32>
    %139 = arith.mulf %138, %137 : vector<2x128xf32>
    %cst_49 = arith.constant 5.000000e-01 : f32
    %140 = vector.broadcast %cst_49 : f32 to vector<2x128xf32>
    %141 = arith.addf %139, %140 : vector<2x128xf32>
    %142 = arith.mulf %134, %127 : vector<2x128xf32>
    %143 = arith.addf %124, %142 : vector<2x128xf32>
    %144 = math.tanh %143 : vector<2x128xf32>
    %cst_50 = arith.constant 1.000000e+00 : f32
    %145 = vector.broadcast %cst_50 : f32 to vector<2x128xf32>
    %146 = arith.subf %145, %141 : vector<2x128xf32>
    %147 = arith.mulf %146, %144 : vector<2x128xf32>
    %148 = arith.mulf %141, %115 : vector<2x128xf32>
    %149 = arith.addf %147, %148 : vector<2x128xf32>
    %150 = vector.extract_strided_slice %0 {offsets = [8, 0], sizes = [2, 384], strides = [1, 1]} : vector<16x384xf32> to vector<2x384xf32>
    %cst_51 = arith.constant dense<0.000000e+00> : vector<2x384xf32>
    %151 = tpu.matmul %149, %1, %cst_51 {dimension_numbers = #tpu.dot_dimension_numbers<[1], [0], [0], [1], [0, 0, 1, 1], [], []>} : vector<2x128xf32>, vector<128x384xf32>, vector<2x384xf32> -> vector<2x384xf32>
    %152 = vector.extract_strided_slice %150 {offsets = [0, 0], sizes = [2, 128], strides = [1, 1]} : vector<2x384xf32> to vector<2x128xf32>
    %153 = vector.extract_strided_slice %151 {offsets = [0, 0], sizes = [2, 128], strides = [1, 1]} : vector<2x384xf32> to vector<2x128xf32>
    %154 = arith.addf %152, %153 : vector<2x128xf32>
    %155 = vector.extract_strided_slice %150 {offsets = [0, 128], sizes = [2, 128], strides = [1, 1]} : vector<2x384xf32> to vector<2x128xf32>
    %156 = vector.extract_strided_slice %151 {offsets = [0, 128], sizes = [2, 128], strides = [1, 1]} : vector<2x384xf32> to vector<2x128xf32>
    %157 = arith.addf %155, %156 : vector<2x128xf32>
    %158 = vector.extract_strided_slice %150 {offsets = [0, 256], sizes = [2, 128], strides = [1, 1]} : vector<2x384xf32> to vector<2x128xf32>
    %159 = vector.extract_strided_slice %151 {offsets = [0, 256], sizes = [2, 128], strides = [1, 1]} : vector<2x384xf32> to vector<2x128xf32>
    %160 = vector.broadcast %2 : vector<1x128xf32> to vector<2x128xf32>
    %161 = arith.addf %159, %160 : vector<2x128xf32>
    %cst_52 = arith.constant 5.000000e-01 : f32
    %162 = vector.broadcast %cst_52 : f32 to vector<2x128xf32>
    %163 = arith.mulf %162, %154 : vector<2x128xf32>
    %164 = math.tanh %163 : vector<2x128xf32>
    %cst_53 = arith.constant 5.000000e-01 : f32
    %165 = vector.broadcast %cst_53 : f32 to vector<2x128xf32>
    %166 = arith.mulf %165, %164 : vector<2x128xf32>
    %cst_54 = arith.constant 5.000000e-01 : f32
    %167 = vector.broadcast %cst_54 : f32 to vector<2x128xf32>
    %168 = arith.addf %166, %167 : vector<2x128xf32>
    %cst_55 = arith.constant 5.000000e-01 : f32
    %169 = vector.broadcast %cst_55 : f32 to vector<2x128xf32>
    %170 = arith.mulf %169, %157 : vector<2x128xf32>
    %171 = math.tanh %170 : vector<2x128xf32>
    %cst_56 = arith.constant 5.000000e-01 : f32
    %172 = vector.broadcast %cst_56 : f32 to vector<2x128xf32>
    %173 = arith.mulf %172, %171 : vector<2x128xf32>
    %cst_57 = arith.constant 5.000000e-01 : f32
    %174 = vector.broadcast %cst_57 : f32 to vector<2x128xf32>
    %175 = arith.addf %173, %174 : vector<2x128xf32>
    %176 = arith.mulf %168, %161 : vector<2x128xf32>
    %177 = arith.addf %158, %176 : vector<2x128xf32>
    %178 = math.tanh %177 : vector<2x128xf32>
    %cst_58 = arith.constant 1.000000e+00 : f32
    %179 = vector.broadcast %cst_58 : f32 to vector<2x128xf32>
    %180 = arith.subf %179, %175 : vector<2x128xf32>
    %181 = arith.mulf %180, %178 : vector<2x128xf32>
    %182 = arith.mulf %175, %149 : vector<2x128xf32>
    %183 = arith.addf %181, %182 : vector<2x128xf32>
    %184 = vector.extract_strided_slice %0 {offsets = [10, 0], sizes = [2, 384], strides = [1, 1]} : vector<16x384xf32> to vector<2x384xf32>
    %cst_59 = arith.constant dense<0.000000e+00> : vector<2x384xf32>
    %185 = tpu.matmul %183, %1, %cst_59 {dimension_numbers = #tpu.dot_dimension_numbers<[1], [0], [0], [1], [0, 0, 1, 1], [], []>} : vector<2x128xf32>, vector<128x384xf32>, vector<2x384xf32> -> vector<2x384xf32>
    %186 = vector.extract_strided_slice %184 {offsets = [0, 0], sizes = [2, 128], strides = [1, 1]} : vector<2x384xf32> to vector<2x128xf32>
    %187 = vector.extract_strided_slice %185 {offsets = [0, 0], sizes = [2, 128], strides = [1, 1]} : vector<2x384xf32> to vector<2x128xf32>
    %188 = arith.addf %186, %187 : vector<2x128xf32>
    %189 = vector.extract_strided_slice %184 {offsets = [0, 128], sizes = [2, 128], strides = [1, 1]} : vector<2x384xf32> to vector<2x128xf32>
    %190 = vector.extract_strided_slice %185 {offsets = [0, 128], sizes = [2, 128], strides = [1, 1]} : vector<2x384xf32> to vector<2x128xf32>
    %191 = arith.addf %189, %190 : vector<2x128xf32>
    %192 = vector.extract_strided_slice %184 {offsets = [0, 256], sizes = [2, 128], strides = [1, 1]} : vector<2x384xf32> to vector<2x128xf32>
    %193 = vector.extract_strided_slice %185 {offsets = [0, 256], sizes = [2, 128], strides = [1, 1]} : vector<2x384xf32> to vector<2x128xf32>
    %194 = vector.broadcast %2 : vector<1x128xf32> to vector<2x128xf32>
    %195 = arith.addf %193, %194 : vector<2x128xf32>
    %cst_60 = arith.constant 5.000000e-01 : f32
    %196 = vector.broadcast %cst_60 : f32 to vector<2x128xf32>
    %197 = arith.mulf %196, %188 : vector<2x128xf32>
    %198 = math.tanh %197 : vector<2x128xf32>
    %cst_61 = arith.constant 5.000000e-01 : f32
    %199 = vector.broadcast %cst_61 : f32 to vector<2x128xf32>
    %200 = arith.mulf %199, %198 : vector<2x128xf32>
    %cst_62 = arith.constant 5.000000e-01 : f32
    %201 = vector.broadcast %cst_62 : f32 to vector<2x128xf32>
    %202 = arith.addf %200, %201 : vector<2x128xf32>
    %cst_63 = arith.constant 5.000000e-01 : f32
    %203 = vector.broadcast %cst_63 : f32 to vector<2x128xf32>
    %204 = arith.mulf %203, %191 : vector<2x128xf32>
    %205 = math.tanh %204 : vector<2x128xf32>
    %cst_64 = arith.constant 5.000000e-01 : f32
    %206 = vector.broadcast %cst_64 : f32 to vector<2x128xf32>
    %207 = arith.mulf %206, %205 : vector<2x128xf32>
    %cst_65 = arith.constant 5.000000e-01 : f32
    %208 = vector.broadcast %cst_65 : f32 to vector<2x128xf32>
    %209 = arith.addf %207, %208 : vector<2x128xf32>
    %210 = arith.mulf %202, %195 : vector<2x128xf32>
    %211 = arith.addf %192, %210 : vector<2x128xf32>
    %212 = math.tanh %211 : vector<2x128xf32>
    %cst_66 = arith.constant 1.000000e+00 : f32
    %213 = vector.broadcast %cst_66 : f32 to vector<2x128xf32>
    %214 = arith.subf %213, %209 : vector<2x128xf32>
    %215 = arith.mulf %214, %212 : vector<2x128xf32>
    %216 = arith.mulf %209, %183 : vector<2x128xf32>
    %217 = arith.addf %215, %216 : vector<2x128xf32>
    %218 = vector.extract_strided_slice %0 {offsets = [12, 0], sizes = [2, 384], strides = [1, 1]} : vector<16x384xf32> to vector<2x384xf32>
    %cst_67 = arith.constant dense<0.000000e+00> : vector<2x384xf32>
    %219 = tpu.matmul %217, %1, %cst_67 {dimension_numbers = #tpu.dot_dimension_numbers<[1], [0], [0], [1], [0, 0, 1, 1], [], []>} : vector<2x128xf32>, vector<128x384xf32>, vector<2x384xf32> -> vector<2x384xf32>
    %220 = vector.extract_strided_slice %218 {offsets = [0, 0], sizes = [2, 128], strides = [1, 1]} : vector<2x384xf32> to vector<2x128xf32>
    %221 = vector.extract_strided_slice %219 {offsets = [0, 0], sizes = [2, 128], strides = [1, 1]} : vector<2x384xf32> to vector<2x128xf32>
    %222 = arith.addf %220, %221 : vector<2x128xf32>
    %223 = vector.extract_strided_slice %218 {offsets = [0, 128], sizes = [2, 128], strides = [1, 1]} : vector<2x384xf32> to vector<2x128xf32>
    %224 = vector.extract_strided_slice %219 {offsets = [0, 128], sizes = [2, 128], strides = [1, 1]} : vector<2x384xf32> to vector<2x128xf32>
    %225 = arith.addf %223, %224 : vector<2x128xf32>
    %226 = vector.extract_strided_slice %218 {offsets = [0, 256], sizes = [2, 128], strides = [1, 1]} : vector<2x384xf32> to vector<2x128xf32>
    %227 = vector.extract_strided_slice %219 {offsets = [0, 256], sizes = [2, 128], strides = [1, 1]} : vector<2x384xf32> to vector<2x128xf32>
    %228 = vector.broadcast %2 : vector<1x128xf32> to vector<2x128xf32>
    %229 = arith.addf %227, %228 : vector<2x128xf32>
    %cst_68 = arith.constant 5.000000e-01 : f32
    %230 = vector.broadcast %cst_68 : f32 to vector<2x128xf32>
    %231 = arith.mulf %230, %222 : vector<2x128xf32>
    %232 = math.tanh %231 : vector<2x128xf32>
    %cst_69 = arith.constant 5.000000e-01 : f32
    %233 = vector.broadcast %cst_69 : f32 to vector<2x128xf32>
    %234 = arith.mulf %233, %232 : vector<2x128xf32>
    %cst_70 = arith.constant 5.000000e-01 : f32
    %235 = vector.broadcast %cst_70 : f32 to vector<2x128xf32>
    %236 = arith.addf %234, %235 : vector<2x128xf32>
    %cst_71 = arith.constant 5.000000e-01 : f32
    %237 = vector.broadcast %cst_71 : f32 to vector<2x128xf32>
    %238 = arith.mulf %237, %225 : vector<2x128xf32>
    %239 = math.tanh %238 : vector<2x128xf32>
    %cst_72 = arith.constant 5.000000e-01 : f32
    %240 = vector.broadcast %cst_72 : f32 to vector<2x128xf32>
    %241 = arith.mulf %240, %239 : vector<2x128xf32>
    %cst_73 = arith.constant 5.000000e-01 : f32
    %242 = vector.broadcast %cst_73 : f32 to vector<2x128xf32>
    %243 = arith.addf %241, %242 : vector<2x128xf32>
    %244 = arith.mulf %236, %229 : vector<2x128xf32>
    %245 = arith.addf %226, %244 : vector<2x128xf32>
    %246 = math.tanh %245 : vector<2x128xf32>
    %cst_74 = arith.constant 1.000000e+00 : f32
    %247 = vector.broadcast %cst_74 : f32 to vector<2x128xf32>
    %248 = arith.subf %247, %243 : vector<2x128xf32>
    %249 = arith.mulf %248, %246 : vector<2x128xf32>
    %250 = arith.mulf %243, %217 : vector<2x128xf32>
    %251 = arith.addf %249, %250 : vector<2x128xf32>
    %252 = vector.extract_strided_slice %0 {offsets = [14, 0], sizes = [2, 384], strides = [1, 1]} : vector<16x384xf32> to vector<2x384xf32>
    %cst_75 = arith.constant dense<0.000000e+00> : vector<2x384xf32>
    %253 = tpu.matmul %251, %1, %cst_75 {dimension_numbers = #tpu.dot_dimension_numbers<[1], [0], [0], [1], [0, 0, 1, 1], [], []>} : vector<2x128xf32>, vector<128x384xf32>, vector<2x384xf32> -> vector<2x384xf32>
    %254 = vector.extract_strided_slice %252 {offsets = [0, 0], sizes = [2, 128], strides = [1, 1]} : vector<2x384xf32> to vector<2x128xf32>
    %255 = vector.extract_strided_slice %253 {offsets = [0, 0], sizes = [2, 128], strides = [1, 1]} : vector<2x384xf32> to vector<2x128xf32>
    %256 = arith.addf %254, %255 : vector<2x128xf32>
    %257 = vector.extract_strided_slice %252 {offsets = [0, 128], sizes = [2, 128], strides = [1, 1]} : vector<2x384xf32> to vector<2x128xf32>
    %258 = vector.extract_strided_slice %253 {offsets = [0, 128], sizes = [2, 128], strides = [1, 1]} : vector<2x384xf32> to vector<2x128xf32>
    %259 = arith.addf %257, %258 : vector<2x128xf32>
    %260 = vector.extract_strided_slice %252 {offsets = [0, 256], sizes = [2, 128], strides = [1, 1]} : vector<2x384xf32> to vector<2x128xf32>
    %261 = vector.extract_strided_slice %253 {offsets = [0, 256], sizes = [2, 128], strides = [1, 1]} : vector<2x384xf32> to vector<2x128xf32>
    %262 = vector.broadcast %2 : vector<1x128xf32> to vector<2x128xf32>
    %263 = arith.addf %261, %262 : vector<2x128xf32>
    %cst_76 = arith.constant 5.000000e-01 : f32
    %264 = vector.broadcast %cst_76 : f32 to vector<2x128xf32>
    %265 = arith.mulf %264, %256 : vector<2x128xf32>
    %266 = math.tanh %265 : vector<2x128xf32>
    %cst_77 = arith.constant 5.000000e-01 : f32
    %267 = vector.broadcast %cst_77 : f32 to vector<2x128xf32>
    %268 = arith.mulf %267, %266 : vector<2x128xf32>
    %cst_78 = arith.constant 5.000000e-01 : f32
    %269 = vector.broadcast %cst_78 : f32 to vector<2x128xf32>
    %270 = arith.addf %268, %269 : vector<2x128xf32>
    %cst_79 = arith.constant 5.000000e-01 : f32
    %271 = vector.broadcast %cst_79 : f32 to vector<2x128xf32>
    %272 = arith.mulf %271, %259 : vector<2x128xf32>
    %273 = math.tanh %272 : vector<2x128xf32>
    %cst_80 = arith.constant 5.000000e-01 : f32
    %274 = vector.broadcast %cst_80 : f32 to vector<2x128xf32>
    %275 = arith.mulf %274, %273 : vector<2x128xf32>
    %cst_81 = arith.constant 5.000000e-01 : f32
    %276 = vector.broadcast %cst_81 : f32 to vector<2x128xf32>
    %277 = arith.addf %275, %276 : vector<2x128xf32>
    %278 = arith.mulf %270, %263 : vector<2x128xf32>
    %279 = arith.addf %260, %278 : vector<2x128xf32>
    %280 = math.tanh %279 : vector<2x128xf32>
    %cst_82 = arith.constant 1.000000e+00 : f32
    %281 = vector.broadcast %cst_82 : f32 to vector<2x128xf32>
    %282 = arith.subf %281, %277 : vector<2x128xf32>
    %283 = arith.mulf %282, %280 : vector<2x128xf32>
    %284 = arith.mulf %277, %251 : vector<2x128xf32>
    %285 = arith.addf %283, %284 : vector<2x128xf32>
    %286 = tpu.iota {dimensions = array<i32: 1>} : vector<2x128xi32>
    %cst_83 = arith.constant dense<0.000000e+00> : vector<2x128xf32>
    %287 = tpu.matmul %285, %5, %cst_83 {dimension_numbers = #tpu.dot_dimension_numbers<[1], [0], [0], [1], [0, 0, 1, 1], [], []>} : vector<2x128xf32>, vector<128x128xf32>, vector<2x128xf32> -> vector<2x128xf32>
    %288 = vector.broadcast %6 : vector<1x128xf32> to vector<2x128xf32>
    %289 = arith.addf %287, %288 : vector<2x128xf32>
    %cst_84 = arith.constant dense<0xFF800000> : vector<2xf32>
    %290 = vector.multi_reduction <maximumf>, %289, %cst_84 [1] : vector<2x128xf32> to vector<2xf32>
    %291 = vector.shape_cast %290 : vector<2xf32> to vector<2x1xf32>
    %292 = vector.broadcast %291 : vector<2x1xf32> to vector<2x128xf32>
    %293 = arith.subf %289, %292 : vector<2x128xf32>
    %294 = math.exp %293 : vector<2x128xf32>
    %cst_85 = arith.constant dense<0.000000e+00> : vector<2xf32>
    %295 = vector.multi_reduction <add>, %294, %cst_85 [1] : vector<2x128xf32> to vector<2xf32>
    %296 = vector.shape_cast %295 : vector<2xf32> to vector<2x1xf32>
    %297 = math.log %296 : vector<2x1xf32>
    %298 = arith.addf %291, %297 : vector<2x1xf32>
    %299 = vector.broadcast %298 : vector<2x1xf32> to vector<2x128xf32>
    %300 = arith.subf %289, %299 : vector<2x128xf32>
    %c0_86 = arith.constant 0 : index
    %c0_87 = arith.constant 0 : index
    %c0_88 = arith.constant 0 : index
    %301 = vector.load %arg10[%c0_86, %c0_87, %c0_88] : memref<2x5x128xf32, #tpu.memory_space<vmem>>, vector<2x1x128xf32>
    %302 = vector.shape_cast %301 : vector<2x1x128xf32> to vector<2x128xf32>
    %303 = vector.shape_cast %300 : vector<2x128xf32> to vector<2x1x128xf32>
    tpu.vector_store %arg10[%c0_86, %c0_87, %c0_88], %303 {strides = array<i32>} : memref<2x5x128xf32, #tpu.memory_space<vmem>>, vector<2x1x128xf32>,
    %304 = vector.broadcast %291 : vector<2x1xf32> to vector<2x128xf32>
    %305 = arith.cmpf oeq, %289, %304 : vector<2x128xf32>
    %c128_i32 = arith.constant 128 : i32
    %306 = vector.broadcast %c128_i32 : i32 to vector<2x128xi32>
    %307 = arith.select %305, %286, %306 : vector<2x128xi1>, vector<2x128xi32>
    %cst_89 = arith.constant dense<2147483647> : vector<2xi32>
    %308 = vector.multi_reduction <minsi>, %307, %cst_89 [1] : vector<2x128xi32> to vector<2xi32>
    %309 = vector.shape_cast %308 : vector<2xi32> to vector<2x1xi32>
    %310 = vector.broadcast %309 : vector<2x1xi32> to vector<2x128xi32>
    %311 = arith.cmpi eq, %286, %310 : vector<2x128xi32>
    %312 = arith.extui %311 : vector<2x128xi1> to vector<2x128xi32>
    %313 = arith.sitofp %312 : vector<2x128xi32> to vector<2x128xf32>
    %314 = tpu.concatenate %313, %285 in 1 : vector<2x128xf32>, vector<2x128xf32> -> vector<2x256xf32>
    %cst_90 = arith.constant dense<0.000000e+00> : vector<2x512xf32>
    %315 = tpu.matmul %314, %3, %cst_90 {dimension_numbers = #tpu.dot_dimension_numbers<[1], [0], [0], [1], [0, 0, 1, 1], [], []>} : vector<2x256xf32>, vector<256x512xf32>, vector<2x512xf32> -> vector<2x512xf32>
    %316 = vector.broadcast %4 : vector<1x512xf32> to vector<2x512xf32>
    %317 = arith.addf %315, %316 : vector<2x512xf32>
    %318 = vector.extract_strided_slice %317 {offsets = [0, 0], sizes = [2, 128], strides = [1, 1]} : vector<2x512xf32> to vector<2x128xf32>
    %319 = vector.extract_strided_slice %317 {offsets = [0, 128], sizes = [2, 128], strides = [1, 1]} : vector<2x512xf32> to vector<2x128xf32>
    %320 = vector.extract_strided_slice %317 {offsets = [0, 256], sizes = [2, 128], strides = [1, 1]} : vector<2x512xf32> to vector<2x128xf32>
    %321 = vector.extract_strided_slice %317 {offsets = [0, 384], sizes = [2, 128], strides = [1, 1]} : vector<2x512xf32> to vector<2x128xf32>
    %cst_91 = arith.constant 5.000000e-01 : f32
    %322 = vector.broadcast %cst_91 : f32 to vector<2x128xf32>
    %323 = arith.mulf %322, %318 : vector<2x128xf32>
    %324 = math.tanh %323 : vector<2x128xf32>
    %cst_92 = arith.constant 5.000000e-01 : f32
    %325 = vector.broadcast %cst_92 : f32 to vector<2x128xf32>
    %326 = arith.mulf %325, %324 : vector<2x128xf32>
    %cst_93 = arith.constant 5.000000e-01 : f32
    %327 = vector.broadcast %cst_93 : f32 to vector<2x128xf32>
    %328 = arith.addf %326, %327 : vector<2x128xf32>
    %cst_94 = arith.constant 5.000000e-01 : f32
    %329 = vector.broadcast %cst_94 : f32 to vector<2x128xf32>
    %330 = arith.mulf %329, %319 : vector<2x128xf32>
    %331 = math.tanh %330 : vector<2x128xf32>
    %cst_95 = arith.constant 5.000000e-01 : f32
    %332 = vector.broadcast %cst_95 : f32 to vector<2x128xf32>
    %333 = arith.mulf %332, %331 : vector<2x128xf32>
    %cst_96 = arith.constant 5.000000e-01 : f32
    %334 = vector.broadcast %cst_96 : f32 to vector<2x128xf32>
    %335 = arith.addf %333, %334 : vector<2x128xf32>
    %336 = arith.mulf %328, %321 : vector<2x128xf32>
    %337 = arith.addf %320, %336 : vector<2x128xf32>
    %338 = math.tanh %337 : vector<2x128xf32>
    %cst_97 = arith.constant 1.000000e+00 : f32
    %339 = vector.broadcast %cst_97 : f32 to vector<2x128xf32>
    %340 = arith.subf %339, %335 : vector<2x128xf32>
    %341 = arith.mulf %340, %338 : vector<2x128xf32>
    %342 = arith.mulf %335, %285 : vector<2x128xf32>
    %343 = arith.addf %341, %342 : vector<2x128xf32>
    %cst_98 = arith.constant dense<0.000000e+00> : vector<2x128xf32>
    %344 = tpu.matmul %343, %5, %cst_98 {dimension_numbers = #tpu.dot_dimension_numbers<[1], [0], [0], [1], [0, 0, 1, 1], [], []>} : vector<2x128xf32>, vector<128x128xf32>, vector<2x128xf32> -> vector<2x128xf32>
    %345 = vector.broadcast %6 : vector<1x128xf32> to vector<2x128xf32>
    %346 = arith.addf %344, %345 : vector<2x128xf32>
    %cst_99 = arith.constant dense<0xFF800000> : vector<2xf32>
    %347 = vector.multi_reduction <maximumf>, %346, %cst_99 [1] : vector<2x128xf32> to vector<2xf32>
    %348 = vector.shape_cast %347 : vector<2xf32> to vector<2x1xf32>
    %349 = vector.broadcast %348 : vector<2x1xf32> to vector<2x128xf32>
    %350 = arith.subf %346, %349 : vector<2x128xf32>
    %351 = math.exp %350 : vector<2x128xf32>
    %cst_100 = arith.constant dense<0.000000e+00> : vector<2xf32>
    %352 = vector.multi_reduction <add>, %351, %cst_100 [1] : vector<2x128xf32> to vector<2xf32>
    %353 = vector.shape_cast %352 : vector<2xf32> to vector<2x1xf32>
    %354 = math.log %353 : vector<2x1xf32>
    %355 = arith.addf %348, %354 : vector<2x1xf32>
    %356 = vector.broadcast %355 : vector<2x1xf32> to vector<2x128xf32>
    %357 = arith.subf %346, %356 : vector<2x128xf32>
    %c0_101 = arith.constant 0 : index
    %c1 = arith.constant 1 : index
    %c0_102 = arith.constant 0 : index
    %358 = vector.load %arg10[%c0_101, %c1, %c0_102] : memref<2x5x128xf32, #tpu.memory_space<vmem>>, vector<2x1x128xf32>
    %359 = vector.shape_cast %358 : vector<2x1x128xf32> to vector<2x128xf32>
    %360 = vector.shape_cast %357 : vector<2x128xf32> to vector<2x1x128xf32>
    tpu.vector_store %arg10[%c0_101, %c1, %c0_102], %360 {strides = array<i32>} : memref<2x5x128xf32, #tpu.memory_space<vmem>>, vector<2x1x128xf32>,
    %361 = vector.broadcast %348 : vector<2x1xf32> to vector<2x128xf32>
    %362 = arith.cmpf oeq, %346, %361 : vector<2x128xf32>
    %c128_i32_103 = arith.constant 128 : i32
    %363 = vector.broadcast %c128_i32_103 : i32 to vector<2x128xi32>
    %364 = arith.select %362, %286, %363 : vector<2x128xi1>, vector<2x128xi32>
    %cst_104 = arith.constant dense<2147483647> : vector<2xi32>
    %365 = vector.multi_reduction <minsi>, %364, %cst_104 [1] : vector<2x128xi32> to vector<2xi32>
    %366 = vector.shape_cast %365 : vector<2xi32> to vector<2x1xi32>
    %367 = vector.broadcast %366 : vector<2x1xi32> to vector<2x128xi32>
    %368 = arith.cmpi eq, %286, %367 : vector<2x128xi32>
    %369 = arith.extui %368 : vector<2x128xi1> to vector<2x128xi32>
    %370 = arith.sitofp %369 : vector<2x128xi32> to vector<2x128xf32>
    %371 = tpu.concatenate %370, %343 in 1 : vector<2x128xf32>, vector<2x128xf32> -> vector<2x256xf32>
    %cst_105 = arith.constant dense<0.000000e+00> : vector<2x512xf32>
    %372 = tpu.matmul %371, %3, %cst_105 {dimension_numbers = #tpu.dot_dimension_numbers<[1], [0], [0], [1], [0, 0, 1, 1], [], []>} : vector<2x256xf32>, vector<256x512xf32>, vector<2x512xf32> -> vector<2x512xf32>
    %373 = vector.broadcast %4 : vector<1x512xf32> to vector<2x512xf32>
    %374 = arith.addf %372, %373 : vector<2x512xf32>
    %375 = vector.extract_strided_slice %374 {offsets = [0, 0], sizes = [2, 128], strides = [1, 1]} : vector<2x512xf32> to vector<2x128xf32>
    %376 = vector.extract_strided_slice %374 {offsets = [0, 128], sizes = [2, 128], strides = [1, 1]} : vector<2x512xf32> to vector<2x128xf32>
    %377 = vector.extract_strided_slice %374 {offsets = [0, 256], sizes = [2, 128], strides = [1, 1]} : vector<2x512xf32> to vector<2x128xf32>
    %378 = vector.extract_strided_slice %374 {offsets = [0, 384], sizes = [2, 128], strides = [1, 1]} : vector<2x512xf32> to vector<2x128xf32>
    %cst_106 = arith.constant 5.000000e-01 : f32
    %379 = vector.broadcast %cst_106 : f32 to vector<2x128xf32>
    %380 = arith.mulf %379, %375 : vector<2x128xf32>
    %381 = math.tanh %380 : vector<2x128xf32>
    %cst_107 = arith.constant 5.000000e-01 : f32
    %382 = vector.broadcast %cst_107 : f32 to vector<2x128xf32>
    %383 = arith.mulf %382, %381 : vector<2x128xf32>
    %cst_108 = arith.constant 5.000000e-01 : f32
    %384 = vector.broadcast %cst_108 : f32 to vector<2x128xf32>
    %385 = arith.addf %383, %384 : vector<2x128xf32>
    %cst_109 = arith.constant 5.000000e-01 : f32
    %386 = vector.broadcast %cst_109 : f32 to vector<2x128xf32>
    %387 = arith.mulf %386, %376 : vector<2x128xf32>
    %388 = math.tanh %387 : vector<2x128xf32>
    %cst_110 = arith.constant 5.000000e-01 : f32
    %389 = vector.broadcast %cst_110 : f32 to vector<2x128xf32>
    %390 = arith.mulf %389, %388 : vector<2x128xf32>
    %cst_111 = arith.constant 5.000000e-01 : f32
    %391 = vector.broadcast %cst_111 : f32 to vector<2x128xf32>
    %392 = arith.addf %390, %391 : vector<2x128xf32>
    %393 = arith.mulf %385, %378 : vector<2x128xf32>
    %394 = arith.addf %377, %393 : vector<2x128xf32>
    %395 = math.tanh %394 : vector<2x128xf32>
    %cst_112 = arith.constant 1.000000e+00 : f32
    %396 = vector.broadcast %cst_112 : f32 to vector<2x128xf32>
    %397 = arith.subf %396, %392 : vector<2x128xf32>
    %398 = arith.mulf %397, %395 : vector<2x128xf32>
    %399 = arith.mulf %392, %343 : vector<2x128xf32>
    %400 = arith.addf %398, %399 : vector<2x128xf32>
    %cst_113 = arith.constant dense<0.000000e+00> : vector<2x128xf32>
    %401 = tpu.matmul %400, %5, %cst_113 {dimension_numbers = #tpu.dot_dimension_numbers<[1], [0], [0], [1], [0, 0, 1, 1], [], []>} : vector<2x128xf32>, vector<128x128xf32>, vector<2x128xf32> -> vector<2x128xf32>
    %402 = vector.broadcast %6 : vector<1x128xf32> to vector<2x128xf32>
    %403 = arith.addf %401, %402 : vector<2x128xf32>
    %cst_114 = arith.constant dense<0xFF800000> : vector<2xf32>
    %404 = vector.multi_reduction <maximumf>, %403, %cst_114 [1] : vector<2x128xf32> to vector<2xf32>
    %405 = vector.shape_cast %404 : vector<2xf32> to vector<2x1xf32>
    %406 = vector.broadcast %405 : vector<2x1xf32> to vector<2x128xf32>
    %407 = arith.subf %403, %406 : vector<2x128xf32>
    %408 = math.exp %407 : vector<2x128xf32>
    %cst_115 = arith.constant dense<0.000000e+00> : vector<2xf32>
    %409 = vector.multi_reduction <add>, %408, %cst_115 [1] : vector<2x128xf32> to vector<2xf32>
    %410 = vector.shape_cast %409 : vector<2xf32> to vector<2x1xf32>
    %411 = math.log %410 : vector<2x1xf32>
    %412 = arith.addf %405, %411 : vector<2x1xf32>
    %413 = vector.broadcast %412 : vector<2x1xf32> to vector<2x128xf32>
    %414 = arith.subf %403, %413 : vector<2x128xf32>
    %c0_116 = arith.constant 0 : index
    %c2 = arith.constant 2 : index
    %c0_117 = arith.constant 0 : index
    %415 = vector.load %arg10[%c0_116, %c2, %c0_117] : memref<2x5x128xf32, #tpu.memory_space<vmem>>, vector<2x1x128xf32>
    %416 = vector.shape_cast %415 : vector<2x1x128xf32> to vector<2x128xf32>
    %417 = vector.shape_cast %414 : vector<2x128xf32> to vector<2x1x128xf32>
    tpu.vector_store %arg10[%c0_116, %c2, %c0_117], %417 {strides = array<i32>} : memref<2x5x128xf32, #tpu.memory_space<vmem>>, vector<2x1x128xf32>,
    %418 = vector.broadcast %405 : vector<2x1xf32> to vector<2x128xf32>
    %419 = arith.cmpf oeq, %403, %418 : vector<2x128xf32>
    %c128_i32_118 = arith.constant 128 : i32
    %420 = vector.broadcast %c128_i32_118 : i32 to vector<2x128xi32>
    %421 = arith.select %419, %286, %420 : vector<2x128xi1>, vector<2x128xi32>
    %cst_119 = arith.constant dense<2147483647> : vector<2xi32>
    %422 = vector.multi_reduction <minsi>, %421, %cst_119 [1] : vector<2x128xi32> to vector<2xi32>
    %423 = vector.shape_cast %422 : vector<2xi32> to vector<2x1xi32>
    %424 = vector.broadcast %423 : vector<2x1xi32> to vector<2x128xi32>
    %425 = arith.cmpi eq, %286, %424 : vector<2x128xi32>
    %426 = arith.extui %425 : vector<2x128xi1> to vector<2x128xi32>
    %427 = arith.sitofp %426 : vector<2x128xi32> to vector<2x128xf32>
    %428 = tpu.concatenate %427, %400 in 1 : vector<2x128xf32>, vector<2x128xf32> -> vector<2x256xf32>
    %cst_120 = arith.constant dense<0.000000e+00> : vector<2x512xf32>
    %429 = tpu.matmul %428, %3, %cst_120 {dimension_numbers = #tpu.dot_dimension_numbers<[1], [0], [0], [1], [0, 0, 1, 1], [], []>} : vector<2x256xf32>, vector<256x512xf32>, vector<2x512xf32> -> vector<2x512xf32>
    %430 = vector.broadcast %4 : vector<1x512xf32> to vector<2x512xf32>
    %431 = arith.addf %429, %430 : vector<2x512xf32>
    %432 = vector.extract_strided_slice %431 {offsets = [0, 0], sizes = [2, 128], strides = [1, 1]} : vector<2x512xf32> to vector<2x128xf32>
    %433 = vector.extract_strided_slice %431 {offsets = [0, 128], sizes = [2, 128], strides = [1, 1]} : vector<2x512xf32> to vector<2x128xf32>
    %434 = vector.extract_strided_slice %431 {offsets = [0, 256], sizes = [2, 128], strides = [1, 1]} : vector<2x512xf32> to vector<2x128xf32>
    %435 = vector.extract_strided_slice %431 {offsets = [0, 384], sizes = [2, 128], strides = [1, 1]} : vector<2x512xf32> to vector<2x128xf32>
    %cst_121 = arith.constant 5.000000e-01 : f32
    %436 = vector.broadcast %cst_121 : f32 to vector<2x128xf32>
    %437 = arith.mulf %436, %432 : vector<2x128xf32>
    %438 = math.tanh %437 : vector<2x128xf32>
    %cst_122 = arith.constant 5.000000e-01 : f32
    %439 = vector.broadcast %cst_122 : f32 to vector<2x128xf32>
    %440 = arith.mulf %439, %438 : vector<2x128xf32>
    %cst_123 = arith.constant 5.000000e-01 : f32
    %441 = vector.broadcast %cst_123 : f32 to vector<2x128xf32>
    %442 = arith.addf %440, %441 : vector<2x128xf32>
    %cst_124 = arith.constant 5.000000e-01 : f32
    %443 = vector.broadcast %cst_124 : f32 to vector<2x128xf32>
    %444 = arith.mulf %443, %433 : vector<2x128xf32>
    %445 = math.tanh %444 : vector<2x128xf32>
    %cst_125 = arith.constant 5.000000e-01 : f32
    %446 = vector.broadcast %cst_125 : f32 to vector<2x128xf32>
    %447 = arith.mulf %446, %445 : vector<2x128xf32>
    %cst_126 = arith.constant 5.000000e-01 : f32
    %448 = vector.broadcast %cst_126 : f32 to vector<2x128xf32>
    %449 = arith.addf %447, %448 : vector<2x128xf32>
    %450 = arith.mulf %442, %435 : vector<2x128xf32>
    %451 = arith.addf %434, %450 : vector<2x128xf32>
    %452 = math.tanh %451 : vector<2x128xf32>
    %cst_127 = arith.constant 1.000000e+00 : f32
    %453 = vector.broadcast %cst_127 : f32 to vector<2x128xf32>
    %454 = arith.subf %453, %449 : vector<2x128xf32>
    %455 = arith.mulf %454, %452 : vector<2x128xf32>
    %456 = arith.mulf %449, %400 : vector<2x128xf32>
    %457 = arith.addf %455, %456 : vector<2x128xf32>
    %cst_128 = arith.constant dense<0.000000e+00> : vector<2x128xf32>
    %458 = tpu.matmul %457, %5, %cst_128 {dimension_numbers = #tpu.dot_dimension_numbers<[1], [0], [0], [1], [0, 0, 1, 1], [], []>} : vector<2x128xf32>, vector<128x128xf32>, vector<2x128xf32> -> vector<2x128xf32>
    %459 = vector.broadcast %6 : vector<1x128xf32> to vector<2x128xf32>
    %460 = arith.addf %458, %459 : vector<2x128xf32>
    %cst_129 = arith.constant dense<0xFF800000> : vector<2xf32>
    %461 = vector.multi_reduction <maximumf>, %460, %cst_129 [1] : vector<2x128xf32> to vector<2xf32>
    %462 = vector.shape_cast %461 : vector<2xf32> to vector<2x1xf32>
    %463 = vector.broadcast %462 : vector<2x1xf32> to vector<2x128xf32>
    %464 = arith.subf %460, %463 : vector<2x128xf32>
    %465 = math.exp %464 : vector<2x128xf32>
    %cst_130 = arith.constant dense<0.000000e+00> : vector<2xf32>
    %466 = vector.multi_reduction <add>, %465, %cst_130 [1] : vector<2x128xf32> to vector<2xf32>
    %467 = vector.shape_cast %466 : vector<2xf32> to vector<2x1xf32>
    %468 = math.log %467 : vector<2x1xf32>
    %469 = arith.addf %462, %468 : vector<2x1xf32>
    %470 = vector.broadcast %469 : vector<2x1xf32> to vector<2x128xf32>
    %471 = arith.subf %460, %470 : vector<2x128xf32>
    %c0_131 = arith.constant 0 : index
    %c3 = arith.constant 3 : index
    %c0_132 = arith.constant 0 : index
    %472 = vector.load %arg10[%c0_131, %c3, %c0_132] : memref<2x5x128xf32, #tpu.memory_space<vmem>>, vector<2x1x128xf32>
    %473 = vector.shape_cast %472 : vector<2x1x128xf32> to vector<2x128xf32>
    %474 = vector.shape_cast %471 : vector<2x128xf32> to vector<2x1x128xf32>
    tpu.vector_store %arg10[%c0_131, %c3, %c0_132], %474 {strides = array<i32>} : memref<2x5x128xf32, #tpu.memory_space<vmem>>, vector<2x1x128xf32>,
    %475 = vector.broadcast %462 : vector<2x1xf32> to vector<2x128xf32>
    %476 = arith.cmpf oeq, %460, %475 : vector<2x128xf32>
    %c128_i32_133 = arith.constant 128 : i32
    %477 = vector.broadcast %c128_i32_133 : i32 to vector<2x128xi32>
    %478 = arith.select %476, %286, %477 : vector<2x128xi1>, vector<2x128xi32>
    %cst_134 = arith.constant dense<2147483647> : vector<2xi32>
    %479 = vector.multi_reduction <minsi>, %478, %cst_134 [1] : vector<2x128xi32> to vector<2xi32>
    %480 = vector.shape_cast %479 : vector<2xi32> to vector<2x1xi32>
    %481 = vector.broadcast %480 : vector<2x1xi32> to vector<2x128xi32>
    %482 = arith.cmpi eq, %286, %481 : vector<2x128xi32>
    %483 = arith.extui %482 : vector<2x128xi1> to vector<2x128xi32>
    %484 = arith.sitofp %483 : vector<2x128xi32> to vector<2x128xf32>
    %485 = tpu.concatenate %484, %457 in 1 : vector<2x128xf32>, vector<2x128xf32> -> vector<2x256xf32>
    %cst_135 = arith.constant dense<0.000000e+00> : vector<2x512xf32>
    %486 = tpu.matmul %485, %3, %cst_135 {dimension_numbers = #tpu.dot_dimension_numbers<[1], [0], [0], [1], [0, 0, 1, 1], [], []>} : vector<2x256xf32>, vector<256x512xf32>, vector<2x512xf32> -> vector<2x512xf32>
    %487 = vector.broadcast %4 : vector<1x512xf32> to vector<2x512xf32>
    %488 = arith.addf %486, %487 : vector<2x512xf32>
    %489 = vector.extract_strided_slice %488 {offsets = [0, 0], sizes = [2, 128], strides = [1, 1]} : vector<2x512xf32> to vector<2x128xf32>
    %490 = vector.extract_strided_slice %488 {offsets = [0, 128], sizes = [2, 128], strides = [1, 1]} : vector<2x512xf32> to vector<2x128xf32>
    %491 = vector.extract_strided_slice %488 {offsets = [0, 256], sizes = [2, 128], strides = [1, 1]} : vector<2x512xf32> to vector<2x128xf32>
    %492 = vector.extract_strided_slice %488 {offsets = [0, 384], sizes = [2, 128], strides = [1, 1]} : vector<2x512xf32> to vector<2x128xf32>
    %cst_136 = arith.constant 5.000000e-01 : f32
    %493 = vector.broadcast %cst_136 : f32 to vector<2x128xf32>
    %494 = arith.mulf %493, %489 : vector<2x128xf32>
    %495 = math.tanh %494 : vector<2x128xf32>
    %cst_137 = arith.constant 5.000000e-01 : f32
    %496 = vector.broadcast %cst_137 : f32 to vector<2x128xf32>
    %497 = arith.mulf %496, %495 : vector<2x128xf32>
    %cst_138 = arith.constant 5.000000e-01 : f32
    %498 = vector.broadcast %cst_138 : f32 to vector<2x128xf32>
    %499 = arith.addf %497, %498 : vector<2x128xf32>
    %cst_139 = arith.constant 5.000000e-01 : f32
    %500 = vector.broadcast %cst_139 : f32 to vector<2x128xf32>
    %501 = arith.mulf %500, %490 : vector<2x128xf32>
    %502 = math.tanh %501 : vector<2x128xf32>
    %cst_140 = arith.constant 5.000000e-01 : f32
    %503 = vector.broadcast %cst_140 : f32 to vector<2x128xf32>
    %504 = arith.mulf %503, %502 : vector<2x128xf32>
    %cst_141 = arith.constant 5.000000e-01 : f32
    %505 = vector.broadcast %cst_141 : f32 to vector<2x128xf32>
    %506 = arith.addf %504, %505 : vector<2x128xf32>
    %507 = arith.mulf %499, %492 : vector<2x128xf32>
    %508 = arith.addf %491, %507 : vector<2x128xf32>
    %509 = math.tanh %508 : vector<2x128xf32>
    %cst_142 = arith.constant 1.000000e+00 : f32
    %510 = vector.broadcast %cst_142 : f32 to vector<2x128xf32>
    %511 = arith.subf %510, %506 : vector<2x128xf32>
    %512 = arith.mulf %511, %509 : vector<2x128xf32>
    %513 = arith.mulf %506, %457 : vector<2x128xf32>
    %514 = arith.addf %512, %513 : vector<2x128xf32>
    %cst_143 = arith.constant dense<0.000000e+00> : vector<2x128xf32>
    %515 = tpu.matmul %514, %5, %cst_143 {dimension_numbers = #tpu.dot_dimension_numbers<[1], [0], [0], [1], [0, 0, 1, 1], [], []>} : vector<2x128xf32>, vector<128x128xf32>, vector<2x128xf32> -> vector<2x128xf32>
    %516 = vector.broadcast %6 : vector<1x128xf32> to vector<2x128xf32>
    %517 = arith.addf %515, %516 : vector<2x128xf32>
    %cst_144 = arith.constant dense<0xFF800000> : vector<2xf32>
    %518 = vector.multi_reduction <maximumf>, %517, %cst_144 [1] : vector<2x128xf32> to vector<2xf32>
    %519 = vector.shape_cast %518 : vector<2xf32> to vector<2x1xf32>
    %520 = vector.broadcast %519 : vector<2x1xf32> to vector<2x128xf32>
    %521 = arith.subf %517, %520 : vector<2x128xf32>
    %522 = math.exp %521 : vector<2x128xf32>
    %cst_145 = arith.constant dense<0.000000e+00> : vector<2xf32>
    %523 = vector.multi_reduction <add>, %522, %cst_145 [1] : vector<2x128xf32> to vector<2xf32>
    %524 = vector.shape_cast %523 : vector<2xf32> to vector<2x1xf32>
    %525 = math.log %524 : vector<2x1xf32>
    %526 = arith.addf %519, %525 : vector<2x1xf32>
    %527 = vector.broadcast %526 : vector<2x1xf32> to vector<2x128xf32>
    %528 = arith.subf %517, %527 : vector<2x128xf32>
    %c0_146 = arith.constant 0 : index
    %c4 = arith.constant 4 : index
    %c0_147 = arith.constant 0 : index
    %529 = vector.load %arg10[%c0_146, %c4, %c0_147] : memref<2x5x128xf32, #tpu.memory_space<vmem>>, vector<2x1x128xf32>
    %530 = vector.shape_cast %529 : vector<2x1x128xf32> to vector<2x128xf32>
    %531 = vector.shape_cast %528 : vector<2x128xf32> to vector<2x1x128xf32>
    tpu.vector_store %arg10[%c0_146, %c4, %c0_147], %531 {strides = array<i32>} : memref<2x5x128xf32, #tpu.memory_space<vmem>>, vector<2x1x128xf32>,
    return
  }
}

</mosaic_0001>

<bundles_post_ra>
// kernel: tpu_custom_call.1
= control target key start
LH: loop header
LB: loop body
LE: loop exit
PB: predicated region body
PF: predicated region fallthrough
CT: control target
= control target key end

     0   :  { %15 = vsyncpa [#allocation3], 0  ;;  %s6311_s0 = inlined_call_operand.hbm [shape: f32[16,384], index: 0, kind: input, shape index: {}]   ;;  %s6312_s1 = inlined_call_operand.hbm [shape: f32[2,10], index: 1, kind: input, shape index: {}]   ;;  %s6313_s2 = inlined_call_operand.hbm [shape: f32[10,128], index: 2, kind: input, shape index: {}]   ;;  %s6314_s3 = inlined_call_operand.vmem [shape: f32[1,128], index: 3, kind: input, shape index: {}]   ;;  %s6315_s4 = inlined_call_operand.hbm [shape: f32[128,384], index: 4, kind: input, shape index: {}]   ;;  %s6316_s5 = inlined_call_operand.vmem [shape: f32[1,128], index: 5, kind: input, shape index: {}]   ;;  %s6317_s6 = inlined_call_operand.hbm [shape: f32[256,512], index: 6, kind: input, shape index: {}]   ;;  %s6318_s7 = inlined_call_operand.vmem [shape: f32[1,512], index: 7, kind: input, shape index: {}]   ;;  %s6319_s8 = inlined_call_operand.hbm [shape: f32[128,128], index: 8, kind: input, shape index: {}]   ;;  %s6320_s9 = inlined_call_operand.vmem [shape: f32[1,128], index: 9, kind: input, shape index: {}]   ;;  %s6321_s10 = inlined_call_operand.vmem [shape: f32[2,5,128], index: 10, kind: output, shape index: {}]  }
   0x1   :  { %16 = vsyncpa [#allocation5], 0 }
   0x2   :  { %17 = vsyncpa [#allocation8], 0 }
   0x3   :  { %18 = vsyncpa [#allocation11], 0  ;;  %s4209_s13 = smov [#allocation4]  }
   0x4   :  { %s37_s14 = sshll.u32 %s4209_s13, 4  ;;  %s38_s14 = int_to_ptr.vmem [resolvable:$true] %s37_s14 }
   0x5   :  { %s4089_s15 = scalar_lea.vmem %s38_s14, 32  ;;  %p4094_p1 = scmp.lt.s32.totalorder %s38_s14, %s38_s14 }
   0x6   :  { %p4090_p0 = scmp.ne.s32.totalorder %s38_s14, %s4089_s15  ;;  %p4095_p2 = scmp.lt.s32.totalorder %s4089_s15, %s4089_s15 }
   0x8   :  { %p4096_p3 = por %p4095_p2, %p4094_p1 }
   0xa   :  { %p4097_p4 = pnand %p4096_p3, %p4090_p0 }
   0xc   :  { %4100 = shalt.err (!%p4097_p4)
}
   0xd   :  { %40 = dma.hbm_to_vmem [thread:$0]  %s6312_s1, 32, %s38_s14, [#allocation5]  }
   0xe   :  { %s4210_s18 = smov [#allocation7]   ;;  %s4211_s20 = smov [#allocation2]  }
   0xf   :  { %s60_s19 = sshll.u32 %s4210_s18, 4  ;;  %s24_s21 = sshll.u32 %s4211_s20, 4  ;;  %s61_s19 = int_to_ptr.vmem [resolvable:$true] %s60_s19  ;;  %s25_s21 = int_to_ptr.vmem [resolvable:$true] %s24_s21 }
  0x10   :  { %s4109_s22 = scalar_lea.vmem %s61_s19, 6144  ;;  %p4114_p6 = scmp.lt.s32.totalorder %s61_s19, %s61_s19 }
  0x11   :  { %p4110_p5 = scmp.ne.s32.totalorder %s61_s19, %s4109_s22  ;;  %p4115_p7 = scmp.lt.s32.totalorder %s4109_s22, %s4109_s22 }
  0x13   :  { %p4116_p8 = por %p4115_p7, %p4114_p6 }
  0x15   :  { %p4117_p9 = pnand %p4116_p8, %p4110_p5 }
  0x17   :  { %4120 = shalt.err (!%p4117_p9)
}
  0x18   :  { %s4212_s23 = smov 384   ;;  %s4213_s24 = smov 24  }
  0x19   :  { %66 = dma.hbm_to_vmem [thread:$0]  %s6315_s4, 6144, %s61_s19, [#allocation8], %s4212_s23, %s4212_s23, %s4213_s24  }
  0x1a   :  { %s4129_s1 = scalar_lea.vmem %s25_s21, 768  ;;  %p4134_p11 = scmp.lt.s32.totalorder %s25_s21, %s25_s21 }
  0x1b   :  { %p4130_p10 = scmp.ne.s32.totalorder %s25_s21, %s4129_s1  ;;  %p4135_p12 = scmp.lt.s32.totalorder %s4129_s1, %s4129_s1 }
  0x1d   :  { %p4136_p13 = por %p4135_p12, %p4134_p11 }
  0x1f   :  { %p4137_p0 = pnand %p4136_p13, %p4130_p10 }
  0x21   :  { %4140 = shalt.err (!%p4137_p0)
}
  0x22   :  { %30 = dma.hbm_to_vmem [thread:$0]  %s6311_s0, 768, %s25_s21, [#allocation3], %s4212_s23, %s4212_s23, %s4213_s24  }
  0x23   :  { %s4214_s29 = smov [#allocation6]  }
  0x24   :  { %s46_s30 = sshll.u32 %s4214_s29, 4  ;;  %s47_s30 = int_to_ptr.vmem [resolvable:$true] %s46_s30 }
  0x25   :  { %s4149_s11 = scalar_lea.vmem %s47_s30, 256  ;;  %p4154_p2 = scmp.lt.s32.totalorder %s47_s30, %s47_s30 }
  0x26   :  { %p4150_p1 = scmp.ne.s32.totalorder %s47_s30, %s4149_s11  ;;  %p4155_p3 = scmp.lt.s32.totalorder %s4149_s11, %s4149_s11 }
  0x28   :  { %p4156_p4 = por %p4155_p3, %p4154_p2 }
  0x2a   :  { %p4157_p5 = pnand %p4156_p4, %p4150_p1 }
  0x2c   :  { %4160 = shalt.err (!%p4157_p5)
}
  0x2d   :  { %s4215_s4 = smov 128   ;;  %s4216_s12 = smov 8  }
  0x2e   :  { %52 = dma.hbm_to_vmem [thread:$0]  %s6313_s2, 256, %s47_s30, [#allocation5], %s4215_s4, %s4215_s4, %s4216_s12  }
  0x2f   :  { %s4217_s15 = smov [#allocation9]  }
  0x30   :  { %s74_s16 = sshll.u32 %s4217_s15, 4  ;;  %s75_s16 = int_to_ptr.vmem [resolvable:$true] %s74_s16 }
  0x31   :  { %s4169_s0 = scalar_lea.vmem %s75_s16, 16384  ;;  %p4174_p7 = scmp.lt.s32.totalorder %s75_s16, %s75_s16 }
  0x32   :  { %p4170_p6 = scmp.ne.s32.totalorder %s75_s16, %s4169_s0  ;;  %p4175_p8 = scmp.lt.s32.totalorder %s4169_s0, %s4169_s0 }
  0x34   :  { %p4176_p9 = por %p4175_p8, %p4174_p7 }
  0x36   :  { %p4177_p10 = pnand %p4176_p9, %p4170_p6 }
  0x38   :  { %4180 = shalt.err (!%p4177_p10)
}
  0x39   :  { %s4218_s17 = smov 512   ;;  %s4219_s18 = smov 32  }
  0x3a   :  { %80 = dma.hbm_to_vmem [thread:$0]  %s6317_s6, 16384, %s75_s16, [#allocation8], %s4218_s17, %s4218_s17, %s4219_s18  }
  0x3b   :  { %s4220_s21 = smov [#allocation10]  }
  0x3c   :  { %s88_s22 = sshll.u32 %s4220_s21, 4  ;;  %s89_s22 = int_to_ptr.vmem [resolvable:$true] %s88_s22 }
  0x3d   :  { %s4189_s2 = scalar_lea.vmem %s89_s22, 2048  ;;  %p4194_p12 = scmp.lt.s32.totalorder %s89_s22, %s89_s22 }
  0x3e   :  { %p4190_p11 = scmp.ne.s32.totalorder %s89_s22, %s4189_s2  ;;  %p4195_p13 = scmp.lt.s32.totalorder %s4189_s2, %s4189_s2 }
  0x40   :  { %p4196_p0 = por %p4195_p13, %p4194_p12 }
  0x42   :  { %p4197_p1 = pnand %p4196_p0, %p4190_p11 }
  0x44   :  { %4200 = shalt.err (!%p4197_p1)
}
  0x45   :  { %94 = dma.hbm_to_vmem [thread:$0]  %s6319_s8, 2048, %s89_s22, [#allocation11], %s4215_s4, %s4215_s4, %s4216_s12  }
  0x46   :  { %4201 = dma.done.wait [#allocation3], 768  }
  0x47   :  { %4202 = vsyncadd [#allocation3], 4294966528 }
  0x48   :  { %4203 = dma.done.wait [#allocation5], 288  }
  0x49   :  { %4204 = vsyncadd [#allocation5], 4294967008 }
  0x4a   :  { %4205 = dma.done.wait [#allocation8], 22528  }
  0x4b   :  { %4206 = vsyncadd [#allocation8], 4294944768 }
  0x4c   :  { %4207 = dma.done.wait [#allocation11], 2048  }
  0x4d   :  { %4208 = vsyncadd [#allocation11], 4294965248  ;;  %v6322_v0 = vmov 0.0   ;;  %vm4222_vm0 = vmmov 0   ;;  %vm330_vm1 = vcmask 1041408   ;;  %v317_v2 = vld [vmem:[#allocation6] sm:$0xff] }
  0x4e   :  { %3315 = vmatprep.subr.mxu0 %v6322_v0  ;;  %3319 = vmatprep.mubr.msk.f32.mxu0 %vm4222_vm0, %v6322_v0  ;;  %v318_v1 = vld [vmem:[#allocation6 + $0x8] sm:$0x3]  ;;  %v316_v3 = vld [vmem:[#allocation4] sm:$0x3]  ;;  %vm326_vm2 = vcmask 80896   ;;  %v4303_v4 = vld [vmem:[#allocation7 + $0x170] sm:$0xff] }
  0x4f   :  { %469 = vmatprep.mubr.f32.mxu1 %v6322_v0  ;;  %3316 = vmatpush3.msk.msra.mxu0 %vm330_vm1, %v318_v1  ;;  %6531 = vst [vmem:[#allocation16_spill] sm:$0xff] %v4303_v4  ;;  %v4305_v5 = vld [vmem:[#allocation7 + $0x168] sm:$0xff]  ;;  %v4309_v6 = vld [vmem:[#allocation7 + $0x178] sm:$0xff]  ;;  %v4314_v8 = vld [vmem:[#allocation7 + $0x150] sm:$0xff] }
  0x50   :  { %3317 = vmatprep.subr.mxu0 %v6322_v0  ;;  %405 = vmatprep.subr.mxu1 %v4303_v4  ;;  %v4311_v7 = vld [vmem:[#allocation7 + $0x158] sm:$0xff]  ;;  %v4317_v9 = vld [vmem:[#allocation7 + $0x160] sm:$0xff]  ;;  %v4327_v12 = vld [vmem:[#allocation7 + $0x148] sm:$0xff] }
  0x51   :  { %3318 = vmatpush3.msra.mxu0 %v317_v2  ;;  %406 = vmatpush1.msra.mxu1 %v4305_v5  ;;  %v4319_v10 = vld [vmem:[#allocation7 + $0x140] sm:$0xff]  ;;  %v4323_v11 = vld [vmem:[#allocation7 + $0x138] sm:$0xff]  ;;  %v4329_v13 = vld [vmem:[#allocation7 + $0x128] sm:$0xff] }
  0x52   :  { %3320 = vmatmul.mubr.msk.f32.vlgmr.msra.gmra.mxu0 %vm326_vm2, %v316_v3  ;;  %3322 = vmatprep.subr.mxu0 %v6322_v0  ;;  %v4333_v14 = vld [vmem:[#allocation7 + $0x120] sm:$0xff]  ;;  %v4337_v15 = vld [vmem:[#allocation7 + $0x130] sm:$0xff]  ;;  %v4343_v17 = vld [vmem:[#allocation7 + $0x108] sm:$0xff] }
  0x53   :  { %3323 = vmatpush3.msra.mxu0 %v4309_v6  ;;  %407 = vmatprep.subr.mxu1 %v4311_v7  ;;  %v4339_v16 = vld [vmem:[#allocation7 + $0x110] sm:$0xff]  ;;  %v4347_v18 = vld [vmem:[#allocation7 + $0x118] sm:$0xff]  ;;  %v4357_v21 = vld [vmem:[#allocation7 + $0x100] sm:$0xff] }
  0x54   :  { %3324 = vmatprep.subr.mxu0 %v6322_v0  ;;  %408 = vmatpush1.msra.mxu1 %v4314_v8  ;;  %v4349_v19 = vld [vmem:[#allocation7 + $0xf8] sm:$0xff]  ;;  %v4353_v20 = vld [vmem:[#allocation7 + $0xf0] sm:$0xff]  ;;  %v4359_v22 = vld [vmem:[#allocation7 + $0xe0] sm:$0xff] }
  0x55   :  { %3325 = vmatpush3.msra.mxu0 %v4317_v9  ;;  %409 = vmatprep.subr.mxu1 %v4319_v10  ;;  %v4363_v23 = vld [vmem:[#allocation7 + $0xd8] sm:$0xff]  ;;  %v4367_v24 = vld [vmem:[#allocation7 + $0xe8] sm:$0xff]  ;;  %v4380_v26 = vld [vmem:[#allocation7 + $0xc0] sm:$0xff] }
  0x56   :  { %3326 = vmatprep.subr.mxu0 %v6322_v0  ;;  %410 = vmatpush1.msra.mxu1 %v4323_v11  ;;  %v4369_v25 = vld [vmem:[#allocation7 + $0xc8] sm:$0xff]  ;;  %v4382_v27 = vld [vmem:[#allocation7 + $0xd0] sm:$0xff]  ;;  %v4392_v30 = vld [vmem:[#allocation7 + $0xb8] sm:$0xff] }
  0x57   :  { %3327 = vmatpush3.msra.mxu0 %v4327_v12  ;;  %411 = vmatprep.subr.mxu1 %v4329_v13  ;;  %v4386_v28 = vld [vmem:[#allocation7 + $0xb0] sm:$0xff]  ;;  %v4390_v29 = vld [vmem:[#allocation7 + $0xa8] sm:$0xff]  ;;  %v4396_v31 = vld [vmem:[#allocation7 + $0x98] sm:$0xff] }
  0x58   :  { %3328 = vmatprep.subr.mxu0 %v6322_v0  ;;  %412 = vmatpush1.msra.mxu1 %v4333_v14  ;;  %v4400_v32 = vld [vmem:[#allocation7 + $0x90] sm:$0xff]  ;;  %v4402_v33 = vld [vmem:[#allocation7 + $0xa0] sm:$0xff]  ;;  %v4408_v35 = vld [vmem:[#allocation7 + $0x78] sm:$0xff] }
  0x59   :  { %3329 = vmatpush3.msra.mxu0 %v4337_v15  ;;  %413 = vmatprep.subr.mxu1 %v4339_v16  ;;  %v4404_v34 = vld [vmem:[#allocation7 + $0x80] sm:$0xff]  ;;  %v4410_v36 = vld [vmem:[#allocation7 + $0x88] sm:$0xff]  ;;  %v4418_v39 = vld [vmem:[#allocation7 + $0x70] sm:$0xff] }
  0x5a   :  { %3330 = vmatprep.subr.mxu0 %v6322_v0  ;;  %414 = vmatpush1.msra.mxu1 %v4343_v17  ;;  %v4412_v37 = vld [vmem:[#allocation7 + $0x68] sm:$0xff]  ;;  %v4416_v38 = vld [vmem:[#allocation7 + $0x60] sm:$0xff]  ;;  %v4422_v40 = vld [vmem:[#allocation7 + $0x50] sm:$0xff] }
  0x5b   :  { %3331 = vmatpush3.msra.mxu0 %v4347_v18  ;;  %415 = vmatprep.subr.mxu1 %v4349_v19  ;;  %v4426_v41 = vld [vmem:[#allocation7 + $0x48] sm:$0xff]  ;;  %v4428_v42 = vld [vmem:[#allocation7 + $0x58] sm:$0xff]  ;;  %v4436_v44 = vld [vmem:[#allocation7 + $0x30] sm:$0xff] }
  0x5c   :  { %3332 = vmatprep.subr.mxu0 %v6322_v0  ;;  %416 = vmatpush1.msra.mxu1 %v4353_v20  ;;  %v4432_v43 = vld [vmem:[#allocation7 + $0x38] sm:$0xff]  ;;  %v4438_v45 = vld [vmem:[#allocation7 + $0x40] sm:$0xff]  ;;  %v4448_v48 = vld [vmem:[#allocation7 + $0x28] sm:$0xff] }
  0x5d   :  { %3333 = vmatpush3.msra.mxu0 %v4357_v21  ;;  %417 = vmatprep.subr.mxu1 %v4359_v22  ;;  %v4442_v46 = vld [vmem:[#allocation7 + $0x20] sm:$0xff]  ;;  %v4446_v47 = vld [vmem:[#allocation7 + $0x18] sm:$0xff]  ;;  %6534 = vst [vmem:[#allocation19_spill] sm:$0xff] %v4448_v48  ;;  %v4452_v49 = vld [vmem:[#allocation7 + $0x8] sm:$0xff] }
  0x5e   :  { %3334 = vmatprep.subr.mxu0 %v6322_v0  ;;  %418 = vmatpush1.msra.mxu1 %v4363_v23  ;;  %6532 = vst [vmem:[#allocation17_spill] sm:$0xff] %v4442_v46  ;;  %6533 = vst [vmem:[#allocation18_spill] sm:$0xff] %v4446_v47  ;;  %v4456_v50 = vld [vmem:[#allocation7] sm:$0xff]  ;;  %v4458_v51 = vld [vmem:[#allocation7 + $0x10] sm:$0xff] }
  0x5f   :  { %3335 = vmatpush3.msra.mxu0 %v4367_v24  ;;  %419 = vmatprep.subr.mxu1 %v4369_v25  ;;  %6535 = vst [vmem:[#allocation20_spill] sm:$0xff] %v4452_v49  ;;  %6536 = vst [vmem:[#allocation21_spill] sm:$0xff] %v4456_v50  ;;  %v3064_v52 = vld [vmem:[%s6314_s3] ss:$0 sm:$0xff]  ;;  %v4545_v63 = vld [vmem:[#allocation2 + $0x8] sm:$0xff] }
  0x60   :  { %3336 = vmatprep.subr.mxu0 %v6322_v0  ;;  %3354 = vmatprep.mubr.msk.f32.mxu0 %vm4222_vm0, %v6322_v0  ;;  %6537 = vst [vmem:[#allocation22_spill] sm:$0xff] %v4458_v51  ;;  %v4542_v57 = vld [vmem:[#allocation2] sm:$0xff]  ;;  %6539 = vst [vmem:[#allocation24_spill] sm:$0xff] %v4545_v63 }
  0x61   :  { %420 = vmatpush1.msra.mxu1 %v4380_v26  ;;  %3337 = vmatpush3.msra.mxu0 %v4382_v27  ;;  %6538 = vst [vmem:[#allocation23_spill] sm:$0xff] %v4542_v57 }
  0x62   :  { %421 = vmatprep.subr.mxu1 %v4386_v28  ;;  %3338 = vmatprep.subr.mxu0 %v6322_v0 }
  0x63   :  { %422 = vmatpush1.msra.mxu1 %v4390_v29  ;;  %3339 = vmatpush3.msra.mxu0 %v4392_v30 }
  0x64   :  { %423 = vmatprep.subr.mxu1 %v4396_v31  ;;  %3340 = vmatprep.subr.mxu0 %v6322_v0 }
  0x65   :  { %424 = vmatpush1.msra.mxu1 %v4400_v32  ;;  %3341 = vmatpush3.msra.mxu0 %v4402_v33 }
  0x66   :  { %425 = vmatprep.subr.mxu1 %v4404_v34  ;;  %3342 = vmatprep.subr.mxu0 %v6322_v0 }
  0x67   :  { %426 = vmatpush1.msra.mxu1 %v4408_v35  ;;  %3343 = vmatpush3.msra.mxu0 %v4410_v36 }
  0x68   :  { %427 = vmatprep.subr.mxu1 %v4412_v37  ;;  %3344 = vmatprep.subr.mxu0 %v6322_v0 }
  0x69   :  { %428 = vmatpush1.msra.mxu1 %v4416_v38  ;;  %3345 = vmatpush3.msra.mxu0 %v4418_v39 }
  0x6a   :  { %429 = vmatprep.subr.mxu1 %v4422_v40  ;;  %3346 = vmatprep.subr.mxu0 %v6322_v0 }
  0x6b   :  { %430 = vmatpush1.msra.mxu1 %v4426_v41  ;;  %3347 = vmatpush3.msra.mxu0 %v4428_v42 }
  0x6c   :  { %431 = vmatprep.subr.mxu1 %v4432_v43  ;;  %3348 = vmatprep.subr.mxu0 %v6322_v0 }
  0x6d   :  { %432 = vmatpush1.msra.mxu1 %v4436_v44  ;;  %3349 = vmatpush3.msra.mxu0 %v4438_v45 }
  0x6e   :  { %433 = vmatprep.subr.mxu1 %v4442_v46  ;;  %3350 = vmatprep.subr.mxu0 %v6322_v0 }
  0x6f   :  { %434 = vmatpush1.msra.mxu1 %v4446_v47  ;;  %3351 = vmatpush3.msra.mxu0 %v4448_v48 }
  0x70   :  { %435 = vmatprep.subr.mxu1 %v4452_v49  ;;  %3352 = vmatprep.subr.mxu0 %v6322_v0 }
  0x71   :  { %436 = vmatpush1.msra.mxu1 %v4456_v50  ;;  %3353 = vmatpush3.msra.mxu0 %v4458_v51 }
  0x72   :  { %570 = vmatprep.subr.mxu1 %v4303_v4  ;;  %3357 = vmatprep.subr.mxu0 %v6322_v0 }
 0x112   :  { %v400_v53 = vpop.f32.mrf.mxu0 }
 0x113   :  { %v401_v54 = vadd.f32 %v3064_v52, %v400_v53  ;;  %v4551_v53 = vld [vmem:[%s6316_s5] ss:$0 sm:$0xff] }
 0x114   :  { %v3321_v55 = vpop.f32.mrf.mxu0 }
 0x115   :  { %3793 = vtanh.f32 %v401_v54 }
 0x122   :  { %v4471_v56 = vpop.eup %3793 }
 0x123   :  { %470 = vmatmul.mubr.f32.vlgmr.msra.gmra.mxu1 %v4471_v56  ;;  %3355 = vmatmul.mubr.f32.vlgmr.msra.gmra.mxu0 %v4471_v56 }
 0x124   :  { %571 = vmatpush1.msra.mxu1 %v4305_v5  ;;  %3358 = vmatpush3.msra.mxu0 %v4309_v6 }
 0x125   :  { %572 = vmatprep.subr.mxu1 %v4311_v7  ;;  %3359 = vmatprep.subr.mxu0 %v6322_v0 }
 0x126   :  { %573 = vmatpush1.msra.mxu1 %v4314_v8  ;;  %3360 = vmatpush3.msra.mxu0 %v4317_v9 }
 0x127   :  { %574 = vmatprep.subr.mxu1 %v4319_v10  ;;  %3361 = vmatprep.subr.mxu0 %v6322_v0 }
 0x128   :  { %575 = vmatpush1.msra.mxu1 %v4323_v11  ;;  %3362 = vmatpush3.msra.mxu0 %v4327_v12 }
 0x129   :  { %576 = vmatprep.subr.mxu1 %v4329_v13  ;;  %3363 = vmatprep.subr.mxu0 %v6322_v0 }
 0x12a   :  { %577 = vmatpush1.msra.mxu1 %v4333_v14  ;;  %3364 = vmatpush3.msra.mxu0 %v4337_v15 }
 0x12b   :  { %578 = vmatprep.subr.mxu1 %v4339_v16  ;;  %3365 = vmatprep.subr.mxu0 %v6322_v0 }
 0x12c   :  { %579 = vmatpush1.msra.mxu1 %v4343_v17  ;;  %3366 = vmatpush3.msra.mxu0 %v4347_v18 }
 0x12d   :  { %580 = vmatprep.subr.mxu1 %v4349_v19  ;;  %3367 = vmatprep.subr.mxu0 %v6322_v0 }
 0x12e   :  { %581 = vmatpush1.msra.mxu1 %v4353_v20  ;;  %3368 = vmatpush3.msra.mxu0 %v4357_v21 }
 0x12f   :  { %582 = vmatprep.subr.mxu1 %v4359_v22  ;;  %3369 = vmatprep.subr.mxu0 %v6322_v0 }
 0x130   :  { %583 = vmatpush1.msra.mxu1 %v4363_v23  ;;  %3370 = vmatpush3.msra.mxu0 %v4367_v24 }
 0x131   :  { %584 = vmatprep.subr.mxu1 %v4369_v25  ;;  %3371 = vmatprep.subr.mxu0 %v6322_v0 }
 0x132   :  { %585 = vmatpush1.msra.mxu1 %v4380_v26  ;;  %3372 = vmatpush3.msra.mxu0 %v4382_v27 }
 0x133   :  { %586 = vmatprep.subr.mxu1 %v4386_v28  ;;  %3373 = vmatprep.subr.mxu0 %v6322_v0 }
 0x134   :  { %587 = vmatpush1.msra.mxu1 %v4390_v29  ;;  %3374 = vmatpush3.msra.mxu0 %v4392_v30 }
 0x135   :  { %588 = vmatprep.subr.mxu1 %v4396_v31  ;;  %3375 = vmatprep.subr.mxu0 %v6322_v0 }
 0x136   :  { %589 = vmatpush1.msra.mxu1 %v4400_v32  ;;  %3376 = vmatpush3.msra.mxu0 %v4402_v33 }
 0x137   :  { %590 = vmatprep.subr.mxu1 %v4404_v34  ;;  %3377 = vmatprep.subr.mxu0 %v6322_v0 }
 0x138   :  { %591 = vmatpush1.msra.mxu1 %v4408_v35  ;;  %3378 = vmatpush3.msra.mxu0 %v4410_v36 }
 0x139   :  { %592 = vmatprep.subr.mxu1 %v4412_v37  ;;  %3379 = vmatprep.subr.mxu0 %v6322_v0 }
 0x13a   :  { %593 = vmatpush1.msra.mxu1 %v4416_v38  ;;  %3380 = vmatpush3.msra.mxu0 %v4418_v39 }
 0x13b   :  { %594 = vmatprep.subr.mxu1 %v4422_v40  ;;  %3381 = vmatprep.subr.mxu0 %v6322_v0 }
 0x13c   :  { %595 = vmatpush1.msra.mxu1 %v4426_v41  ;;  %3382 = vmatpush3.msra.mxu0 %v4428_v42 }
 0x13d   :  { %596 = vmatprep.subr.mxu1 %v4432_v43  ;;  %3383 = vmatprep.subr.mxu0 %v6322_v0 }
 0x13e   :  { %597 = vmatpush1.msra.mxu1 %v4436_v44  ;;  %3384 = vmatpush3.msra.mxu0 %v4438_v45 }
 0x13f   :  { %598 = vmatprep.subr.mxu1 %v4442_v46  ;;  %3385 = vmatprep.subr.mxu0 %v6322_v0 }
 0x140   :  { %599 = vmatpush1.msra.mxu1 %v4446_v47  ;;  %3386 = vmatpush3.msra.mxu0 %v4448_v48 }
 0x141   :  { %600 = vmatprep.subr.mxu1 %v4452_v49  ;;  %3387 = vmatprep.subr.mxu0 %v6322_v0 }
 0x142   :  { %601 = vmatpush1.msra.mxu1 %v4456_v50  ;;  %634 = vmatprep.mubr.f32.mxu1 %v6322_v0 }
 0x143   :  { %3388 = vmatpush3.msra.mxu0 %v4458_v51  ;;  %3389 = vmatprep.mubr.msk.f32.mxu0 %vm4222_vm0, %v6322_v0 }
 0x144   :  { %744 = vmatprep.subr.mxu1 %v4303_v4  ;;  %3392 = vmatprep.subr.mxu0 %v6322_v0 }
 0x1e3   :  { %v471_v58 = vpop.f32.mrf.mxu1  ;;  %v542_v59 = vpop.f32.mrf.mxu0 }
 0x1e4   :  { %v546_v60 = vadd.f32 %v471_v58, %v4542_v57  ;;  %v554_v55 = vadd.f32 %v4551_v53, %v542_v59 }
 0x1e5   :  { %v3356_v61 = vpop.f32.mrf.mxu0  ;;  %v473_v1 = vpop.f32.mrf.mxu1 }
 0x1e6   :  { %v555_v62 = vmul.f32 0.5, %v546_v60  ;;  %v547_v2 = vadd.f32 %v473_v1, %v4545_v63  ;;  %v4554_v61 = vld [vmem:[#allocation2 + $0x10] sm:$0xff] }
 0x1e8   :  { %3795 = vtanh.f32 %v555_v62  ;;  %v559_v3 = vmul.f32 0.5, %v547_v2 }
 0x1ea   :  { %3797 = vtanh.f32 %v559_v3 }
 0x1f5   :  { %v3796_v52 = vpop.eup %3795 }
 0x1f6   :  { %v557_v54 = vmul.f32 0.5, %v3796_v52 }
 0x1f7   :  { %v3798_v62 = vpop.eup %3797 }
 0x1f8   :  { %v558_v58 = vadd.f32 0.5, %v557_v54  ;;  %v561_v1 = vmul.f32 0.5, %v3798_v62 }
 0x1fa   :  { %v563_v60 = vmul.f32 %v558_v58, %v554_v55  ;;  %v562_v2 = vadd.f32 0.5, %v561_v1  ;;  %v6543_v55 = vld [vmem:[#allocation23_spill] sm:$0xff]  ;;  %v6544_v1 = vld [vmem:[#allocation24_spill] sm:$0xff] }
 0x1fc   :  { %v564_v0 = vadd.f32 %v563_v60, %v4554_v61  ;;  %v566_v3 = vsub.f32 1.0, %v562_v2  ;;  %v568_v57 = vmul.f32 %v4471_v56, %v562_v2  ;;  %v6542_v56 = vld [vmem:[#allocation16_spill] sm:$0xff] }
 0x1fe   :  { %3799 = vtanh.f32 %v564_v0  ;;  %v6540_v0 = vmov 0.0  }
 0x20b   :  { %v3800_v63 = vpop.eup %3799 }
 0x20c   :  { %v567_v4 = vmul.f32 %v3800_v63, %v566_v3 }
 0x20e   :  { %v4558_v51 = vadd.f32 %v568_v57, %v567_v4  ;;  %v6541_v4 = vld [vmem:[#allocation22_spill] sm:$0xff] }
 0x210   :  { %635 = vmatmul.mubr.f32.vlgmr.msra.gmra.mxu1 %v4558_v51  ;;  %3390 = vmatmul.mubr.f32.vlgmr.msra.gmra.mxu0 %v4558_v51 }
 0x211   :  { %745 = vmatpush1.msra.mxu1 %v4305_v5  ;;  %3393 = vmatpush3.msra.mxu0 %v4309_v6 }
 0x212   :  { %746 = vmatprep.subr.mxu1 %v4311_v7  ;;  %3394 = vmatprep.subr.mxu0 %v6540_v0 }
 0x213   :  { %747 = vmatpush1.msra.mxu1 %v4314_v8  ;;  %3395 = vmatpush3.msra.mxu0 %v4317_v9 }
 0x214   :  { %748 = vmatprep.subr.mxu1 %v4319_v10  ;;  %3396 = vmatprep.subr.mxu0 %v6540_v0 }
 0x215   :  { %749 = vmatpush1.msra.mxu1 %v4323_v11  ;;  %3397 = vmatpush3.msra.mxu0 %v4327_v12 }
 0x216   :  { %750 = vmatprep.subr.mxu1 %v4329_v13  ;;  %3398 = vmatprep.subr.mxu0 %v6540_v0 }
 0x217   :  { %751 = vmatpush1.msra.mxu1 %v4333_v14  ;;  %3399 = vmatpush3.msra.mxu0 %v4337_v15 }
 0x218   :  { %752 = vmatprep.subr.mxu1 %v4339_v16  ;;  %3400 = vmatprep.subr.mxu0 %v6540_v0 }
 0x219   :  { %753 = vmatpush1.msra.mxu1 %v4343_v17  ;;  %3401 = vmatpush3.msra.mxu0 %v4347_v18 }
 0x21a   :  { %754 = vmatprep.subr.mxu1 %v4349_v19  ;;  %3402 = vmatprep.subr.mxu0 %v6540_v0 }
 0x21b   :  { %755 = vmatpush1.msra.mxu1 %v4353_v20  ;;  %3403 = vmatpush3.msra.mxu0 %v4357_v21 }
 0x21c   :  { %756 = vmatprep.subr.mxu1 %v4359_v22  ;;  %3404 = vmatprep.subr.mxu0 %v6540_v0 }
 0x21d   :  { %757 = vmatpush1.msra.mxu1 %v4363_v23  ;;  %3405 = vmatpush3.msra.mxu0 %v4367_v24 }
 0x21e   :  { %758 = vmatprep.subr.mxu1 %v4369_v25  ;;  %3406 = vmatprep.subr.mxu0 %v6540_v0 }
 0x21f   :  { %759 = vmatpush1.msra.mxu1 %v4380_v26  ;;  %3407 = vmatpush3.msra.mxu0 %v4382_v27 }
 0x220   :  { %760 = vmatprep.subr.mxu1 %v4386_v28  ;;  %3408 = vmatprep.subr.mxu0 %v6540_v0 }
 0x221   :  { %761 = vmatpush1.msra.mxu1 %v4390_v29  ;;  %3409 = vmatpush3.msra.mxu0 %v4392_v30 }
 0x222   :  { %762 = vmatprep.subr.mxu1 %v4396_v31  ;;  %3410 = vmatprep.subr.mxu0 %v6540_v0 }
 0x223   :  { %763 = vmatpush1.msra.mxu1 %v4400_v32  ;;  %3411 = vmatpush3.msra.mxu0 %v4402_v33 }
 0x224   :  { %764 = vmatprep.subr.mxu1 %v4404_v34  ;;  %3412 = vmatprep.subr.mxu0 %v6540_v0 }
 0x225   :  { %765 = vmatpush1.msra.mxu1 %v4408_v35  ;;  %3413 = vmatpush3.msra.mxu0 %v4410_v36 }
 0x226   :  { %766 = vmatprep.subr.mxu1 %v4412_v37  ;;  %3414 = vmatprep.subr.mxu0 %v6540_v0 }
 0x227   :  { %767 = vmatpush1.msra.mxu1 %v4416_v38  ;;  %3415 = vmatpush3.msra.mxu0 %v4418_v39 }
 0x228   :  { %768 = vmatprep.subr.mxu1 %v4422_v40  ;;  %3416 = vmatprep.subr.mxu0 %v6540_v0 }
 0x229   :  { %769 = vmatpush1.msra.mxu1 %v4426_v41  ;;  %3417 = vmatpush3.msra.mxu0 %v4428_v42 }
 0x22a   :  { %770 = vmatprep.subr.mxu1 %v4432_v43  ;;  %3418 = vmatprep.subr.mxu0 %v6540_v0 }
 0x22b   :  { %771 = vmatpush1.msra.mxu1 %v4436_v44  ;;  %3419 = vmatpush3.msra.mxu0 %v4438_v45 }
 0x22c   :  { %772 = vmatprep.subr.mxu1 %v4442_v46  ;;  %3420 = vmatprep.subr.mxu0 %v6540_v0 }
 0x22d   :  { %773 = vmatpush1.msra.mxu1 %v4446_v47  ;;  %3421 = vmatpush3.msra.mxu0 %v4448_v48 }
 0x22e   :  { %774 = vmatprep.subr.mxu1 %v4452_v49  ;;  %3422 = vmatprep.subr.mxu0 %v6540_v0 }
 0x22f   :  { %775 = vmatpush1.msra.mxu1 %v4456_v50  ;;  %808 = vmatprep.mubr.f32.mxu1 %v6540_v0 }
 0x230   :  { %3423 = vmatpush3.msra.mxu0 %v6541_v4  ;;  %3424 = vmatprep.mubr.msk.f32.mxu0 %vm4222_vm0, %v6540_v0 }
 0x231   :  { %917 = vmatprep.subr.mxu1 %v6542_v56  ;;  %3427 = vmatprep.subr.mxu0 %v6540_v0 }
 0x2d0   :  { %v636_v57 = vpop.f32.mrf.mxu1  ;;  %v707_v59 = vpop.f32.mrf.mxu0 }
 0x2d1   :  { %v712_v63 = vrot.slane %v636_v57, 6  ;;  %v719_v4 = vadd.f32 %v4551_v53, %v707_v59 }
 0x2d2   :  { %v638_v52 = vpop.f32.mrf.mxu1  ;;  %v3391_v54 = vpop.f32.mrf.mxu0 }
 0x2d3   :  { %v714_v58 = vadd.f32 %v712_v63, %v6543_v55  ;;  %v716_v62 = vrot.slane %v638_v52, 6  ;;  %v729_v48 = vrot.slane %v719_v4, 6  ;;  %v737_v52 = vrot.slane %v4558_v51, 6  ;;  %v6550_v51 = vld [vmem:[#allocation22_spill] sm:$0xff]  ;;  %v6551_v4 = vld [vmem:[#allocation16_spill] sm:$0xff] }
 0x2d5   :  { %v720_v60 = vmul.f32 0.5, %v714_v58  ;;  %v718_v2 = vadd.f32 %v716_v62, %v6544_v1 }
 0x2d7   :  { %3801 = vtanh.f32 %v720_v60  ;;  %v724_v3 = vmul.f32 0.5, %v718_v2 }
 0x2d9   :  { %3803 = vtanh.f32 %v724_v3 }
 0x2e4   :  { %v3802_v50 = vpop.eup %3801 }
 0x2e5   :  { %v722_v56 = vmul.f32 0.5, %v3802_v50  ;;  %v6549_v50 = vld [vmem:[#allocation21_spill] sm:$0xff] }
 0x2e6   :  { %v3804_v54 = vpop.eup %3803 }
 0x2e7   :  { %v723_v49 = vadd.f32 0.5, %v722_v56  ;;  %v726_v46 = vmul.f32 0.5, %v3804_v54 }
 0x2e9   :  { %v731_v47 = vmul.f32 %v729_v48, %v723_v49  ;;  %v727_v63 = vadd.f32 0.5, %v726_v46  ;;  %v6545_v46 = vld [vmem:[#allocation17_spill] sm:$0xff]  ;;  %v6547_v48 = vld [vmem:[#allocation19_spill] sm:$0xff]  ;;  %v6548_v49 = vld [vmem:[#allocation20_spill] sm:$0xff] }
 0x2eb   :  { %v732_v57 = vadd.f32 %v731_v47, %v4554_v61  ;;  %v734_v58 = vsub.f32 1.0, %v727_v63  ;;  %v739_v62 = vmul.f32 %v737_v52, %v727_v63  ;;  %v6546_v47 = vld [vmem:[#allocation18_spill] sm:$0xff] }
 0x2ed   :  { %3805 = vtanh.f32 %v732_v57 }
 0x2fa   :  { %v3806_v60 = vpop.eup %3805 }
 0x2fb   :  { %v735_v2 = vmul.f32 %v3806_v60, %v734_v58 }
 0x2fd   :  { %v4634_v3 = vadd.f32 %v739_v62, %v735_v2 }
 0x2ff   :  { %v742_v59 = vrot.slane %v4634_v3, 2 }
 0x301   :  { %809 = vmatmul.mubr.f32.vlgmr.msra.gmra.mxu1 %v742_v59  ;;  %3425 = vmatmul.mubr.f32.vlgmr.msra.gmra.mxu0 %v742_v59 }
 0x302   :  { %918 = vmatpush1.msra.mxu1 %v4305_v5  ;;  %3428 = vmatpush3.msra.mxu0 %v4309_v6 }
 0x303   :  { %919 = vmatprep.subr.mxu1 %v4311_v7  ;;  %3429 = vmatprep.subr.mxu0 %v6540_v0 }
 0x304   :  { %920 = vmatpush1.msra.mxu1 %v4314_v8  ;;  %3430 = vmatpush3.msra.mxu0 %v4317_v9 }
 0x305   :  { %921 = vmatprep.subr.mxu1 %v4319_v10  ;;  %3431 = vmatprep.subr.mxu0 %v6540_v0 }
 0x306   :  { %922 = vmatpush1.msra.mxu1 %v4323_v11  ;;  %3432 = vmatpush3.msra.mxu0 %v4327_v12 }
 0x307   :  { %923 = vmatprep.subr.mxu1 %v4329_v13  ;;  %3433 = vmatprep.subr.mxu0 %v6540_v0 }
 0x308   :  { %924 = vmatpush1.msra.mxu1 %v4333_v14  ;;  %3434 = vmatpush3.msra.mxu0 %v4337_v15 }
 0x309   :  { %925 = vmatprep.subr.mxu1 %v4339_v16  ;;  %3435 = vmatprep.subr.mxu0 %v6540_v0 }
 0x30a   :  { %926 = vmatpush1.msra.mxu1 %v4343_v17  ;;  %3436 = vmatpush3.msra.mxu0 %v4347_v18 }
 0x30b   :  { %927 = vmatprep.subr.mxu1 %v4349_v19  ;;  %3437 = vmatprep.subr.mxu0 %v6540_v0 }
 0x30c   :  { %928 = vmatpush1.msra.mxu1 %v4353_v20  ;;  %3438 = vmatpush3.msra.mxu0 %v4357_v21 }
 0x30d   :  { %929 = vmatprep.subr.mxu1 %v4359_v22  ;;  %3439 = vmatprep.subr.mxu0 %v6540_v0 }
 0x30e   :  { %930 = vmatpush1.msra.mxu1 %v4363_v23  ;;  %3440 = vmatpush3.msra.mxu0 %v4367_v24 }
 0x30f   :  { %931 = vmatprep.subr.mxu1 %v4369_v25  ;;  %3441 = vmatprep.subr.mxu0 %v6540_v0 }
 0x310   :  { %932 = vmatpush1.msra.mxu1 %v4380_v26  ;;  %3442 = vmatpush3.msra.mxu0 %v4382_v27 }
 0x311   :  { %933 = vmatprep.subr.mxu1 %v4386_v28  ;;  %3443 = vmatprep.subr.mxu0 %v6540_v0 }
 0x312   :  { %934 = vmatpush1.msra.mxu1 %v4390_v29  ;;  %3444 = vmatpush3.msra.mxu0 %v4392_v30 }
 0x313   :  { %935 = vmatprep.subr.mxu1 %v4396_v31  ;;  %3445 = vmatprep.subr.mxu0 %v6540_v0 }
 0x314   :  { %936 = vmatpush1.msra.mxu1 %v4400_v32  ;;  %3446 = vmatpush3.msra.mxu0 %v4402_v33 }
 0x315   :  { %937 = vmatprep.subr.mxu1 %v4404_v34  ;;  %3447 = vmatprep.subr.mxu0 %v6540_v0 }
 0x316   :  { %938 = vmatpush1.msra.mxu1 %v4408_v35  ;;  %3448 = vmatpush3.msra.mxu0 %v4410_v36 }
 0x317   :  { %939 = vmatprep.subr.mxu1 %v4412_v37  ;;  %3449 = vmatprep.subr.mxu0 %v6540_v0 }
 0x318   :  { %940 = vmatpush1.msra.mxu1 %v4416_v38  ;;  %3450 = vmatpush3.msra.mxu0 %v4418_v39 }
 0x319   :  { %941 = vmatprep.subr.mxu1 %v4422_v40  ;;  %3451 = vmatprep.subr.mxu0 %v6540_v0 }
 0x31a   :  { %942 = vmatpush1.msra.mxu1 %v4426_v41  ;;  %3452 = vmatpush3.msra.mxu0 %v4428_v42 }
 0x31b   :  { %943 = vmatprep.subr.mxu1 %v4432_v43  ;;  %3453 = vmatprep.subr.mxu0 %v6540_v0 }
 0x31c   :  { %944 = vmatpush1.msra.mxu1 %v4436_v44  ;;  %3454 = vmatpush3.msra.mxu0 %v4438_v45 }
 0x31d   :  { %945 = vmatprep.subr.mxu1 %v6545_v46  ;;  %3455 = vmatprep.subr.mxu0 %v6540_v0 }
 0x31e   :  { %946 = vmatpush1.msra.mxu1 %v6546_v47  ;;  %3456 = vmatpush3.msra.mxu0 %v6547_v48 }
 0x31f   :  { %947 = vmatprep.subr.mxu1 %v6548_v49  ;;  %3457 = vmatprep.subr.mxu0 %v6540_v0 }
 0x320   :  { %948 = vmatpush1.msra.mxu1 %v6549_v50  ;;  %981 = vmatprep.mubr.f32.mxu1 %v6540_v0 }
 0x321   :  { %3458 = vmatpush3.msra.mxu0 %v6550_v51  ;;  %3459 = vmatprep.mubr.msk.f32.mxu0 %vm4222_vm0, %v6540_v0 }
 0x322   :  { %1090 = vmatprep.subr.mxu1 %v6551_v4  ;;  %3462 = vmatprep.subr.mxu0 %v6540_v0 }
 0x3c1   :  { %v810_v56 = vpop.f32.mrf.mxu1  ;;  %v881_v57 = vpop.f32.mrf.mxu0 }
 0x3c2   :  { %v886_v54 = vrot.slane %v810_v56, 4  ;;  %v893_v51 = vadd.f32 %v4551_v53, %v881_v57 }
 0x3c3   :  { %v812_v63 = vpop.f32.mrf.mxu1  ;;  %v3426_v58 = vpop.f32.mrf.mxu0 }
 0x3c4   :  { %v888_v52 = vadd.f32 %v886_v54, %v6543_v55  ;;  %v890_v62 = vrot.slane %v812_v63, 4  ;;  %v903_v48 = vrot.slane %v893_v51, 4  ;;  %v910_v63 = vrot.slane %v4634_v3, 6  ;;  %v6556_v3 = vld [vmem:[#allocation21_spill] sm:$0xff] }
 0x3c6   :  { %v894_v60 = vmul.f32 0.5, %v888_v52  ;;  %v892_v2 = vadd.f32 %v890_v62, %v6544_v1 }
 0x3c8   :  { %3807 = vtanh.f32 %v894_v60  ;;  %v898_v59 = vmul.f32 0.5, %v892_v2 }
 0x3ca   :  { %3809 = vtanh.f32 %v898_v59 }
 0x3d5   :  { %v3808_v50 = vpop.eup %3807 }
 0x3d6   :  { %v896_v4 = vmul.f32 0.5, %v3808_v50 }
 0x3d7   :  { %v3810_v58 = vpop.eup %3809 }
 0x3d8   :  { %v897_v49 = vadd.f32 0.5, %v896_v4  ;;  %v900_v46 = vmul.f32 0.5, %v3810_v58 }
 0x3da   :  { %v905_v47 = vmul.f32 %v903_v48, %v897_v49  ;;  %v901_v54 = vadd.f32 0.5, %v900_v46  ;;  %v6557_v46 = vld [vmem:[#allocation22_spill] sm:$0xff] }
 0x3dc   :  { %v906_v56 = vadd.f32 %v905_v47, %v4554_v61  ;;  %v908_v52 = vsub.f32 1.0, %v901_v54  ;;  %v912_v62 = vmul.f32 %v910_v63, %v901_v54  ;;  %v6558_v47 = vld [vmem:[#allocation16_spill] sm:$0xff] }
 0x3de   :  { %3811 = vtanh.f32 %v906_v56 }
 0x3eb   :  { %v3812_v60 = vpop.eup %3811 }
 0x3ec   :  { %v909_v2 = vmul.f32 %v3812_v60, %v908_v52 }
 0x3ee   :  { %v4709_v59 = vadd.f32 %v912_v62, %v909_v2 }
 0x3f0   :  { %v915_v57 = vrot.slane %v4709_v59, 4 }
 0x3f2   :  { %982 = vmatmul.mubr.f32.vlgmr.msra.gmra.mxu1 %v915_v57  ;;  %3460 = vmatmul.mubr.f32.vlgmr.msra.gmra.mxu0 %v915_v57 }
 0x3f3   :  { %1091 = vmatpush1.msra.mxu1 %v4305_v5  ;;  %3463 = vmatpush3.msra.mxu0 %v4309_v6  ;;  %v6552_v5 = vld [vmem:[#allocation17_spill] sm:$0xff]  ;;  %v6553_v6 = vld [vmem:[#allocation18_spill] sm:$0xff] }
 0x3f4   :  { %1092 = vmatprep.subr.mxu1 %v4311_v7  ;;  %3464 = vmatprep.subr.mxu0 %v6540_v0  ;;  %v6554_v7 = vld [vmem:[#allocation19_spill] sm:$0xff] }
 0x3f5   :  { %1093 = vmatpush1.msra.mxu1 %v4314_v8  ;;  %3465 = vmatpush3.msra.mxu0 %v4317_v9  ;;  %v6555_v8 = vld [vmem:[#allocation20_spill] sm:$0xff] }
 0x3f6   :  { %1094 = vmatprep.subr.mxu1 %v4319_v10  ;;  %3466 = vmatprep.subr.mxu0 %v6540_v0 }
 0x3f7   :  { %1095 = vmatpush1.msra.mxu1 %v4323_v11  ;;  %3467 = vmatpush3.msra.mxu0 %v4327_v12 }
 0x3f8   :  { %1096 = vmatprep.subr.mxu1 %v4329_v13  ;;  %3468 = vmatprep.subr.mxu0 %v6540_v0 }
 0x3f9   :  { %1097 = vmatpush1.msra.mxu1 %v4333_v14  ;;  %3469 = vmatpush3.msra.mxu0 %v4337_v15 }
 0x3fa   :  { %1098 = vmatprep.subr.mxu1 %v4339_v16  ;;  %3470 = vmatprep.subr.mxu0 %v6540_v0 }
 0x3fb   :  { %1099 = vmatpush1.msra.mxu1 %v4343_v17  ;;  %3471 = vmatpush3.msra.mxu0 %v4347_v18 }
 0x3fc   :  { %1100 = vmatprep.subr.mxu1 %v4349_v19  ;;  %3472 = vmatprep.subr.mxu0 %v6540_v0 }
 0x3fd   :  { %1101 = vmatpush1.msra.mxu1 %v4353_v20  ;;  %3473 = vmatpush3.msra.mxu0 %v4357_v21 }
 0x3fe   :  { %1102 = vmatprep.subr.mxu1 %v4359_v22  ;;  %3474 = vmatprep.subr.mxu0 %v6540_v0 }
 0x3ff   :  { %1103 = vmatpush1.msra.mxu1 %v4363_v23  ;;  %3475 = vmatpush3.msra.mxu0 %v4367_v24 }
 0x400   :  { %1104 = vmatprep.subr.mxu1 %v4369_v25  ;;  %3476 = vmatprep.subr.mxu0 %v6540_v0 }
 0x401   :  { %1105 = vmatpush1.msra.mxu1 %v4380_v26  ;;  %3477 = vmatpush3.msra.mxu0 %v4382_v27 }
 0x402   :  { %1106 = vmatprep.subr.mxu1 %v4386_v28  ;;  %3478 = vmatprep.subr.mxu0 %v6540_v0 }
 0x403   :  { %1107 = vmatpush1.msra.mxu1 %v4390_v29  ;;  %3479 = vmatpush3.msra.mxu0 %v4392_v30 }
 0x404   :  { %1108 = vmatprep.subr.mxu1 %v4396_v31  ;;  %3480 = vmatprep.subr.mxu0 %v6540_v0 }
 0x405   :  { %1109 = vmatpush1.msra.mxu1 %v4400_v32  ;;  %3481 = vmatpush3.msra.mxu0 %v4402_v33 }
 0x406   :  { %1110 = vmatprep.subr.mxu1 %v4404_v34  ;;  %3482 = vmatprep.subr.mxu0 %v6540_v0 }
 0x407   :  { %1111 = vmatpush1.msra.mxu1 %v4408_v35  ;;  %3483 = vmatpush3.msra.mxu0 %v4410_v36 }
 0x408   :  { %1112 = vmatprep.subr.mxu1 %v4412_v37  ;;  %3484 = vmatprep.subr.mxu0 %v6540_v0 }
 0x409   :  { %1113 = vmatpush1.msra.mxu1 %v4416_v38  ;;  %3485 = vmatpush3.msra.mxu0 %v4418_v39 }
 0x40a   :  { %1114 = vmatprep.subr.mxu1 %v4422_v40  ;;  %3486 = vmatprep.subr.mxu0 %v6540_v0 }
 0x40b   :  { %1115 = vmatpush1.msra.mxu1 %v4426_v41  ;;  %3487 = vmatpush3.msra.mxu0 %v4428_v42 }
 0x40c   :  { %1116 = vmatprep.subr.mxu1 %v4432_v43  ;;  %3488 = vmatprep.subr.mxu0 %v6540_v0 }
 0x40d   :  { %1117 = vmatpush1.msra.mxu1 %v4436_v44  ;;  %3489 = vmatpush3.msra.mxu0 %v4438_v45 }
 0x40e   :  { %1118 = vmatprep.subr.mxu1 %v6552_v5  ;;  %3490 = vmatprep.subr.mxu0 %v6540_v0 }
 0x40f   :  { %1119 = vmatpush1.msra.mxu1 %v6553_v6  ;;  %3491 = vmatpush3.msra.mxu0 %v6554_v7 }
 0x410   :  { %1120 = vmatprep.subr.mxu1 %v6555_v8  ;;  %3492 = vmatprep.subr.mxu0 %v6540_v0 }
 0x411   :  { %1121 = vmatpush1.msra.mxu1 %v6556_v3  ;;  %1154 = vmatprep.mubr.f32.mxu1 %v6540_v0 }
 0x412   :  { %3493 = vmatpush3.msra.mxu0 %v6557_v46  ;;  %3494 = vmatprep.mubr.msk.f32.mxu0 %vm4222_vm0, %v6540_v0 }
 0x413   :  { %1249 = vmatprep.subr.mxu1 %v6558_v47  ;;  %3497 = vmatprep.subr.mxu0 %v6540_v0 }
 0x4b2   :  { %v983_v48 = vpop.f32.mrf.mxu1  ;;  %v1054_v49 = vpop.f32.mrf.mxu0 }
 0x4b3   :  { %v1059_v50 = vrot.slane %v983_v48, 2  ;;  %v1066_v60 = vadd.f32 %v4551_v53, %v1054_v49  ;;  %v4788_v49 = vld [vmem:[#allocation7 + $0x168] sm:$0xff] }
 0x4b4   :  { %v985_v51 = vpop.f32.mrf.mxu1  ;;  %v3461_v4 = vpop.f32.mrf.mxu0 }
 0x4b5   :  { %v1061_v56 = vadd.f32 %v1059_v50, %v6543_v55  ;;  %v1063_v54 = vrot.slane %v985_v51, 2  ;;  %v1076_v47 = vrot.slane %v1066_v60, 2  ;;  %v1083_v51 = vrot.slane %v4709_v59, 6  ;;  %v4798_v59 = vld [vmem:[#allocation7 + $0x150] sm:$0xff]  ;;  %v4935_v60 = vld [vmem:[#allocation7 + $0xe8] sm:$0xff] }
 0x4b7   :  { %v1067_v58 = vmul.f32 0.5, %v1061_v56  ;;  %v1065_v52 = vadd.f32 %v1063_v54, %v6544_v1 }
 0x4b9   :  { %3813 = vtanh.f32 %v1067_v58  ;;  %v1071_v63 = vmul.f32 0.5, %v1065_v52 }
 0x4bb   :  { %3815 = vtanh.f32 %v1071_v63  ;;  %v4932_v63 = vld [vmem:[#allocation7 + $0xd8] sm:$0xff] }
 0x4c6   :  { %v3814_v62 = vpop.eup %3813 }
 0x4c7   :  { %v1069_v2 = vmul.f32 0.5, %v3814_v62  ;;  %v4938_v62 = vld [vmem:[#allocation7 + $0xc8] sm:$0xff] }
 0x4c8   :  { %v3816_v4 = vpop.eup %3815 }
 0x4c9   :  { %v1070_v57 = vadd.f32 0.5, %v1069_v2  ;;  %v1073_v3 = vmul.f32 0.5, %v3816_v4  ;;  %v4942_v2 = vld [vmem:[#allocation7 + $0xc0] sm:$0xff]  ;;  %v4955_v4 = vld [vmem:[#allocation7 + $0xb8] sm:$0xff] }
 0x4cb   :  { %v1078_v46 = vmul.f32 %v1076_v47, %v1070_v57  ;;  %v1074_v55 = vadd.f32 0.5, %v1073_v3  ;;  %v4794_v3 = vld [vmem:[#allocation7 + $0x158] sm:$0xff]  ;;  %v4945_v57 = vld [vmem:[#allocation7 + $0xd0] sm:$0xff] }
 0x4cc   :  { %v4948_v47 = vld [vmem:[#allocation7 + $0xb0] sm:$0xff] }
 0x4cd   :  { %v1079_v48 = vadd.f32 %v1078_v46, %v4554_v61  ;;  %v1081_v50 = vsub.f32 1.0, %v1074_v55  ;;  %v1085_v1 = vmul.f32 %v1083_v51, %v1074_v55  ;;  %v4791_v61 = vld [vmem:[#allocation7 + $0x178] sm:$0xff]  ;;  %v4928_v46 = vld [vmem:[#allocation7 + $0xe0] sm:$0xff] }
 0x4ce   :  { %v4958_v55 = vld [vmem:[#allocation7 + $0x98] sm:$0xff]  ;;  %v4965_v51 = vld [vmem:[#allocation7 + $0xa0] sm:$0xff] }
 0x4cf   :  { %3817 = vtanh.f32 %v1079_v48  ;;  %v4952_v48 = vld [vmem:[#allocation7 + $0xa8] sm:$0xff] }
 0x4dc   :  { %v3818_v56 = vpop.eup %3817 }
 0x4dd   :  { %v1082_v58 = vmul.f32 %v3818_v56, %v1081_v50  ;;  %v4962_v50 = vld [vmem:[#allocation7 + $0x90] sm:$0xff]  ;;  %v4968_v56 = vld [vmem:[#allocation7 + $0x80] sm:$0xff] }
 0x4df   :  { %v1086_v54 = vadd.f32 %v1085_v1, %v1082_v58  ;;  %v4972_v1 = vld [vmem:[#allocation7 + $0x78] sm:$0xff]  ;;  %v4975_v58 = vld [vmem:[#allocation7 + $0x88] sm:$0xff] }
 0x4e1   :  { %v4784_v52 = vrot.slane %v1086_v54, 6  ;;  %v4978_v54 = vld [vmem:[#allocation7 + $0x68] sm:$0xff] }
 0x4e3   :  { %1155 = vmatmul.mubr.f32.vlgmr.msra.gmra.mxu1 %v4784_v52  ;;  %3495 = vmatmul.mubr.f32.vlgmr.msra.gmra.mxu0 %v4784_v52 }
 0x4e4   :  { %1250 = vmatpush1.msra.mxu1 %v4788_v49  ;;  %3498 = vmatpush3.msra.mxu0 %v4791_v61 }
 0x4e5   :  { %1251 = vmatprep.subr.mxu1 %v4794_v3  ;;  %3499 = vmatprep.subr.mxu0 %v6540_v0 }
 0x4e6   :  { %1252 = vmatpush1.msra.mxu1 %v4798_v59  ;;  %3500 = vmatpush3.msra.mxu0 %v4317_v9  ;;  %v6559_v9 = vld [vmem:[#allocation21_spill] sm:$0xff] }
 0x4e7   :  { %1253 = vmatprep.subr.mxu1 %v4319_v10  ;;  %3501 = vmatprep.subr.mxu0 %v6540_v0  ;;  %v6560_v10 = vld [vmem:[#allocation22_spill] sm:$0xff] }
 0x4e8   :  { %1254 = vmatpush1.msra.mxu1 %v4323_v11  ;;  %3502 = vmatpush3.msra.mxu0 %v4327_v12  ;;  %v4861_v11 = vld [vmem:[#allocation7 + $0x170] sm:$0xff] }
 0x4e9   :  { %1255 = vmatprep.subr.mxu1 %v4329_v13  ;;  %3503 = vmatprep.subr.mxu0 %v6540_v0  ;;  %v4865_v12 = vld [vmem:[#allocation2 + $0x18] sm:$0xff] }
 0x4ea   :  { %1256 = vmatpush1.msra.mxu1 %v4333_v14  ;;  %3504 = vmatpush3.msra.mxu0 %v4337_v15 }
 0x4eb   :  { %1257 = vmatprep.subr.mxu1 %v4339_v16  ;;  %3505 = vmatprep.subr.mxu0 %v6540_v0 }
 0x4ec   :  { %1258 = vmatpush1.msra.mxu1 %v4343_v17  ;;  %3506 = vmatpush3.msra.mxu0 %v4347_v18  ;;  %v4868_v18 = vld [vmem:[#allocation2 + $0x20] sm:$0xff] }
 0x4ed   :  { %1259 = vmatprep.subr.mxu1 %v4349_v19  ;;  %3507 = vmatprep.subr.mxu0 %v6540_v0 }
 0x4ee   :  { %1260 = vmatpush1.msra.mxu1 %v4353_v20  ;;  %3508 = vmatpush3.msra.mxu0 %v4357_v21 }
 0x4ef   :  { %1261 = vmatprep.subr.mxu1 %v4359_v22  ;;  %3509 = vmatprep.subr.mxu0 %v6540_v0 }
 0x4f0   :  { %1262 = vmatpush1.msra.mxu1 %v4363_v23  ;;  %3510 = vmatpush3.msra.mxu0 %v4367_v24 }
 0x4f1   :  { %1263 = vmatprep.subr.mxu1 %v4369_v25  ;;  %3511 = vmatprep.subr.mxu0 %v6540_v0 }
 0x4f2   :  { %1264 = vmatpush1.msra.mxu1 %v4380_v26  ;;  %3512 = vmatpush3.msra.mxu0 %v4382_v27  ;;  %v4872_v26 = vld [vmem:[#allocation2 + $0x28] sm:$0xff] }
 0x4f3   :  { %1265 = vmatprep.subr.mxu1 %v4386_v28  ;;  %3513 = vmatprep.subr.mxu0 %v6540_v0 }
 0x4f4   :  { %1266 = vmatpush1.msra.mxu1 %v4390_v29  ;;  %3514 = vmatpush3.msra.mxu0 %v4392_v30 }
 0x4f5   :  { %1267 = vmatprep.subr.mxu1 %v4396_v31  ;;  %3515 = vmatprep.subr.mxu0 %v6540_v0 }
 0x4f6   :  { %1268 = vmatpush1.msra.mxu1 %v4400_v32  ;;  %3516 = vmatpush3.msra.mxu0 %v4402_v33 }
 0x4f7   :  { %1269 = vmatprep.subr.mxu1 %v4404_v34  ;;  %3517 = vmatprep.subr.mxu0 %v6540_v0 }
 0x4f8   :  { %1270 = vmatpush1.msra.mxu1 %v4408_v35  ;;  %3518 = vmatpush3.msra.mxu0 %v4410_v36 }
 0x4f9   :  { %1271 = vmatprep.subr.mxu1 %v4412_v37  ;;  %3519 = vmatprep.subr.mxu0 %v6540_v0  ;;  %v4885_v37 = vld [vmem:[#allocation7 + $0x160] sm:$0xff] }
 0x4fa   :  { %1272 = vmatpush1.msra.mxu1 %v4416_v38  ;;  %3520 = vmatpush3.msra.mxu0 %v4418_v39  ;;  %v4888_v38 = vld [vmem:[#allocation7 + $0x140] sm:$0xff]  ;;  %v4892_v39 = vld [vmem:[#allocation7 + $0x138] sm:$0xff] }
 0x4fb   :  { %1273 = vmatprep.subr.mxu1 %v4422_v40  ;;  %3521 = vmatprep.subr.mxu0 %v6540_v0  ;;  %v4895_v40 = vld [vmem:[#allocation7 + $0x148] sm:$0xff] }
 0x4fc   :  { %1274 = vmatpush1.msra.mxu1 %v4426_v41  ;;  %3522 = vmatpush3.msra.mxu0 %v4428_v42  ;;  %v4898_v41 = vld [vmem:[#allocation7 + $0x128] sm:$0xff]  ;;  %v4902_v42 = vld [vmem:[#allocation7 + $0x120] sm:$0xff] }
 0x4fd   :  { %1275 = vmatprep.subr.mxu1 %v4432_v43  ;;  %3523 = vmatprep.subr.mxu0 %v6540_v0  ;;  %v4905_v43 = vld [vmem:[#allocation7 + $0x130] sm:$0xff] }
 0x4fe   :  { %1276 = vmatpush1.msra.mxu1 %v4436_v44  ;;  %3524 = vmatpush3.msra.mxu0 %v4438_v45  ;;  %v4908_v44 = vld [vmem:[#allocation7 + $0x110] sm:$0xff]  ;;  %v4912_v45 = vld [vmem:[#allocation7 + $0x108] sm:$0xff] }
 0x4ff   :  { %1277 = vmatprep.subr.mxu1 %v6552_v5  ;;  %3525 = vmatprep.subr.mxu0 %v6540_v0  ;;  %v4915_v5 = vld [vmem:[#allocation7 + $0x118] sm:$0xff] }
 0x500   :  { %1278 = vmatpush1.msra.mxu1 %v6553_v6  ;;  %3526 = vmatpush3.msra.mxu0 %v6554_v7  ;;  %v4918_v6 = vld [vmem:[#allocation7 + $0xf8] sm:$0xff]  ;;  %v4922_v7 = vld [vmem:[#allocation7 + $0xf0] sm:$0xff] }
 0x501   :  { %1279 = vmatprep.subr.mxu1 %v6555_v8  ;;  %3527 = vmatprep.subr.mxu0 %v6540_v0  ;;  %v4925_v8 = vld [vmem:[#allocation7 + $0x100] sm:$0xff] }
 0x502   :  { %1280 = vmatpush1.msra.mxu1 %v6559_v9  ;;  %1313 = vmatprep.mubr.f32.mxu1 %v6540_v0  ;;  %v4985_v9 = vld [vmem:[#allocation7 + $0x70] sm:$0xff] }
 0x503   :  { %3528 = vmatpush3.msra.mxu0 %v6560_v10  ;;  %3529 = vmatprep.mubr.msk.f32.mxu0 %vm4222_vm0, %v6540_v0  ;;  %v4988_v10 = vld [vmem:[#allocation7 + $0x50] sm:$0xff] }
 0x504   :  { %1423 = vmatprep.subr.mxu1 %v4861_v11  ;;  %3532 = vmatprep.subr.mxu0 %v6540_v0 }
 0x5a3   :  { %v1156_v13 = vpop.f32.mrf.mxu1  ;;  %v1227_v14 = vpop.f32.mrf.mxu0 }
 0x5a4   :  { %v1231_v15 = vadd.f32 %v1156_v13, %v4865_v12  ;;  %v1233_v24 = vadd.f32 %v4551_v53, %v1227_v14  ;;  %v4992_v13 = vld [vmem:[#allocation7 + $0x48] sm:$0xff]  ;;  %v4995_v14 = vld [vmem:[#allocation7 + $0x58] sm:$0xff] }
 0x5a5   :  { %v3496_v16 = vpop.f32.mrf.mxu0  ;;  %v1158_v19 = vpop.f32.mrf.mxu1 }
 0x5a6   :  { %v1234_v17 = vmul.f32 0.5, %v1231_v15  ;;  %v1232_v20 = vadd.f32 %v1158_v19, %v4868_v18  ;;  %v4998_v15 = vld [vmem:[#allocation7 + $0x38] sm:$0xff]  ;;  %v5002_v16 = vld [vmem:[#allocation7 + $0x30] sm:$0xff]  ;;  %v5008_v19 = vld [vmem:[#allocation7 + $0x20] sm:$0xff] }
 0x5a7   :  { %6561 = vst [vmem:[#allocation23_spill] sm:$0xff] %v5008_v19 }
 0x5a8   :  { %3819 = vtanh.f32 %v1234_v17  ;;  %v1238_v21 = vmul.f32 0.5, %v1232_v20  ;;  %v5005_v17 = vld [vmem:[#allocation7 + $0x40] sm:$0xff]  ;;  %v5012_v20 = vld [vmem:[#allocation7 + $0x18] sm:$0xff] }
 0x5a9   :  { %6562 = vst [vmem:[#allocation24_spill] sm:$0xff] %v5012_v20 }
 0x5aa   :  { %3821 = vtanh.f32 %v1238_v21  ;;  %v5015_v21 = vld [vmem:[#allocation7 + $0x28] sm:$0xff] }
 0x5ab   :  { %6563 = vst [vmem:[#allocation17_spill] sm:$0xff] %v5015_v21 }
 0x5b5   :  { %v3820_v22 = vpop.eup %3819 }
 0x5b6   :  { %v1236_v23 = vmul.f32 0.5, %v3820_v22  ;;  %v5018_v22 = vld [vmem:[#allocation7 + $0x8] sm:$0xff] }
 0x5b7   :  { %v3822_v29 = vpop.eup %3821  ;;  %6564 = vst [vmem:[#allocation18_spill] sm:$0xff] %v5018_v22 }
 0x5b8   :  { %v1237_v25 = vadd.f32 0.5, %v1236_v23  ;;  %v1240_v30 = vmul.f32 0.5, %v3822_v29  ;;  %v5022_v23 = vld [vmem:[#allocation7] sm:$0xff] }
 0x5b9   :  { %6565 = vst [vmem:[#allocation19_spill] sm:$0xff] %v5022_v23 }
 0x5ba   :  { %v1242_v27 = vmul.f32 %v1237_v25, %v1233_v24  ;;  %v1241_v31 = vadd.f32 0.5, %v1240_v30  ;;  %v5026_v24 = vld [vmem:[#allocation7 + $0x10] sm:$0xff] }
 0x5bb   :  { %6566 = vst [vmem:[#allocation20_spill] sm:$0xff] %v5026_v24 }
 0x5bc   :  { %v1243_v28 = vadd.f32 %v1242_v27, %v4872_v26  ;;  %v1245_v32 = vsub.f32 1.0, %v1241_v31  ;;  %v1247_v34 = vmul.f32 %v1241_v31, %v4784_v52  ;;  %v4982_v52 = vld [vmem:[#allocation7 + $0x60] sm:$0xff] }
 0x5be   :  { %3823 = vtanh.f32 %v1243_v28 }
 0x5cb   :  { %v3824_v33 = vpop.eup %3823 }
 0x5cc   :  { %v1246_v35 = vmul.f32 %v3824_v33, %v1245_v32 }
 0x5ce   :  { %v4876_v36 = vadd.f32 %v1247_v34, %v1246_v35 }
 0x5d0   :  { %1314 = vmatmul.mubr.f32.vlgmr.msra.gmra.mxu1 %v4876_v36  ;;  %3530 = vmatmul.mubr.f32.vlgmr.msra.gmra.mxu0 %v4876_v36 }
 0x5d1   :  { %1424 = vmatpush1.msra.mxu1 %v4788_v49  ;;  %3533 = vmatpush3.msra.mxu0 %v4791_v61 }
 0x5d2   :  { %1425 = vmatprep.subr.mxu1 %v4794_v3  ;;  %3534 = vmatprep.subr.mxu0 %v6540_v0 }
 0x5d3   :  { %1426 = vmatpush1.msra.mxu1 %v4798_v59  ;;  %3535 = vmatpush3.msra.mxu0 %v4885_v37 }
 0x5d4   :  { %1427 = vmatprep.subr.mxu1 %v4888_v38  ;;  %3536 = vmatprep.subr.mxu0 %v6540_v0 }
 0x5d5   :  { %1428 = vmatpush1.msra.mxu1 %v4892_v39  ;;  %3537 = vmatpush3.msra.mxu0 %v4895_v40 }
 0x5d6   :  { %1429 = vmatprep.subr.mxu1 %v4898_v41  ;;  %3538 = vmatprep.subr.mxu0 %v6540_v0 }
 0x5d7   :  { %1430 = vmatpush1.msra.mxu1 %v4902_v42  ;;  %3539 = vmatpush3.msra.mxu0 %v4905_v43 }
 0x5d8   :  { %1431 = vmatprep.subr.mxu1 %v4908_v44  ;;  %3540 = vmatprep.subr.mxu0 %v6540_v0 }
 0x5d9   :  { %1432 = vmatpush1.msra.mxu1 %v4912_v45  ;;  %3541 = vmatpush3.msra.mxu0 %v4915_v5 }
 0x5da   :  { %1433 = vmatprep.subr.mxu1 %v4918_v6  ;;  %3542 = vmatprep.subr.mxu0 %v6540_v0 }
 0x5db   :  { %1434 = vmatpush1.msra.mxu1 %v4922_v7  ;;  %3543 = vmatpush3.msra.mxu0 %v4925_v8 }
 0x5dc   :  { %1435 = vmatprep.subr.mxu1 %v4928_v46  ;;  %3544 = vmatprep.subr.mxu0 %v6540_v0 }
 0x5dd   :  { %1436 = vmatpush1.msra.mxu1 %v4932_v63  ;;  %3545 = vmatpush3.msra.mxu0 %v4935_v60 }
 0x5de   :  { %1437 = vmatprep.subr.mxu1 %v4938_v62  ;;  %3546 = vmatprep.subr.mxu0 %v6540_v0 }
 0x5df   :  { %1438 = vmatpush1.msra.mxu1 %v4942_v2  ;;  %3547 = vmatpush3.msra.mxu0 %v4945_v57 }
 0x5e0   :  { %1439 = vmatprep.subr.mxu1 %v4948_v47  ;;  %3548 = vmatprep.subr.mxu0 %v6540_v0 }
 0x5e1   :  { %1440 = vmatpush1.msra.mxu1 %v4952_v48  ;;  %3549 = vmatpush3.msra.mxu0 %v4955_v4 }
 0x5e2   :  { %1441 = vmatprep.subr.mxu1 %v4958_v55  ;;  %3550 = vmatprep.subr.mxu0 %v6540_v0 }
 0x5e3   :  { %1442 = vmatpush1.msra.mxu1 %v4962_v50  ;;  %3551 = vmatpush3.msra.mxu0 %v4965_v51 }
 0x5e4   :  { %1443 = vmatprep.subr.mxu1 %v4968_v56  ;;  %3552 = vmatprep.subr.mxu0 %v6540_v0 }
 0x5e5   :  { %1444 = vmatpush1.msra.mxu1 %v4972_v1  ;;  %3553 = vmatpush3.msra.mxu0 %v4975_v58 }
 0x5e6   :  { %1445 = vmatprep.subr.mxu1 %v4978_v54  ;;  %3554 = vmatprep.subr.mxu0 %v6540_v0 }
 0x5e7   :  { %1446 = vmatpush1.msra.mxu1 %v4982_v52  ;;  %3555 = vmatpush3.msra.mxu0 %v4985_v9 }
 0x5e8   :  { %1447 = vmatprep.subr.mxu1 %v4988_v10  ;;  %3556 = vmatprep.subr.mxu0 %v6540_v0 }
 0x5e9   :  { %1448 = vmatpush1.msra.mxu1 %v4992_v13  ;;  %3557 = vmatpush3.msra.mxu0 %v4995_v14 }
 0x5ea   :  { %1449 = vmatprep.subr.mxu1 %v4998_v15  ;;  %3558 = vmatprep.subr.mxu0 %v6540_v0 }
 0x5eb   :  { %1450 = vmatpush1.msra.mxu1 %v5002_v16  ;;  %3559 = vmatpush3.msra.mxu0 %v5005_v17 }
 0x5ec   :  { %1451 = vmatprep.subr.mxu1 %v5008_v19  ;;  %3560 = vmatprep.subr.mxu0 %v6540_v0 }
 0x5ed   :  { %1452 = vmatpush1.msra.mxu1 %v5012_v20  ;;  %3561 = vmatpush3.msra.mxu0 %v5015_v21 }
 0x5ee   :  { %1453 = vmatprep.subr.mxu1 %v5018_v22  ;;  %3562 = vmatprep.subr.mxu0 %v6540_v0 }
 0x5ef   :  { %1454 = vmatpush1.msra.mxu1 %v5022_v23  ;;  %1487 = vmatprep.mubr.f32.mxu1 %v6540_v0 }
 0x5f0   :  { %3563 = vmatpush3.msra.mxu0 %v5026_v24  ;;  %3564 = vmatprep.mubr.msk.f32.mxu0 %vm4222_vm0, %v6540_v0 }
 0x5f1   :  { %1596 = vmatprep.subr.mxu1 %v4861_v11  ;;  %3567 = vmatprep.subr.mxu0 %v6540_v0 }
 0x690   :  { %v1315_v25 = vpop.f32.mrf.mxu1  ;;  %v1386_v27 = vpop.f32.mrf.mxu0 }
 0x691   :  { %v1391_v28 = vrot.slane %v1315_v25, 6  ;;  %v1398_v24 = vadd.f32 %v4551_v53, %v1386_v27  ;;  %v5176_v27 = vld [vmem:[#allocation10 + $0x8] sm:$0xff] }
 0x692   :  { %v1317_v29 = vpop.f32.mrf.mxu1  ;;  %v3531_v30 = vpop.f32.mrf.mxu0 }
 0x693   :  { %v1393_v31 = vadd.f32 %v1391_v28, %v4865_v12  ;;  %v1395_v33 = vrot.slane %v1317_v29, 6  ;;  %v1408_v21 = vrot.slane %v1398_v24, 6  ;;  %v1416_v29 = vrot.slane %v4876_v36, 6  ;;  %v6571_v36 = vld [vmem:[#allocation19_spill] sm:$0xff]  ;;  %v5172_v24 = vld [vmem:[#allocation10 + $0x10] sm:$0xff] }
 0x695   :  { %v1399_v32 = vmul.f32 0.5, %v1393_v31  ;;  %v1397_v34 = vadd.f32 %v1395_v33, %v4868_v18 }
 0x697   :  { %3825 = vtanh.f32 %v1399_v32  ;;  %v1403_v35 = vmul.f32 0.5, %v1397_v34 }
 0x699   :  { %3827 = vtanh.f32 %v1403_v35 }
 0x6a4   :  { %v3826_v23 = vpop.eup %3825 }
 0x6a5   :  { %v1401_v11 = vmul.f32 0.5, %v3826_v23  ;;  %v5168_v23 = vld [vmem:[#allocation10 + $0x18] sm:$0xff] }
 0x6a6   :  { %v3828_v30 = vpop.eup %3827 }
 0x6a7   :  { %v1402_v22 = vadd.f32 0.5, %v1401_v11  ;;  %v1405_v19 = vmul.f32 0.5, %v3828_v30  ;;  %v5180_v11 = vld [vmem:[#allocation10] sm:$0xff] }
 0x6a9   :  { %v1410_v20 = vmul.f32 %v1408_v21, %v1402_v22  ;;  %v1406_v28 = vadd.f32 0.5, %v1405_v19  ;;  %v5152_v19 = vld [vmem:[#allocation10 + $0x38] sm:$0xff]  ;;  %v5160_v21 = vld [vmem:[#allocation10 + $0x28] sm:$0xff]  ;;  %v5164_v22 = vld [vmem:[#allocation10 + $0x20] sm:$0xff] }
 0x6ab   :  { %v1411_v25 = vadd.f32 %v1410_v20, %v4872_v26  ;;  %v1413_v31 = vsub.f32 1.0, %v1406_v28  ;;  %v1418_v33 = vmul.f32 %v1416_v29, %v1406_v28  ;;  %v5156_v20 = vld [vmem:[#allocation10 + $0x30] sm:$0xff] }
 0x6ad   :  { %3829 = vtanh.f32 %v1411_v25 }
 0x6ba   :  { %v3830_v32 = vpop.eup %3829 }
 0x6bb   :  { %v1414_v34 = vmul.f32 %v3830_v32, %v1413_v31 }
 0x6bd   :  { %v5038_v35 = vadd.f32 %v1418_v33, %v1414_v34 }
 0x6bf   :  { %v1421_v53 = vrot.slane %v5038_v35, 2 }
 0x6c1   :  { %1488 = vmatmul.mubr.f32.vlgmr.msra.gmra.mxu1 %v1421_v53  ;;  %3565 = vmatmul.mubr.f32.vlgmr.msra.gmra.mxu0 %v1421_v53 }
 0x6c2   :  { %1597 = vmatpush1.msra.mxu1 %v4788_v49  ;;  %3568 = vmatpush3.msra.mxu0 %v4791_v61  ;;  %v6567_v49 = vld [vmem:[#allocation23_spill] sm:$0xff]  ;;  %v6568_v61 = vld [vmem:[#allocation24_spill] sm:$0xff] }
 0x6c3   :  { %1598 = vmatprep.subr.mxu1 %v4794_v3  ;;  %3569 = vmatprep.subr.mxu0 %v6540_v0  ;;  %v6569_v3 = vld [vmem:[#allocation17_spill] sm:$0xff] }
 0x6c4   :  { %1599 = vmatpush1.msra.mxu1 %v4798_v59  ;;  %3570 = vmatpush3.msra.mxu0 %v4885_v37  ;;  %v6570_v59 = vld [vmem:[#allocation18_spill] sm:$0xff]  ;;  %v6572_v37 = vld [vmem:[#allocation20_spill] sm:$0xff] }
 0x6c5   :  { %1600 = vmatprep.subr.mxu1 %v4888_v38  ;;  %3571 = vmatprep.subr.mxu0 %v6540_v0 }
 0x6c6   :  { %1601 = vmatpush1.msra.mxu1 %v4892_v39  ;;  %3572 = vmatpush3.msra.mxu0 %v4895_v40 }
 0x6c7   :  { %1602 = vmatprep.subr.mxu1 %v4898_v41  ;;  %3573 = vmatprep.subr.mxu0 %v6540_v0 }
 0x6c8   :  { %1603 = vmatpush1.msra.mxu1 %v4902_v42  ;;  %3574 = vmatpush3.msra.mxu0 %v4905_v43 }
 0x6c9   :  { %1604 = vmatprep.subr.mxu1 %v4908_v44  ;;  %3575 = vmatprep.subr.mxu0 %v6540_v0 }
 0x6ca   :  { %1605 = vmatpush1.msra.mxu1 %v4912_v45  ;;  %3576 = vmatpush3.msra.mxu0 %v4915_v5 }
 0x6cb   :  { %1606 = vmatprep.subr.mxu1 %v4918_v6  ;;  %3577 = vmatprep.subr.mxu0 %v6540_v0 }
 0x6cc   :  { %1607 = vmatpush1.msra.mxu1 %v4922_v7  ;;  %3578 = vmatpush3.msra.mxu0 %v4925_v8  ;;  %v5112_v7 = vld [vmem:[%s6316_s5] ss:$0 sm:$0xff] }
 0x6cd   :  { %1608 = vmatprep.subr.mxu1 %v4928_v46  ;;  %3579 = vmatprep.subr.mxu0 %v6540_v0 }
 0x6ce   :  { %1609 = vmatpush1.msra.mxu1 %v4932_v63  ;;  %3580 = vmatpush3.msra.mxu0 %v4935_v60 }
 0x6cf   :  { %1610 = vmatprep.subr.mxu1 %v4938_v62  ;;  %3581 = vmatprep.subr.mxu0 %v6540_v0 }
 0x6d0   :  { %1611 = vmatpush1.msra.mxu1 %v4942_v2  ;;  %3582 = vmatpush3.msra.mxu0 %v4945_v57 }
 0x6d1   :  { %1612 = vmatprep.subr.mxu1 %v4948_v47  ;;  %3583 = vmatprep.subr.mxu0 %v6540_v0 }
 0x6d2   :  { %1613 = vmatpush1.msra.mxu1 %v4952_v48  ;;  %3584 = vmatpush3.msra.mxu0 %v4955_v4 }
 0x6d3   :  { %1614 = vmatprep.subr.mxu1 %v4958_v55  ;;  %3585 = vmatprep.subr.mxu0 %v6540_v0 }
 0x6d4   :  { %1615 = vmatpush1.msra.mxu1 %v4962_v50  ;;  %3586 = vmatpush3.msra.mxu0 %v4965_v51  ;;  %v1589_v50 = vrot.slane %v5038_v35, 6 }
 0x6d5   :  { %1616 = vmatprep.subr.mxu1 %v4968_v56  ;;  %3587 = vmatprep.subr.mxu0 %v6540_v0 }
 0x6d6   :  { %1617 = vmatpush1.msra.mxu1 %v4972_v1  ;;  %3588 = vmatpush3.msra.mxu0 %v4975_v58 }
 0x6d7   :  { %1618 = vmatprep.subr.mxu1 %v4978_v54  ;;  %3589 = vmatprep.subr.mxu0 %v6540_v0 }
 0x6d8   :  { %1619 = vmatpush1.msra.mxu1 %v4982_v52  ;;  %3590 = vmatpush3.msra.mxu0 %v4985_v9  ;;  %v5122_v52 = vld [vmem:[#allocation10 + $0x78] sm:$0xff]  ;;  %v5126_v9 = vld [vmem:[#allocation10 + $0x70] sm:$0xff] }
 0x6d9   :  { %1620 = vmatprep.subr.mxu1 %v4988_v10  ;;  %3591 = vmatprep.subr.mxu0 %v6540_v0  ;;  %v5130_v10 = vld [vmem:[#allocation10 + $0x68] sm:$0xff] }
 0x6da   :  { %1621 = vmatpush1.msra.mxu1 %v4992_v13  ;;  %3592 = vmatpush3.msra.mxu0 %v4995_v14  ;;  %v5134_v13 = vld [vmem:[#allocation10 + $0x60] sm:$0xff]  ;;  %v5138_v14 = vld [vmem:[#allocation10 + $0x58] sm:$0xff] }
 0x6db   :  { %1622 = vmatprep.subr.mxu1 %v4998_v15  ;;  %3593 = vmatprep.subr.mxu0 %v6540_v0  ;;  %v5142_v15 = vld [vmem:[#allocation10 + $0x50] sm:$0xff] }
 0x6dc   :  { %1623 = vmatpush1.msra.mxu1 %v5002_v16  ;;  %3594 = vmatpush3.msra.mxu0 %v5005_v17  ;;  %v5146_v16 = vld [vmem:[#allocation10 + $0x48] sm:$0xff]  ;;  %v5148_v17 = vld [vmem:[#allocation10 + $0x40] sm:$0xff] }
 0x6dd   :  { %1624 = vmatprep.subr.mxu1 %v6567_v49  ;;  %3595 = vmatprep.subr.mxu0 %v6540_v0 }
 0x6de   :  { %1625 = vmatpush1.msra.mxu1 %v6568_v61  ;;  %3596 = vmatpush3.msra.mxu0 %v6569_v3 }
 0x6df   :  { %1626 = vmatprep.subr.mxu1 %v6570_v59  ;;  %3597 = vmatprep.subr.mxu0 %v6540_v0 }
 0x6e0   :  { %1627 = vmatpush1.msra.mxu1 %v6571_v36  ;;  %1660 = vmatprep.mubr.f32.mxu1 %v6540_v0 }
 0x6e1   :  { %3598 = vmatpush3.msra.mxu0 %v6572_v37  ;;  %3599 = vmatprep.mubr.msk.f32.mxu0 %vm4222_vm0, %v6540_v0 }
 0x6e2   :  { %3602 = vmatprep.subr.mxu1 %v6540_v0 }
 0x781   :  { %v1489_v38 = vpop.f32.mrf.mxu1  ;;  %v1560_v39 = vpop.f32.mrf.mxu0 }
 0x782   :  { %v1565_v40 = vrot.slane %v1489_v38, 4  ;;  %v1572_v8 = vadd.f32 %v5112_v7, %v1560_v39 }
 0x783   :  { %v1491_v41 = vpop.f32.mrf.mxu1  ;;  %v3566_v42 = vpop.f32.mrf.mxu0 }
 0x784   :  { %v1567_v43 = vadd.f32 %v1565_v40, %v4865_v12  ;;  %v1569_v45 = vrot.slane %v1491_v41, 4  ;;  %v1582_v62 = vrot.slane %v1572_v8, 4 }
 0x786   :  { %v1573_v44 = vmul.f32 0.5, %v1567_v43  ;;  %v1571_v5 = vadd.f32 %v1569_v45, %v4868_v18 }
 0x788   :  { %3831 = vtanh.f32 %v1573_v44  ;;  %v1577_v6 = vmul.f32 0.5, %v1571_v5 }
 0x78a   :  { %3833 = vtanh.f32 %v1577_v6 }
 0x795   :  { %v3832_v46 = vpop.eup %3831 }
 0x796   :  { %v1575_v63 = vmul.f32 0.5, %v3832_v46 }
 0x797   :  { %v3834_v47 = vpop.eup %3833 }
 0x798   :  { %v1576_v60 = vadd.f32 0.5, %v1575_v63  ;;  %v1579_v48 = vmul.f32 0.5, %v3834_v47  ;;  %v6348_v63 = vlaneseq }
 0x79a   :  { %v1584_v2 = vmul.f32 %v1582_v62, %v1576_v60  ;;  %v1580_v4 = vadd.f32 0.5, %v1579_v48  ;;  %v5206_v60 = vand.u32 127, %v6348_v63  ;;  %v5332_v63 = vld [vmem:[#allocation9 + $0xd0] sm:$0xff] }
 0x79b   :  { %6595 = vst [vmem:[#allocation38_spill] sm:$0xff] %v5332_v63 }
 0x79c   :  { %v1585_v57 = vadd.f32 %v1584_v2, %v4872_v26  ;;  %v1587_v55 = vsub.f32 1.0, %v1580_v4  ;;  %v1591_v56 = vmul.f32 %v1589_v50, %v1580_v4  ;;  %v5220_v4 = vld [vmem:[#allocation9 + $0x1e8] sm:$0xff]  ;;  %v5224_v50 = vld [vmem:[#allocation9 + $0x1e0] sm:$0xff] }
 0x79d   :  { %1928 = vmatprep.subr.mxu0 %v5220_v4 }
 0x79e   :  { %3835 = vtanh.f32 %v1585_v57 }
 0x7ab   :  { %v3836_v51 = vpop.eup %3835 }
 0x7ac   :  { %v1588_v1 = vmul.f32 %v3836_v51, %v1587_v55  ;;  %v5222_v55 = vld [vmem:[#allocation9 + $0x1f8] sm:$0xff]  ;;  %v5228_v51 = vld [vmem:[#allocation9 + $0x1f0] sm:$0xff] }
 0x7ad   :  { %6577 = vst [vmem:[#allocation24_spill] sm:$0xff] %v5228_v51 }
 0x7ae   :  { %v5117_v58 = vadd.f32 %v1591_v56, %v1588_v1  ;;  %v5230_v56 = vld [vmem:[#allocation9 + $0x1c8] sm:$0xff]  ;;  %v5232_v1 = vld [vmem:[#allocation9 + $0x1d8] sm:$0xff] }
 0x7af   :  { %6578 = vst [vmem:[#allocation17_spill] sm:$0xff] %v5232_v1 }
 0x7b0   :  { %v1594_v54 = vrot.slane %v5117_v58, 4  ;;  %v1762_v42 = vrot.slane %v5117_v58, 6  ;;  %v5236_v58 = vld [vmem:[#allocation9 + $0x1c0] sm:$0xff] }
 0x7b2   :  { %1661 = vmatmul.mubr.f32.vlgmr.msra.gmra.mxu1 %v1594_v54  ;;  %3600 = vmatmul.mubr.f32.vlgmr.msra.gmra.mxu0 %v1594_v54  ;;  %v5238_v54 = vld [vmem:[#allocation9 + $0x1d0] sm:$0xff] }
 0x7b3   :  { %3634 = vmatprep.mubr.msk.f32.mxu1 %vm4222_vm0, %v6540_v0  ;;  %3603 = vmatpush3.msra.mxu1 %v5122_v52  ;;  %6579 = vst [vmem:[#allocation18_spill] sm:$0xff] %v5238_v54 }
 0x7b4   :  { %3604 = vmatprep.subr.mxu1 %v6540_v0  ;;  %1929 = vmatpush1.msra.mxu0 %v5224_v50 }
 0x7b5   :  { %3605 = vmatpush3.msra.mxu1 %v5126_v9  ;;  %1930 = vmatprep.subr.mxu0 %v5230_v56 }
 0x7b6   :  { %3606 = vmatprep.subr.mxu1 %v6540_v0  ;;  %1931 = vmatpush1.msra.mxu0 %v5236_v58 }
 0x7b7   :  { %3607 = vmatpush3.msra.mxu1 %v5130_v10 }
 0x7b8   :  { %3608 = vmatprep.subr.mxu1 %v6540_v0 }
 0x7b9   :  { %3609 = vmatpush3.msra.mxu1 %v5134_v13 }
 0x7ba   :  { %3610 = vmatprep.subr.mxu1 %v6540_v0 }
 0x7bb   :  { %3611 = vmatpush3.msra.mxu1 %v5138_v14 }
 0x7bc   :  { %3612 = vmatprep.subr.mxu1 %v6540_v0 }
 0x7bd   :  { %3613 = vmatpush3.msra.mxu1 %v5142_v15 }
 0x7be   :  { %3614 = vmatprep.subr.mxu1 %v6540_v0 }
 0x7bf   :  { %3615 = vmatpush3.msra.mxu1 %v5146_v16 }
 0x7c0   :  { %3616 = vmatprep.subr.mxu1 %v6540_v0 }
 0x7c1   :  { %3617 = vmatpush3.msra.mxu1 %v5148_v17 }
 0x7c2   :  { %3618 = vmatprep.subr.mxu1 %v6540_v0 }
 0x7c3   :  { %3619 = vmatpush3.msra.mxu1 %v5152_v19 }
 0x7c4   :  { %3620 = vmatprep.subr.mxu1 %v6540_v0 }
 0x7c5   :  { %3621 = vmatpush3.msra.mxu1 %v5156_v20 }
 0x7c6   :  { %3622 = vmatprep.subr.mxu1 %v6540_v0 }
 0x7c7   :  { %3623 = vmatpush3.msra.mxu1 %v5160_v21 }
 0x7c8   :  { %3624 = vmatprep.subr.mxu1 %v6540_v0 }
 0x7c9   :  { %3625 = vmatpush3.msra.mxu1 %v5164_v22 }
 0x7ca   :  { %3626 = vmatprep.subr.mxu1 %v6540_v0 }
 0x7cb   :  { %3627 = vmatpush3.msra.mxu1 %v5168_v23 }
 0x7cc   :  { %3628 = vmatprep.subr.mxu1 %v6540_v0 }
 0x7cd   :  { %3629 = vmatpush3.msra.mxu1 %v5172_v24 }
 0x7ce   :  { %3630 = vmatprep.subr.mxu1 %v6540_v0 }
 0x7cf   :  { %3631 = vmatpush3.msra.mxu1 %v5176_v27 }
 0x7d0   :  { %3632 = vmatprep.subr.mxu1 %v6540_v0 }
 0x7d1   :  { %3633 = vmatpush3.msra.mxu1 %v5180_v11 }
 0x7d2   :  { %1999 = vmatprep.subr.mxu1 %v5222_v55 }
 0x872   :  { %v1662_v25 = vpop.f32.mrf.mxu1  ;;  %v1733_v30 = vpop.f32.mrf.mxu0 }
 0x873   :  { %v1738_v28 = vrot.slane %v1662_v25, 2  ;;  %v1745_v49 = vadd.f32 %v5112_v7, %v1733_v30  ;;  %v5240_v25 = vld [vmem:[#allocation9 + $0x1a8] sm:$0xff]  ;;  %v5244_v30 = vld [vmem:[#allocation9 + $0x1b8] sm:$0xff] }
 0x874   :  { %v1664_v31 = vpop.f32.mrf.mxu1  ;;  %v3601_v29 = vpop.f32.mrf.mxu0  ;;  %6580 = vst [vmem:[#allocation19_spill] sm:$0xff] %v5244_v30  ;;  %1932 = vmatprep.subr.mxu0 %v5240_v25 }
 0x875   :  { %v1740_v32 = vadd.f32 %v1738_v28, %v4865_v12  ;;  %v1742_v34 = vrot.slane %v1664_v31, 2  ;;  %v1755_v36 = vrot.slane %v1745_v49, 2  ;;  %v5246_v28 = vld [vmem:[#allocation9 + $0x1a0] sm:$0xff]  ;;  %v5248_v31 = vld [vmem:[#allocation9 + $0x1b0] sm:$0xff]  ;;  %v5252_v29 = vld [vmem:[#allocation9 + $0x188] sm:$0xff] }
 0x876   :  { %6581 = vst [vmem:[#allocation20_spill] sm:$0xff] %v5248_v31  ;;  %1933 = vmatpush1.msra.mxu0 %v5246_v28  ;;  %v5270_v49 = vld [vmem:[#allocation9 + $0x160] sm:$0xff] }
 0x877   :  { %v1746_v33 = vmul.f32 0.5, %v1740_v32  ;;  %v1744_v35 = vadd.f32 %v1742_v34, %v4868_v18  ;;  %v5254_v32 = vld [vmem:[#allocation9 + $0x198] sm:$0xff]  ;;  %v5260_v34 = vld [vmem:[#allocation9 + $0x190] sm:$0xff]  ;;  %1934 = vmatprep.subr.mxu0 %v5252_v29 }
 0x878   :  { %6582 = vst [vmem:[#allocation25_spill] sm:$0xff] %v5254_v32  ;;  %6583 = vst [vmem:[#allocation26_spill] sm:$0xff] %v5260_v34 }
 0x879   :  { %3837 = vtanh.f32 %v1746_v33  ;;  %v1750_v53 = vmul.f32 0.5, %v1744_v35  ;;  %v5258_v33 = vld [vmem:[#allocation9 + $0x180] sm:$0xff]  ;;  %v5264_v35 = vld [vmem:[#allocation9 + $0x168] sm:$0xff] }
 0x87a   :  { %1935 = vmatpush1.msra.mxu0 %v5258_v33 }
 0x87b   :  { %3839 = vtanh.f32 %v1750_v53  ;;  %v5266_v53 = vld [vmem:[#allocation9 + $0x178] sm:$0xff]  ;;  %1936 = vmatprep.subr.mxu0 %v5264_v35 }
 0x87c   :  { %6584 = vst [vmem:[#allocation27_spill] sm:$0xff] %v5266_v53  ;;  %1937 = vmatpush1.msra.mxu0 %v5270_v49 }
 0x886   :  { %v3838_v61 = vpop.eup %3837 }
 0x887   :  { %v1748_v3 = vmul.f32 0.5, %v3838_v61  ;;  %v5272_v61 = vld [vmem:[#allocation9 + $0x170] sm:$0xff] }
 0x888   :  { %v3840_v39 = vpop.eup %3839  ;;  %6585 = vst [vmem:[#allocation28_spill] sm:$0xff] %v5272_v61 }
 0x889   :  { %v1749_v59 = vadd.f32 0.5, %v1748_v3  ;;  %v1752_v40 = vmul.f32 0.5, %v3840_v39  ;;  %v5276_v3 = vld [vmem:[#allocation9 + $0x148] sm:$0xff]  ;;  %v5290_v39 = vld [vmem:[#allocation9 + $0x138] sm:$0xff] }
 0x88a   :  { %6588 = vst [vmem:[#allocation31_spill] sm:$0xff] %v5290_v39  ;;  %1938 = vmatprep.subr.mxu0 %v5276_v3 }
 0x88b   :  { %v1757_v37 = vmul.f32 %v1755_v36, %v1749_v59  ;;  %v1753_v12 = vadd.f32 0.5, %v1752_v40  ;;  %v5278_v59 = vld [vmem:[#allocation9 + $0x158] sm:$0xff]  ;;  %v5282_v36 = vld [vmem:[#allocation9 + $0x140] sm:$0xff] }
 0x88c   :  { %6586 = vst [vmem:[#allocation29_spill] sm:$0xff] %v5278_v59  ;;  %v5294_v40 = vld [vmem:[#allocation9 + $0x120] sm:$0xff]  ;;  %1939 = vmatpush1.msra.mxu0 %v5282_v36 }
 0x88d   :  { %v1758_v38 = vadd.f32 %v1757_v37, %v4872_v26  ;;  %v1760_v41 = vsub.f32 1.0, %v1753_v12  ;;  %v1764_v18 = vmul.f32 %v1762_v42, %v1753_v12  ;;  %v5198_v26 = vld [vmem:[%s6320_s9] ss:$0 sm:$0xff]  ;;  %v5284_v37 = vld [vmem:[#allocation9 + $0x150] sm:$0xff] }
 0x88e   :  { %6574 = vst [vmem:[#allocation21_spill] sm:$0xff] %v5198_v26  ;;  %6587 = vst [vmem:[#allocation30_spill] sm:$0xff] %v5284_v37  ;;  %v5296_v12 = vld [vmem:[#allocation9 + $0x130] sm:$0xff]  ;;  %v5302_v42 = vld [vmem:[#allocation9 + $0x118] sm:$0xff] }
 0x88f   :  { %3841 = vtanh.f32 %v1758_v38  ;;  %v5288_v38 = vld [vmem:[#allocation9 + $0x128] sm:$0xff]  ;;  %6589 = vst [vmem:[#allocation32_spill] sm:$0xff] %v5296_v12  ;;  %6590 = vst [vmem:[#allocation33_spill] sm:$0xff] %v5302_v42 }
 0x890   :  { %1940 = vmatprep.subr.mxu0 %v5288_v38 }
 0x891   :  { %1941 = vmatpush1.msra.mxu0 %v5294_v40 }
 0x89c   :  { %v3842_v43 = vpop.eup %3841 }
 0x89d   :  { %v1761_v44 = vmul.f32 %v3842_v43, %v1760_v41  ;;  %v5300_v41 = vld [vmem:[#allocation9 + $0x108] sm:$0xff]  ;;  %v5306_v43 = vld [vmem:[#allocation9 + $0x100] sm:$0xff] }
 0x89e   :  { %1942 = vmatprep.subr.mxu0 %v5300_v41 }
 0x89f   :  { %v1765_v45 = vadd.f32 %v1764_v18, %v1761_v44  ;;  %v5308_v18 = vld [vmem:[#allocation9 + $0x110] sm:$0xff]  ;;  %v5312_v44 = vld [vmem:[#allocation9 + $0xe8] sm:$0xff]  ;;  %1943 = vmatpush1.msra.mxu0 %v5306_v43 }
 0x8a0   :  { %6591 = vst [vmem:[#allocation34_spill] sm:$0xff] %v5308_v18  ;;  %1944 = vmatprep.subr.mxu0 %v5312_v44 }
 0x8a1   :  { %v5190_v5 = vrot.slane %v1765_v45, 6  ;;  %v5314_v45 = vld [vmem:[#allocation9 + $0xf8] sm:$0xff] }
 0x8a2   :  { %6592 = vst [vmem:[#allocation35_spill] sm:$0xff] %v5314_v45 }
 0x8a3   :  { %6573 = vst [vmem:[#allocation16_spill] sm:$0xff] %v5190_v5  ;;  %3635 = vmatmul.mubr.f32.vlgmr.msra.gmra.mxu1 %v5190_v5  ;;  %1992 = vmatprep.mubr.f32.mxu0 %v5190_v5 }
 0x8a4   :  { %2063 = vmatprep.mubr.f32.mxu1 %v5190_v5  ;;  %2000 = vmatpush1.msra.mxu1 %v5228_v51  ;;  %v5428_v51 = vld [vmem:[#allocation9 + $0x3d0] sm:$0xff]  ;;  %v5434_v5 = vld [vmem:[#allocation9 + $0x3b8] sm:$0xff] }
 0x8a5   :  { %2001 = vmatprep.subr.mxu1 %v5232_v1  ;;  %v5422_v1 = vld [vmem:[#allocation9 + $0x3d8] sm:$0xff]  ;;  %6615 = vst [vmem:[#allocation58_spill] sm:$0xff] %v5428_v51  ;;  %6617 = vst [vmem:[#allocation60_spill] sm:$0xff] %v5434_v5 }
 0x8a6   :  { %2002 = vmatpush1.msra.mxu1 %v5238_v54  ;;  %v5416_v54 = vld [vmem:[#allocation9 + $0x3f0] sm:$0xff]  ;;  %6613 = vst [vmem:[#allocation56_spill] sm:$0xff] %v5422_v1 }
 0x8a7   :  { %2003 = vmatprep.subr.mxu1 %v5244_v30  ;;  %v5410_v30 = vld [vmem:[#allocation9 + $0x3f8] sm:$0xff]  ;;  %6611 = vst [vmem:[#allocation54_spill] sm:$0xff] %v5416_v54 }
 0x8a8   :  { %2004 = vmatpush1.msra.mxu1 %v5248_v31  ;;  %v5404_v31 = vld [vmem:[#allocation9 + $0x10] sm:$0xff]  ;;  %6609 = vst [vmem:[#allocation52_spill] sm:$0xff] %v5410_v30 }
 0x8a9   :  { %2005 = vmatprep.subr.mxu1 %v5254_v32  ;;  %v5398_v32 = vld [vmem:[#allocation9 + $0x18] sm:$0xff]  ;;  %6607 = vst [vmem:[#allocation50_spill] sm:$0xff] %v5404_v31 }
 0x8aa   :  { %2006 = vmatpush1.msra.mxu1 %v5260_v34  ;;  %v5392_v34 = vld [vmem:[#allocation9 + $0x30] sm:$0xff]  ;;  %6606 = vst [vmem:[#allocation49_spill] sm:$0xff] %v5398_v32 }
 0x8ab   :  { %2007 = vmatprep.subr.mxu1 %v5266_v53  ;;  %v5386_v53 = vld [vmem:[#allocation9 + $0x38] sm:$0xff]  ;;  %6605 = vst [vmem:[#allocation48_spill] sm:$0xff] %v5392_v34 }
 0x8ac   :  { %2008 = vmatpush1.msra.mxu1 %v5272_v61  ;;  %v5380_v61 = vld [vmem:[#allocation9 + $0x50] sm:$0xff]  ;;  %6604 = vst [vmem:[#allocation47_spill] sm:$0xff] %v5386_v53 }
 0x8ad   :  { %2009 = vmatprep.subr.mxu1 %v5278_v59  ;;  %v5374_v59 = vld [vmem:[#allocation9 + $0x58] sm:$0xff]  ;;  %6603 = vst [vmem:[#allocation46_spill] sm:$0xff] %v5380_v61 }
 0x8ae   :  { %2010 = vmatpush1.msra.mxu1 %v5284_v37  ;;  %v5368_v37 = vld [vmem:[#allocation9 + $0x70] sm:$0xff]  ;;  %6602 = vst [vmem:[#allocation45_spill] sm:$0xff] %v5374_v59 }
 0x8af   :  { %2011 = vmatprep.subr.mxu1 %v5290_v39  ;;  %v5362_v39 = vld [vmem:[#allocation9 + $0x78] sm:$0xff]  ;;  %6601 = vst [vmem:[#allocation44_spill] sm:$0xff] %v5368_v37 }
 0x8b0   :  { %2012 = vmatpush1.msra.mxu1 %v5296_v12  ;;  %v5356_v12 = vld [vmem:[#allocation9 + $0x90] sm:$0xff]  ;;  %6600 = vst [vmem:[#allocation43_spill] sm:$0xff] %v5362_v39 }
 0x8b1   :  { %2013 = vmatprep.subr.mxu1 %v5302_v42  ;;  %v5350_v42 = vld [vmem:[#allocation9 + $0x98] sm:$0xff]  ;;  %6599 = vst [vmem:[#allocation42_spill] sm:$0xff] %v5356_v12 }
 0x8b2   :  { %2014 = vmatpush1.msra.mxu1 %v5308_v18  ;;  %v5344_v18 = vld [vmem:[#allocation9 + $0xb0] sm:$0xff]  ;;  %6598 = vst [vmem:[#allocation41_spill] sm:$0xff] %v5350_v42 }
 0x8b3   :  { %2015 = vmatprep.subr.mxu1 %v5314_v45  ;;  %6597 = vst [vmem:[#allocation40_spill] sm:$0xff] %v5344_v18  ;;  %v5348_v45 = vld [vmem:[#allocation9 + $0x88] sm:$0xff] }
 0x963   :  { %v1843_v6 = vpop.f32.mrf.mxu1 }
 0x964   :  { %v5201_v7 = vadd.f32 %v5198_v26, %v1843_v6  ;;  %v5318_v6 = vld [vmem:[#allocation9 + $0xe0] sm:$0xff] }
 0x965   :  { %v3636_v8 = vpop.f32.mrf.mxu1  ;;  %1945 = vmatpush1.msra.mxu0 %v5318_v6  ;;  %v5342_v26 = vld [vmem:[#allocation9 + $0xa0] sm:$0xff] }
 0x966   :  { %6575 = vst [vmem:[#allocation22_spill] sm:$0xff] %v5201_v7  ;;  %v1847_v46 = vsel %vm330_vm1, %v5201_v7, -inf  ;;  %v5320_v8 = vld [vmem:[#allocation9 + $0xf0] sm:$0xff] }
 0x967   :  { %1848 = vmax.xlane.f32.xlu0 %v1847_v46  ;;  %6593 = vst [vmem:[#allocation36_spill] sm:$0xff] %v5320_v8  ;;  %v5324_v46 = vld [vmem:[#allocation9 + $0xc8] sm:$0xff]  ;;  %2016 = vmatpush1.msra.mxu1 %v5320_v8  ;;  %v5354_v8 = vld [vmem:[#allocation9 + $0x80] sm:$0xff] }
 0x968   :  { %1946 = vmatprep.subr.mxu0 %v5324_v46 }
 0x9f0   :  { %v5208_v62 = vpop.xlane.xlu0 %1848 }
 0x9f1   :  { %6576 = vst [vmem:[#allocation23_spill] sm:$0xff] %v5208_v62  ;;  %vm1887_vm3 = vcmp.eq.f32.partialorder %v5201_v7, %v5208_v62  ;;  %v5336_v7 = vld [vmem:[#allocation9 + $0xa8] sm:$0xff]  ;;  %v5338_v62 = vld [vmem:[#allocation9 + $0xb8] sm:$0xff] }
 0x9f2   :  { %v1888_v2 = vsel %vm1887_vm3, %v5206_v60, 128  ;;  %6596 = vst [vmem:[#allocation39_spill] sm:$0xff] %v5338_v62 }
 0x9f3   :  { %v5214_v57 = vsel %vm330_vm1, %v1888_v2, 2147483647  ;;  %v5326_v2 = vld [vmem:[#allocation9 + $0xd8] sm:$0xff] }
 0x9f4   :  { %v1891_v47 = vshra.s32 %v5214_v57, 16  ;;  %6594 = vst [vmem:[#allocation37_spill] sm:$0xff] %v5326_v2  ;;  %2017 = vmatprep.subr.mxu1 %v5326_v2  ;;  %v5360_v2 = vld [vmem:[#allocation9 + $0x68] sm:$0xff] }
 0x9f5   :  { %2018 = vmatpush1.msra.mxu1 %v5332_v63  ;;  %v5366_v63 = vld [vmem:[#allocation9 + $0x60] sm:$0xff] }
 0x9f6   :  { %v5217_v48 = vcvt.s32.f32 %v1891_v47  ;;  %v5330_v47 = vld [vmem:[#allocation9 + $0xc0] sm:$0xff]  ;;  %2019 = vmatprep.subr.mxu1 %v5338_v62  ;;  %v5372_v62 = vld [vmem:[#allocation9 + $0x48] sm:$0xff] }
 0x9f7   :  { %1947 = vmatpush1.msra.mxu0 %v5330_v47  ;;  %2020 = vmatpush1.msra.mxu1 %v5344_v18  ;;  %v5378_v18 = vld [vmem:[#allocation9 + $0x40] sm:$0xff] }
 0x9f8   :  { %1894 = vmin.xlane.f32.xlu0 %v5217_v48  ;;  %1948 = vmatprep.subr.mxu0 %v5336_v7 }
 0x9f9   :  { %1949 = vmatpush1.msra.mxu0 %v5342_v26  ;;  %2021 = vmatprep.subr.mxu1 %v5350_v42  ;;  %v5384_v42 = vld [vmem:[#allocation9 + $0x28] sm:$0xff] }
 0x9fa   :  { %1950 = vmatprep.subr.mxu0 %v5348_v45  ;;  %2022 = vmatpush1.msra.mxu1 %v5356_v12  ;;  %v5390_v12 = vld [vmem:[#allocation9 + $0x20] sm:$0xff] }
 0x9fb   :  { %1951 = vmatpush1.msra.mxu0 %v5354_v8  ;;  %2023 = vmatprep.subr.mxu1 %v5362_v39  ;;  %v5396_v39 = vld [vmem:[#allocation9 + $0x8] sm:$0xff] }
 0x9fc   :  { %1952 = vmatprep.subr.mxu0 %v5360_v2  ;;  %2024 = vmatpush1.msra.mxu1 %v5368_v37  ;;  %v5402_v37 = vld [vmem:[#allocation9] sm:$0xff] }
 0x9fd   :  { %1953 = vmatpush1.msra.mxu0 %v5366_v63  ;;  %2025 = vmatprep.subr.mxu1 %v5374_v59  ;;  %v5408_v59 = vld [vmem:[#allocation9 + $0x3e8] sm:$0xff] }
 0x9fe   :  { %1954 = vmatprep.subr.mxu0 %v5372_v62  ;;  %2026 = vmatpush1.msra.mxu1 %v5380_v61  ;;  %6608 = vst [vmem:[#allocation51_spill] sm:$0xff] %v5408_v59  ;;  %v5414_v61 = vld [vmem:[#allocation9 + $0x3e0] sm:$0xff] }
 0x9ff   :  { %1955 = vmatpush1.msra.mxu0 %v5378_v18  ;;  %2027 = vmatprep.subr.mxu1 %v5386_v53  ;;  %6610 = vst [vmem:[#allocation53_spill] sm:$0xff] %v5414_v61  ;;  %v5420_v53 = vld [vmem:[#allocation9 + $0x3c8] sm:$0xff] }
 0xa00   :  { %1956 = vmatprep.subr.mxu0 %v5384_v42  ;;  %2028 = vmatpush1.msra.mxu1 %v5392_v34  ;;  %6612 = vst [vmem:[#allocation55_spill] sm:$0xff] %v5420_v53  ;;  %v5426_v34 = vld [vmem:[#allocation9 + $0x3c0] sm:$0xff] }
 0xa01   :  { %1957 = vmatpush1.msra.mxu0 %v5390_v12  ;;  %2029 = vmatprep.subr.mxu1 %v5398_v32  ;;  %6614 = vst [vmem:[#allocation57_spill] sm:$0xff] %v5426_v34  ;;  %v5432_v32 = vld [vmem:[#allocation9 + $0x3a8] sm:$0xff] }
 0xa02   :  { %1958 = vmatprep.subr.mxu0 %v5396_v39  ;;  %2030 = vmatpush1.msra.mxu1 %v5404_v31  ;;  %6616 = vst [vmem:[#allocation59_spill] sm:$0xff] %v5432_v32  ;;  %v5438_v31 = vld [vmem:[#allocation9 + $0x3a0] sm:$0xff] }
 0xa03   :  { %1959 = vmatpush1.msra.mxu0 %v5402_v37  ;;  %2031 = vmatprep.subr.mxu1 %v5410_v30  ;;  %6618 = vst [vmem:[#allocation61_spill] sm:$0xff] %v5438_v31  ;;  %v5444_v30 = vld [vmem:[#allocation9 + $0x388] sm:$0xff] }
 0xa04   :  { %1960 = vmatprep.subr.mxu0 %v5408_v59  ;;  %2032 = vmatpush2.msra.mxu1 %v5416_v54  ;;  %v5440_v59 = vld [vmem:[#allocation9 + $0x3b0] sm:$0xff]  ;;  %6620 = vst [vmem:[#allocation63_spill] sm:$0xff] %v5444_v30  ;;  %v5450_v54 = vld [vmem:[#allocation9 + $0x380] sm:$0xff] }
 0xa05   :  { %1961 = vmatpush2.msra.mxu0 %v5414_v61  ;;  %2033 = vmatprep.subr.mxu1 %v5422_v1  ;;  %6619 = vst [vmem:[#allocation62_spill] sm:$0xff] %v5440_v59  ;;  %v5446_v61 = vld [vmem:[#allocation9 + $0x398] sm:$0xff]  ;;  %6622 = vst [vmem:[#allocation65_spill] sm:$0xff] %v5450_v54  ;;  %v5456_v1 = vld [vmem:[#allocation9 + $0x368] sm:$0xff] }
 0xa06   :  { %1962 = vmatprep.subr.mxu0 %v5420_v53  ;;  %2034 = vmatpush2.msra.mxu1 %v5428_v51  ;;  %6621 = vst [vmem:[#allocation64_spill] sm:$0xff] %v5446_v61  ;;  %v5452_v53 = vld [vmem:[#allocation9 + $0x390] sm:$0xff]  ;;  %6624 = vst [vmem:[#allocation67_spill] sm:$0xff] %v5456_v1  ;;  %v5462_v51 = vld [vmem:[#allocation9 + $0x360] sm:$0xff] }
 0xa07   :  { %1963 = vmatpush2.msra.mxu0 %v5426_v34  ;;  %2035 = vmatprep.subr.mxu1 %v5434_v5  ;;  %6623 = vst [vmem:[#allocation66_spill] sm:$0xff] %v5452_v53  ;;  %v5458_v34 = vld [vmem:[#allocation9 + $0x378] sm:$0xff]  ;;  %6626 = vst [vmem:[#allocation69_spill] sm:$0xff] %v5462_v51  ;;  %v5468_v5 = vld [vmem:[#allocation9 + $0x348] sm:$0xff] }
 0xa08   :  { %1964 = vmatprep.subr.mxu0 %v5432_v32  ;;  %2036 = vmatpush2.msra.mxu1 %v5440_v59  ;;  %6625 = vst [vmem:[#allocation68_spill] sm:$0xff] %v5458_v34  ;;  %v5464_v32 = vld [vmem:[#allocation9 + $0x370] sm:$0xff]  ;;  %6628 = vst [vmem:[#allocation71_spill] sm:$0xff] %v5468_v5  ;;  %v5474_v59 = vld [vmem:[#allocation9 + $0x340] sm:$0xff] }
 0xa09   :  { %1965 = vmatpush2.msra.mxu0 %v5438_v31  ;;  %2037 = vmatprep.subr.mxu1 %v5446_v61  ;;  %6627 = vst [vmem:[#allocation70_spill] sm:$0xff] %v5464_v32  ;;  %v5470_v31 = vld [vmem:[#allocation9 + $0x358] sm:$0xff]  ;;  %6630 = vst [vmem:[#allocation73_spill] sm:$0xff] %v5474_v59  ;;  %v5480_v61 = vld [vmem:[#allocation9 + $0x328] sm:$0xff] }
 0xa0a   :  { %1966 = vmatprep.subr.mxu0 %v5444_v30  ;;  %2038 = vmatpush2.msra.mxu1 %v5452_v53  ;;  %6629 = vst [vmem:[#allocation72_spill] sm:$0xff] %v5470_v31  ;;  %v5476_v30 = vld [vmem:[#allocation9 + $0x350] sm:$0xff]  ;;  %6632 = vst [vmem:[#allocation75_spill] sm:$0xff] %v5480_v61  ;;  %v5486_v53 = vld [vmem:[#allocation9 + $0x320] sm:$0xff] }
 0xa0b   :  { %1967 = vmatpush2.msra.mxu0 %v5450_v54  ;;  %2039 = vmatprep.subr.mxu1 %v5458_v34  ;;  %6631 = vst [vmem:[#allocation74_spill] sm:$0xff] %v5476_v30  ;;  %v5482_v54 = vld [vmem:[#allocation9 + $0x338] sm:$0xff]  ;;  %6634 = vst [vmem:[#allocation77_spill] sm:$0xff] %v5486_v53  ;;  %v5492_v34 = vld [vmem:[#allocation9 + $0x308] sm:$0xff] }
 0xa0c   :  { %1968 = vmatprep.subr.mxu0 %v5456_v1  ;;  %2040 = vmatpush2.msra.mxu1 %v5464_v32  ;;  %6633 = vst [vmem:[#allocation76_spill] sm:$0xff] %v5482_v54  ;;  %v5488_v1 = vld [vmem:[#allocation9 + $0x330] sm:$0xff]  ;;  %6636 = vst [vmem:[#allocation79_spill] sm:$0xff] %v5492_v34  ;;  %v5498_v32 = vld [vmem:[#allocation9 + $0x300] sm:$0xff] }
 0xa0d   :  { %1969 = vmatpush2.msra.mxu0 %v5462_v51  ;;  %2041 = vmatprep.subr.mxu1 %v5470_v31  ;;  %6635 = vst [vmem:[#allocation78_spill] sm:$0xff] %v5488_v1  ;;  %v5494_v51 = vld [vmem:[#allocation9 + $0x318] sm:$0xff]  ;;  %6638 = vst [vmem:[#allocation81_spill] sm:$0xff] %v5498_v32  ;;  %v5504_v31 = vld [vmem:[#allocation9 + $0x2e8] sm:$0xff] }
 0xa0e   :  { %1970 = vmatprep.subr.mxu0 %v5468_v5  ;;  %2042 = vmatpush2.msra.mxu1 %v5476_v30  ;;  %6637 = vst [vmem:[#allocation80_spill] sm:$0xff] %v5494_v51  ;;  %v5500_v5 = vld [vmem:[#allocation9 + $0x310] sm:$0xff]  ;;  %6640 = vst [vmem:[#allocation83_spill] sm:$0xff] %v5504_v31  ;;  %v5510_v30 = vld [vmem:[#allocation9 + $0x2e0] sm:$0xff] }
 0xa0f   :  { %1971 = vmatpush2.msra.mxu0 %v5474_v59  ;;  %2043 = vmatprep.subr.mxu1 %v5482_v54  ;;  %6639 = vst [vmem:[#allocation82_spill] sm:$0xff] %v5500_v5  ;;  %v5506_v59 = vld [vmem:[#allocation9 + $0x2f8] sm:$0xff]  ;;  %6642 = vst [vmem:[#allocation85_spill] sm:$0xff] %v5510_v30  ;;  %v5516_v54 = vld [vmem:[#allocation9 + $0x2c8] sm:$0xff] }
 0xa10   :  { %1972 = vmatprep.subr.mxu0 %v5480_v61  ;;  %2044 = vmatpush2.msra.mxu1 %v5488_v1  ;;  %6641 = vst [vmem:[#allocation84_spill] sm:$0xff] %v5506_v59  ;;  %v5512_v61 = vld [vmem:[#allocation9 + $0x2f0] sm:$0xff]  ;;  %6644 = vst [vmem:[#allocation87_spill] sm:$0xff] %v5516_v54  ;;  %v5522_v1 = vld [vmem:[#allocation9 + $0x2c0] sm:$0xff] }
 0xa11   :  { %1973 = vmatpush2.msra.mxu0 %v5486_v53  ;;  %2045 = vmatprep.subr.mxu1 %v5494_v51  ;;  %6643 = vst [vmem:[#allocation86_spill] sm:$0xff] %v5512_v61  ;;  %v5518_v53 = vld [vmem:[#allocation9 + $0x2d8] sm:$0xff]  ;;  %6646 = vst [vmem:[#allocation89_spill] sm:$0xff] %v5522_v1  ;;  %v5528_v51 = vld [vmem:[#allocation9 + $0x2a8] sm:$0xff] }
 0xa12   :  { %1974 = vmatprep.subr.mxu0 %v5492_v34  ;;  %2046 = vmatpush2.msra.mxu1 %v5500_v5  ;;  %6645 = vst [vmem:[#allocation88_spill] sm:$0xff] %v5518_v53  ;;  %v5524_v34 = vld [vmem:[#allocation9 + $0x2d0] sm:$0xff]  ;;  %6648 = vst [vmem:[#allocation91_spill] sm:$0xff] %v5528_v51  ;;  %v5534_v5 = vld [vmem:[#allocation9 + $0x2a0] sm:$0xff] }
 0xa13   :  { %1975 = vmatpush2.msra.mxu0 %v5498_v32  ;;  %2047 = vmatprep.subr.mxu1 %v5506_v59  ;;  %6647 = vst [vmem:[#allocation90_spill] sm:$0xff] %v5524_v34  ;;  %v5530_v32 = vld [vmem:[#allocation9 + $0x2b8] sm:$0xff]  ;;  %6650 = vst [vmem:[#allocation93_spill] sm:$0xff] %v5534_v5  ;;  %v5540_v59 = vld [vmem:[#allocation9 + $0x288] sm:$0xff] }
 0xa14   :  { %1976 = vmatprep.subr.mxu0 %v5504_v31  ;;  %2048 = vmatpush2.msra.mxu1 %v5512_v61  ;;  %6649 = vst [vmem:[#allocation92_spill] sm:$0xff] %v5530_v32  ;;  %v5536_v31 = vld [vmem:[#allocation9 + $0x2b0] sm:$0xff]  ;;  %6652 = vst [vmem:[#allocation95_spill] sm:$0xff] %v5540_v59  ;;  %v5546_v61 = vld [vmem:[#allocation9 + $0x280] sm:$0xff] }
 0xa15   :  { %1977 = vmatpush2.msra.mxu0 %v5510_v30  ;;  %2049 = vmatprep.subr.mxu1 %v5518_v53  ;;  %6651 = vst [vmem:[#allocation94_spill] sm:$0xff] %v5536_v31  ;;  %v5542_v30 = vld [vmem:[#allocation9 + $0x298] sm:$0xff]  ;;  %6654 = vst [vmem:[#allocation97_spill] sm:$0xff] %v5546_v61  ;;  %v5552_v53 = vld [vmem:[#allocation9 + $0x268] sm:$0xff] }
 0xa16   :  { %1978 = vmatprep.subr.mxu0 %v5516_v54  ;;  %2050 = vmatpush2.msra.mxu1 %v5524_v34  ;;  %6653 = vst [vmem:[#allocation96_spill] sm:$0xff] %v5542_v30  ;;  %v5548_v54 = vld [vmem:[#allocation9 + $0x290] sm:$0xff]  ;;  %6656 = vst [vmem:[#allocation99_spill] sm:$0xff] %v5552_v53  ;;  %v5558_v34 = vld [vmem:[#allocation9 + $0x260] sm:$0xff] }
 0xa17   :  { %1979 = vmatpush2.msra.mxu0 %v5522_v1  ;;  %2051 = vmatprep.subr.mxu1 %v5530_v32  ;;  %6655 = vst [vmem:[#allocation98_spill] sm:$0xff] %v5548_v54  ;;  %v5554_v1 = vld [vmem:[#allocation9 + $0x278] sm:$0xff]  ;;  %6658 = vst [vmem:[#allocation101_spill] sm:$0xff] %v5558_v34  ;;  %v5564_v32 = vld [vmem:[#allocation9 + $0x248] sm:$0xff] }
 0xa18   :  { %1980 = vmatprep.subr.mxu0 %v5528_v51  ;;  %2052 = vmatpush2.msra.mxu1 %v5536_v31  ;;  %6657 = vst [vmem:[#allocation100_spill] sm:$0xff] %v5554_v1  ;;  %v5560_v51 = vld [vmem:[#allocation9 + $0x270] sm:$0xff]  ;;  %6660 = vst [vmem:[#allocation103_spill] sm:$0xff] %v5564_v32 }
 0xa19   :  { %1981 = vmatpush2.msra.mxu0 %v5534_v5  ;;  %2053 = vmatprep.subr.mxu1 %v5542_v30  ;;  %6659 = vst [vmem:[#allocation102_spill] sm:$0xff] %v5560_v51  ;;  %v5566_v5 = vld [vmem:[#allocation9 + $0x258] sm:$0xff]  ;;  %v1890_v30 = vand.u32 65535, %v5214_v57  ;;  %v5588_v57 = vld [vmem:[#allocation9 + $0x220] sm:$0xff] }
 0xa1a   :  { %1982 = vmatprep.subr.mxu0 %v5540_v59  ;;  %2054 = vmatpush2.msra.mxu1 %v5548_v54  ;;  %6661 = vst [vmem:[#allocation104_spill] sm:$0xff] %v5566_v5  ;;  %v5576_v59 = vld [vmem:[#allocation9 + $0x240] sm:$0xff]  ;;  %6666 = vst [vmem:[#allocation109_spill] sm:$0xff] %v5588_v57 }
 0xa1b   :  { %1983 = vmatpush2.msra.mxu0 %v5546_v61  ;;  %2055 = vmatprep.subr.mxu1 %v5554_v1  ;;  %v1892_v54 = vcvt.s32.f32 %v1890_v30  ;;  %6662 = vst [vmem:[#allocation105_spill] sm:$0xff] %v5576_v59  ;;  %v5584_v1 = vld [vmem:[#allocation9 + $0x238] sm:$0xff] }
 0xa1c   :  { %1984 = vmatprep.subr.mxu0 %v5552_v53  ;;  %2056 = vmatpush2.msra.mxu1 %v5560_v51  ;;  %v5578_v53 = vld [vmem:[#allocation9 + $0x250] sm:$0xff]  ;;  %v5582_v51 = vld [vmem:[#allocation9 + $0x228] sm:$0xff]  ;;  %6665 = vst [vmem:[#allocation108_spill] sm:$0xff] %v5584_v1  ;;  %v5596_v30 = vld [vmem:[#allocation9 + $0x218] sm:$0xff] }
 0xa1d   :  { %1985 = vmatpush2.msra.mxu0 %v5558_v34  ;;  %2057 = vmatprep.subr.mxu1 %v5566_v5  ;;  %6663 = vst [vmem:[#allocation106_spill] sm:$0xff] %v5578_v53  ;;  %6664 = vst [vmem:[#allocation107_spill] sm:$0xff] %v5582_v51 }
 0xa1e   :  { %1986 = vmatprep.subr.mxu0 %v5564_v32  ;;  %2058 = vmatpush2.msra.mxu1 %v5578_v53  ;;  %6669 = vst [vmem:[#allocation112_spill] sm:$0xff] %v5596_v30  ;;  %v5602_v53 = vld [vmem:[#allocation9 + $0x210] sm:$0xff] }
 0xa1f   :  { %1987 = vmatpush2.msra.mxu0 %v5576_v59  ;;  %2059 = vmatprep.subr.mxu1 %v5584_v1  ;;  %6671 = vst [vmem:[#allocation114_spill] sm:$0xff] %v5602_v53 }
 0xa20   :  { %1988 = vmatprep.subr.mxu0 %v5582_v51 }
 0xa21   :  { %1989 = vmatpush2.msra.mxu0 %v5588_v57 }
 0xa81   :  { %v1895_v31 = vpop.xlane.xlu0 %1894 }
 0xa82   :  { %vm1896_vm4 = vcmp.eq.f32.partialorder %v5217_v48, %v1895_v31  ;;  %v5590_v48 = vld [vmem:[#allocation9 + $0x230] sm:$0xff] }
 0xa83   :  { %v1897_v61 = vsel %vm1896_vm4, %v1892_v54, inf  ;;  %6667 = vst [vmem:[#allocation110_spill] sm:$0xff] %v5590_v48  ;;  %2060 = vmatpush2.msra.mxu1 %v5590_v48  ;;  %v5594_v54 = vld [vmem:[#allocation9 + $0x208] sm:$0xff]  ;;  %v1901_v48 = vcvt.f32.s32 %v1895_v31  ;;  %v6692_v31 = vld [vmem:[#allocation91_spill] sm:$0xff] }
 0xa84   :  { %1898 = vmin.xlane.f32.xlu1 %v1897_v61  ;;  %6668 = vst [vmem:[#allocation111_spill] sm:$0xff] %v5594_v54  ;;  %1990 = vmatprep.subr.mxu0 %v5594_v54  ;;  %v5600_v61 = vld [vmem:[#allocation9 + $0x200] sm:$0xff] }
 0xa85   :  { %2061 = vmatprep.subr.mxu1 %v5596_v30  ;;  %6670 = vst [vmem:[#allocation113_spill] sm:$0xff] %v5600_v61  ;;  %1991 = vmatpush2.msra.mxu0 %v5600_v61  ;;  %v1902_v5 = vshll.u32 %v1901_v48, 16  ;;  %v6495_v30 = vmov 1.0   ;;  %v6694_v48 = vld [vmem:[#allocation95_spill] sm:$0xff] }
 0xa86   :  { %2062 = vmatpush2.msra.mxu1 %v5602_v53  ;;  %3637 = vmatprep.subr.mxu0 %v6540_v0 }
 0xa87   :  { %2215 = vmatprep.subr.mxu1 %v5220_v4 }
 0xb0d   :  { %v1899_v1 = vpop.xlane.xlu1 %1898 }
 0xb0e   :  { %v1900_v57 = vcvt.f32.s32 %v1899_v1  ;;  %v6691_v1 = vld [vmem:[#allocation89_spill] sm:$0xff] }
 0xb10   :  { %v1903_v51 = vadd.s32 %v1902_v5, %v1900_v57  ;;  %v6688_v5 = vld [vmem:[#allocation83_spill] sm:$0xff]  ;;  %v6693_v57 = vld [vmem:[#allocation93_spill] sm:$0xff] }
 0xb12   :  { %vm1904_vm5 = vcmp.eq.s32.totalorder %v5206_v60, %v1903_v51  ;;  %v6690_v51 = vld [vmem:[#allocation87_spill] sm:$0xff] }
 0xb13   :  { %3072 = vmatmul.mubr.msk.f32.vlgmr.msra.gmra.mxu0 %vm1904_vm5, %v6495_v30  ;;  %3073 = vmatmul.mubr.msk.f32.vlgmr.msra.gmra.mxu1 %vm1904_vm5, %v6495_v30  ;;  %v6695_v30 = vld [vmem:[#allocation97_spill] sm:$0xff] }
 0xb14   :  { %3638 = vmatpush3.msra.mxu0 %v5122_v52  ;;  %3669 = vmatprep.mubr.msk.f32.mxu0 %vm4222_vm0, %v6540_v0  ;;  %v6672_v52 = vld [vmem:[#allocation51_spill] sm:$0xff] }
 0xb15   :  { %3639 = vmatprep.subr.mxu0 %v6540_v0  ;;  %2216 = vmatpush1.msra.mxu1 %v5224_v50 }
 0xb16   :  { %3640 = vmatpush3.msra.mxu0 %v5126_v9  ;;  %2217 = vmatprep.subr.mxu1 %v5230_v56  ;;  %v6673_v9 = vld [vmem:[#allocation53_spill] sm:$0xff] }
 0xb17   :  { %3641 = vmatprep.subr.mxu0 %v6540_v0  ;;  %2218 = vmatpush1.msra.mxu1 %v5236_v58 }
 0xb18   :  { %3642 = vmatpush3.msra.mxu0 %v5130_v10  ;;  %2219 = vmatprep.subr.mxu1 %v5240_v25  ;;  %v6674_v10 = vld [vmem:[#allocation55_spill] sm:$0xff] }
 0xb19   :  { %3643 = vmatprep.subr.mxu0 %v6540_v0  ;;  %2220 = vmatpush1.msra.mxu1 %v5246_v28 }
 0xb1a   :  { %3644 = vmatpush3.msra.mxu0 %v5134_v13  ;;  %2221 = vmatprep.subr.mxu1 %v5252_v29  ;;  %v6675_v13 = vld [vmem:[#allocation57_spill] sm:$0xff] }
 0xb1b   :  { %3645 = vmatprep.subr.mxu0 %v6540_v0  ;;  %2222 = vmatpush1.msra.mxu1 %v5258_v33 }
 0xb1c   :  { %3646 = vmatpush3.msra.mxu0 %v5138_v14  ;;  %2223 = vmatprep.subr.mxu1 %v5264_v35  ;;  %v6676_v14 = vld [vmem:[#allocation59_spill] sm:$0xff] }
 0xb1d   :  { %3647 = vmatprep.subr.mxu0 %v6540_v0  ;;  %2224 = vmatpush1.msra.mxu1 %v5270_v49 }
 0xb1e   :  { %3648 = vmatpush3.msra.mxu0 %v5142_v15  ;;  %2225 = vmatprep.subr.mxu1 %v5276_v3  ;;  %v6677_v15 = vld [vmem:[#allocation61_spill] sm:$0xff] }
 0xb1f   :  { %3649 = vmatprep.subr.mxu0 %v6540_v0  ;;  %2226 = vmatpush1.msra.mxu1 %v5282_v36 }
 0xb20   :  { %3650 = vmatpush3.msra.mxu0 %v5146_v16  ;;  %2227 = vmatprep.subr.mxu1 %v5288_v38  ;;  %v6678_v16 = vld [vmem:[#allocation63_spill] sm:$0xff] }
 0xb21   :  { %3651 = vmatprep.subr.mxu0 %v6540_v0  ;;  %2228 = vmatpush1.msra.mxu1 %v5294_v40 }
 0xb22   :  { %3652 = vmatpush3.msra.mxu0 %v5148_v17  ;;  %2229 = vmatprep.subr.mxu1 %v5300_v41  ;;  %v6679_v17 = vld [vmem:[#allocation65_spill] sm:$0xff] }
 0xb23   :  { %3653 = vmatprep.subr.mxu0 %v6540_v0  ;;  %2230 = vmatpush1.msra.mxu1 %v5306_v43 }
 0xb24   :  { %3654 = vmatpush3.msra.mxu0 %v5152_v19  ;;  %2231 = vmatprep.subr.mxu1 %v5312_v44  ;;  %v6680_v19 = vld [vmem:[#allocation67_spill] sm:$0xff] }
 0xb25   :  { %3655 = vmatprep.subr.mxu0 %v6540_v0  ;;  %2232 = vmatpush1.msra.mxu1 %v5318_v6 }
 0xb26   :  { %3656 = vmatpush3.msra.mxu0 %v5156_v20  ;;  %2233 = vmatprep.subr.mxu1 %v5324_v46  ;;  %v6681_v20 = vld [vmem:[#allocation69_spill] sm:$0xff] }
 0xb27   :  { %3657 = vmatprep.subr.mxu0 %v6540_v0  ;;  %2234 = vmatpush1.msra.mxu1 %v5330_v47 }
 0xb28   :  { %3658 = vmatpush3.msra.mxu0 %v5160_v21  ;;  %2235 = vmatprep.subr.mxu1 %v5336_v7  ;;  %v6682_v21 = vld [vmem:[#allocation71_spill] sm:$0xff] }
 0xb29   :  { %3659 = vmatprep.subr.mxu0 %v6540_v0  ;;  %2236 = vmatpush1.msra.mxu1 %v5342_v26 }
 0xb2a   :  { %3660 = vmatpush3.msra.mxu0 %v5164_v22  ;;  %2237 = vmatprep.subr.mxu1 %v5348_v45  ;;  %v6683_v22 = vld [vmem:[#allocation73_spill] sm:$0xff] }
 0xb2b   :  { %3661 = vmatprep.subr.mxu0 %v6540_v0  ;;  %2238 = vmatpush1.msra.mxu1 %v5354_v8 }
 0xb2c   :  { %3662 = vmatpush3.msra.mxu0 %v5168_v23  ;;  %2239 = vmatprep.subr.mxu1 %v5360_v2  ;;  %v6684_v23 = vld [vmem:[#allocation75_spill] sm:$0xff] }
 0xb2d   :  { %3663 = vmatprep.subr.mxu0 %v6540_v0  ;;  %2240 = vmatpush1.msra.mxu1 %v5366_v63 }
 0xb2e   :  { %3664 = vmatpush3.msra.mxu0 %v5172_v24  ;;  %2241 = vmatprep.subr.mxu1 %v5372_v62  ;;  %v6685_v24 = vld [vmem:[#allocation77_spill] sm:$0xff] }
 0xb2f   :  { %3665 = vmatprep.subr.mxu0 %v6540_v0  ;;  %2242 = vmatpush1.msra.mxu1 %v5378_v18 }
 0xb30   :  { %3666 = vmatpush3.msra.mxu0 %v5176_v27  ;;  %2243 = vmatprep.subr.mxu1 %v5384_v42  ;;  %v6686_v27 = vld [vmem:[#allocation79_spill] sm:$0xff] }
 0xb31   :  { %3667 = vmatprep.subr.mxu0 %v6540_v0  ;;  %2244 = vmatpush1.msra.mxu1 %v5390_v12 }
 0xb32   :  { %3668 = vmatpush3.msra.mxu0 %v5180_v11  ;;  %2245 = vmatprep.subr.mxu1 %v5396_v39  ;;  %v6687_v11 = vld [vmem:[#allocation81_spill] sm:$0xff] }
 0xb33   :  { %2286 = vmatprep.subr.mxu0 %v5222_v55  ;;  %2246 = vmatpush1.msra.mxu1 %v5402_v37  ;;  %v6689_v55 = vld [vmem:[#allocation85_spill] sm:$0xff] }
 0xb34   :  { %2247 = vmatprep.subr.mxu1 %v6672_v52 }
 0xb35   :  { %2248 = vmatpush2.msra.mxu1 %v6673_v9 }
 0xb36   :  { %2249 = vmatprep.subr.mxu1 %v6674_v10 }
 0xb37   :  { %2250 = vmatpush2.msra.mxu1 %v6675_v13 }
 0xb38   :  { %2251 = vmatprep.subr.mxu1 %v6676_v14 }
 0xb39   :  { %2252 = vmatpush2.msra.mxu1 %v6677_v15 }
 0xb3a   :  { %2253 = vmatprep.subr.mxu1 %v6678_v16 }
 0xb3b   :  { %2254 = vmatpush2.msra.mxu1 %v6679_v17 }
 0xb3c   :  { %2255 = vmatprep.subr.mxu1 %v6680_v19 }
 0xb3d   :  { %2256 = vmatpush2.msra.mxu1 %v6681_v20 }
 0xb3e   :  { %2257 = vmatprep.subr.mxu1 %v6682_v21 }
 0xb3f   :  { %2258 = vmatpush2.msra.mxu1 %v6683_v22 }
 0xb40   :  { %2259 = vmatprep.subr.mxu1 %v6684_v23 }
 0xb41   :  { %2260 = vmatpush2.msra.mxu1 %v6685_v24  ;;  %v6696_v24 = vld [vmem:[#allocation99_spill] sm:$0xff] }
 0xb42   :  { %2261 = vmatprep.subr.mxu1 %v6686_v27 }
 0xb43   :  { %2262 = vmatpush2.msra.mxu1 %v6687_v11 }
 0xb44   :  { %2263 = vmatprep.subr.mxu1 %v6688_v5 }
 0xb45   :  { %2264 = vmatpush2.msra.mxu1 %v6689_v55  ;;  %v6697_v55 = vld [vmem:[#allocation107_spill] sm:$0xff] }
 0xb46   :  { %2265 = vmatprep.subr.mxu1 %v6690_v51  ;;  %v6698_v51 = vld [vmem:[#allocation109_spill] sm:$0xff] }
 0xb47   :  { %2266 = vmatpush2.msra.mxu1 %v6691_v1 }
 0xb48   :  { %2267 = vmatprep.subr.mxu1 %v6692_v31 }
 0xb49   :  { %2268 = vmatpush2.msra.mxu1 %v6693_v57 }
 0xb4a   :  { %2269 = vmatprep.subr.mxu1 %v6694_v48  ;;  %v6699_v48 = vlaneseq }
 0xb4b   :  { %2270 = vmatpush2.msra.mxu1 %v6695_v30 }
 0xb4c   :  { %2271 = vmatprep.subr.mxu1 %v6696_v24  ;;  %v5710_v30 = vshrl.u32 %v6699_v48, 7 }
 0xb4d   :  { %2272 = vmatpush2.msra.mxu1 %v5558_v34 }
 0xb4e   :  { %2273 = vmatprep.subr.mxu1 %v5564_v32  ;;  %6700 = vst [vmem:[#allocation51_spill] sm:$0xff] %v5710_v30  ;;  %v1910_v24 = vsub.s32 0, %v5710_v30  ;;  %v298_v32 = vld [vmem:[%s6318_s7] sm:$0xf]  ;;  %v1922_v1 = vsub.s32 3, %v5710_v30  ;;  %v1918_v11 = vsub.s32 2, %v5710_v30 }
 0xb4f   :  { %2274 = vmatpush2.msra.mxu1 %v5576_v59 }
 0xb50   :  { %2275 = vmatprep.subr.mxu1 %v6697_v55  ;;  %v5716_v59 = vrot.slane %v298_v32, %v1910_v24  ;;  %v1914_v55 = vsub.s32 1, %v5710_v30  ;;  %v5725_v24 = vrot.slane %v298_v32, %v1922_v1  ;;  %v5727_v22 = vrot.slane %v298_v32, %v1918_v11  ;;  %v6703_v1 = vld [vmem:[#allocation16_spill] sm:$0xff]  ;;  %v6713_v11 = vld [vmem:[#allocation29_spill] sm:$0xff] }
 0xb51   :  { %2276 = vmatpush2.msra.mxu1 %v6698_v51 }
 0xb52   :  { %2277 = vmatprep.subr.mxu1 %v5594_v54  ;;  %6701 = vst [vmem:[#allocation53_spill] sm:$0xff] %v5716_v59 }
 0xb53   :  { %2278 = vmatpush2.msra.mxu1 %v5600_v61  ;;  %v5720_v61 = vrot.slane %v298_v32, %v1914_v55  ;;  %v6704_v32 = vld [vmem:[#allocation24_spill] sm:$0xff] }
 0xb54   :  { %3672 = vmatprep.subr.mxu1 %v6540_v0 }
 0xb55   :  { %6702 = vst [vmem:[#allocation55_spill] sm:$0xff] %v5720_v61 }
 0xbd3   :  { %v1994_v51 = vpop.f32.mrf.mxu0  ;;  %v2065_v5 = vpop.f32.mrf.mxu1 }
 0xbd4   :  { %v1995_v54 = vadd.f32 %v1994_v51, %v5716_v59 }
 0xbd5   :  { %v1996_v57 = vpop.f32.mrf.mxu0  ;;  %v2067_v23 = vpop.f32.mrf.mxu1 }
 0xbd6   :  { %v2070_v34 = vmul.f32 0.5, %v1995_v54  ;;  %v1997_v48 = vadd.f32 %v1996_v57, %v5720_v61  ;;  %v2068_v55 = vadd.f32 %v2067_v23, %v5725_v24  ;;  %v6705_v23 = vld [vmem:[#allocation17_spill] sm:$0xff] }
 0xbd8   :  { %3843 = vtanh.f32 %v2070_v34  ;;  %v2074_v31 = vmul.f32 0.5, %v1997_v48  ;;  %v2066_v34 = vadd.f32 %v2065_v5, %v5727_v22  ;;  %v6714_v5 = vld [vmem:[#allocation30_spill] sm:$0xff] }
 0xbda   :  { %3845 = vtanh.f32 %v2074_v31 }
 0xbe5   :  { %v3844_v27 = vpop.eup %3843 }
 0xbe6   :  { %v2072_v54 = vmul.f32 0.5, %v3844_v27  ;;  %v6706_v27 = vld [vmem:[#allocation18_spill] sm:$0xff] }
 0xbe7   :  { %v3846_v61 = vpop.eup %3845 }
 0xbe8   :  { %v2073_v51 = vadd.f32 0.5, %v2072_v54  ;;  %v2076_v59 = vmul.f32 0.5, %v3846_v61  ;;  %v6708_v61 = vld [vmem:[#allocation20_spill] sm:$0xff]  ;;  %v6715_v54 = vld [vmem:[#allocation31_spill] sm:$0xff] }
 0xbea   :  { %v2078_v57 = vmul.f32 %v2073_v51, %v2068_v55  ;;  %v2077_v21 = vadd.f32 0.5, %v2076_v59  ;;  %v6707_v59 = vld [vmem:[#allocation19_spill] sm:$0xff]  ;;  %v6716_v55 = vld [vmem:[#allocation32_spill] sm:$0xff]  ;;  %v6717_v51 = vld [vmem:[#allocation33_spill] sm:$0xff] }
 0xbec   :  { %v2079_v48 = vadd.f32 %v2078_v57, %v2066_v34  ;;  %v2081_v30 = vsub.f32 1.0, %v2077_v21  ;;  %v2083_v20 = vmul.f32 %v2077_v21, %v6703_v1  ;;  %v6709_v21 = vld [vmem:[#allocation25_spill] sm:$0xff]  ;;  %v6718_v34 = vld [vmem:[#allocation34_spill] sm:$0xff]  ;;  %v6719_v57 = vld [vmem:[#allocation35_spill] sm:$0xff] }
 0xbed   :  { %v6722_v1 = vld [vmem:[#allocation38_spill] sm:$0xff] }
 0xbee   :  { %3847 = vtanh.f32 %v2079_v48  ;;  %v6720_v48 = vld [vmem:[#allocation36_spill] sm:$0xff] }
 0xbfb   :  { %v3848_v31 = vpop.eup %3847 }
 0xbfc   :  { %v2082_v19 = vmul.f32 %v3848_v31, %v2081_v30  ;;  %v6710_v30 = vld [vmem:[#allocation26_spill] sm:$0xff]  ;;  %v6721_v31 = vld [vmem:[#allocation37_spill] sm:$0xff] }
 0xbfe   :  { %v5732_v17 = vadd.f32 %v2083_v20, %v2082_v19  ;;  %v6711_v19 = vld [vmem:[#allocation27_spill] sm:$0xff]  ;;  %v6712_v20 = vld [vmem:[#allocation28_spill] sm:$0xff] }
 0xc00   :  { %3670 = vmatmul.mubr.f32.vlgmr.msra.gmra.mxu0 %v5732_v17  ;;  %2279 = vmatprep.mubr.f32.mxu1 %v5732_v17 }
 0xc01   :  { %2350 = vmatprep.mubr.f32.mxu0 %v5732_v17  ;;  %2287 = vmatpush1.msra.mxu0 %v6704_v32  ;;  %v6723_v32 = vld [vmem:[#allocation39_spill] sm:$0xff] }
 0xc02   :  { %2288 = vmatprep.subr.mxu0 %v6705_v23  ;;  %v6724_v23 = vld [vmem:[#allocation40_spill] sm:$0xff] }
 0xc03   :  { %2289 = vmatpush1.msra.mxu0 %v6706_v27  ;;  %v6725_v27 = vld [vmem:[#allocation41_spill] sm:$0xff] }
 0xc04   :  { %2290 = vmatprep.subr.mxu0 %v6707_v59  ;;  %v6726_v59 = vld [vmem:[#allocation42_spill] sm:$0xff] }
 0xc05   :  { %2291 = vmatpush1.msra.mxu0 %v6708_v61  ;;  %v6727_v61 = vld [vmem:[#allocation43_spill] sm:$0xff] }
 0xc06   :  { %2292 = vmatprep.subr.mxu0 %v6709_v21  ;;  %v6728_v21 = vld [vmem:[#allocation44_spill] sm:$0xff] }
 0xc07   :  { %2293 = vmatpush1.msra.mxu0 %v6710_v30  ;;  %v6729_v30 = vld [vmem:[#allocation45_spill] sm:$0xff] }
 0xc08   :  { %2294 = vmatprep.subr.mxu0 %v6711_v19  ;;  %v6730_v19 = vld [vmem:[#allocation46_spill] sm:$0xff] }
 0xc09   :  { %2295 = vmatpush1.msra.mxu0 %v6712_v20  ;;  %v6731_v20 = vld [vmem:[#allocation47_spill] sm:$0xff] }
 0xc0a   :  { %2296 = vmatprep.subr.mxu0 %v6713_v11  ;;  %v6732_v11 = vld [vmem:[#allocation48_spill] sm:$0xff] }
 0xc0b   :  { %2297 = vmatpush1.msra.mxu0 %v6714_v5  ;;  %v6733_v5 = vld [vmem:[#allocation49_spill] sm:$0xff] }
 0xc0c   :  { %2298 = vmatprep.subr.mxu0 %v6715_v54  ;;  %v6734_v54 = vld [vmem:[#allocation50_spill] sm:$0xff] }
 0xc0d   :  { %2299 = vmatpush1.msra.mxu0 %v6716_v55  ;;  %v6735_v55 = vld [vmem:[#allocation52_spill] sm:$0xff] }
 0xc0e   :  { %2300 = vmatprep.subr.mxu0 %v6717_v51  ;;  %v6736_v51 = vld [vmem:[#allocation54_spill] sm:$0xff] }
 0xc0f   :  { %2301 = vmatpush1.msra.mxu0 %v6718_v34  ;;  %v6737_v34 = vld [vmem:[#allocation56_spill] sm:$0xff] }
 0xc10   :  { %2302 = vmatprep.subr.mxu0 %v6719_v57  ;;  %v6738_v57 = vld [vmem:[#allocation58_spill] sm:$0xff] }
 0xc11   :  { %2303 = vmatpush1.msra.mxu0 %v6720_v48  ;;  %v6739_v48 = vld [vmem:[#allocation60_spill] sm:$0xff] }
 0xc12   :  { %2304 = vmatprep.subr.mxu0 %v6721_v31  ;;  %v6740_v31 = vld [vmem:[#allocation62_spill] sm:$0xff] }
 0xc13   :  { %2305 = vmatpush1.msra.mxu0 %v6722_v1  ;;  %v6741_v1 = vld [vmem:[#allocation64_spill] sm:$0xff] }
 0xc14   :  { %2306 = vmatprep.subr.mxu0 %v6723_v32  ;;  %v6742_v32 = vld [vmem:[#allocation66_spill] sm:$0xff] }
 0xc15   :  { %2307 = vmatpush1.msra.mxu0 %v6724_v23  ;;  %v6743_v23 = vld [vmem:[#allocation68_spill] sm:$0xff] }
 0xc16   :  { %2308 = vmatprep.subr.mxu0 %v6725_v27  ;;  %v6744_v27 = vld [vmem:[#allocation70_spill] sm:$0xff] }
 0xc17   :  { %2309 = vmatpush1.msra.mxu0 %v6726_v59  ;;  %v6745_v59 = vld [vmem:[#allocation72_spill] sm:$0xff] }
 0xc18   :  { %2310 = vmatprep.subr.mxu0 %v6727_v61  ;;  %v6746_v61 = vld [vmem:[#allocation74_spill] sm:$0xff] }
 0xc19   :  { %2311 = vmatpush1.msra.mxu0 %v6728_v21  ;;  %v6747_v21 = vld [vmem:[#allocation76_spill] sm:$0xff] }
 0xc1a   :  { %2312 = vmatprep.subr.mxu0 %v6729_v30  ;;  %v6748_v30 = vld [vmem:[#allocation78_spill] sm:$0xff] }
 0xc1b   :  { %2313 = vmatpush1.msra.mxu0 %v6730_v19  ;;  %v6749_v19 = vld [vmem:[#allocation80_spill] sm:$0xff] }
 0xc1c   :  { %2314 = vmatprep.subr.mxu0 %v6731_v20  ;;  %v6750_v20 = vld [vmem:[#allocation82_spill] sm:$0xff] }
 0xc1d   :  { %2315 = vmatpush1.msra.mxu0 %v6732_v11  ;;  %v6751_v11 = vld [vmem:[#allocation84_spill] sm:$0xff] }
 0xc1e   :  { %2316 = vmatprep.subr.mxu0 %v6733_v5  ;;  %v6752_v5 = vld [vmem:[#allocation86_spill] sm:$0xff] }
 0xc1f   :  { %2317 = vmatpush1.msra.mxu0 %v6734_v54  ;;  %v6753_v54 = vld [vmem:[#allocation88_spill] sm:$0xff] }
 0xc20   :  { %2318 = vmatprep.subr.mxu0 %v6735_v55  ;;  %v6754_v55 = vld [vmem:[#allocation90_spill] sm:$0xff] }
 0xc21   :  { %2319 = vmatpush2.msra.mxu0 %v6736_v51  ;;  %v6755_v51 = vld [vmem:[#allocation92_spill] sm:$0xff] }
 0xc22   :  { %2320 = vmatprep.subr.mxu0 %v6737_v34  ;;  %v6756_v34 = vld [vmem:[#allocation94_spill] sm:$0xff] }
 0xc23   :  { %2321 = vmatpush2.msra.mxu0 %v6738_v57  ;;  %v6757_v57 = vld [vmem:[#allocation96_spill] sm:$0xff] }
 0xc24   :  { %2322 = vmatprep.subr.mxu0 %v6739_v48  ;;  %v6758_v48 = vld [vmem:[#allocation98_spill] sm:$0xff] }
 0xc25   :  { %2323 = vmatpush2.msra.mxu0 %v6740_v31  ;;  %v6759_v31 = vld [vmem:[#allocation100_spill] sm:$0xff] }
 0xc26   :  { %2324 = vmatprep.subr.mxu0 %v6741_v1  ;;  %v6760_v1 = vld [vmem:[#allocation102_spill] sm:$0xff] }
 0xc27   :  { %2325 = vmatpush2.msra.mxu0 %v6742_v32 }
 0xc28   :  { %2326 = vmatprep.subr.mxu0 %v6743_v23 }
 0xc29   :  { %2327 = vmatpush2.msra.mxu0 %v6744_v27 }
 0xc2a   :  { %2328 = vmatprep.subr.mxu0 %v6745_v59 }
 0xc2b   :  { %2329 = vmatpush2.msra.mxu0 %v6746_v61 }
 0xc2c   :  { %2330 = vmatprep.subr.mxu0 %v6747_v21 }
 0xc2d   :  { %2331 = vmatpush2.msra.mxu0 %v6748_v30 }
 0xc2e   :  { %2332 = vmatprep.subr.mxu0 %v6749_v19 }
 0xc2f   :  { %2333 = vmatpush2.msra.mxu0 %v6750_v20  ;;  %v6761_v20 = vld [vmem:[#allocation104_spill] sm:$0xff] }
 0xc30   :  { %2334 = vmatprep.subr.mxu0 %v6751_v11  ;;  %v6762_v11 = vld [vmem:[#allocation106_spill] sm:$0xff] }
 0xc31   :  { %2335 = vmatpush2.msra.mxu0 %v6752_v5  ;;  %v6763_v5 = vld [vmem:[#allocation108_spill] sm:$0xff] }
 0xc32   :  { %2336 = vmatprep.subr.mxu0 %v6753_v54  ;;  %v6764_v54 = vld [vmem:[#allocation110_spill] sm:$0xff] }
 0xc33   :  { %2337 = vmatpush2.msra.mxu0 %v6754_v55  ;;  %v6765_v55 = vld [vmem:[#allocation112_spill] sm:$0xff] }
 0xc34   :  { %2338 = vmatprep.subr.mxu0 %v6755_v51 }
 0xc35   :  { %2339 = vmatpush2.msra.mxu0 %v6756_v34 }
 0xc36   :  { %2340 = vmatprep.subr.mxu0 %v6757_v57 }
 0xc37   :  { %2341 = vmatpush2.msra.mxu0 %v6758_v48  ;;  %v6766_v48 = vld [vmem:[#allocation21_spill] sm:$0xff] }
 0xc38   :  { %2342 = vmatprep.subr.mxu0 %v6759_v31 }
 0xc39   :  { %2343 = vmatpush2.msra.mxu0 %v6760_v1 }
 0xc3a   :  { %2344 = vmatprep.subr.mxu0 %v6761_v20 }
 0xc3b   :  { %2345 = vmatpush2.msra.mxu0 %v6762_v11 }
 0xc3c   :  { %2346 = vmatprep.subr.mxu0 %v6763_v5 }
 0xc3d   :  { %2347 = vmatpush2.msra.mxu0 %v6764_v54 }
 0xc3e   :  { %2348 = vmatprep.subr.mxu0 %v6765_v55 }
 0xc3f   :  { %2349 = vmatpush2.msra.mxu0 %v5602_v53 }
 0xc40   :  { %2502 = vmatprep.subr.mxu0 %v5220_v4 }
 0xcc0   :  { %v2151_v57 = vpop.f32.mrf.mxu0 }
 0xcc1   :  { %v5802_v34 = vadd.f32 %v6766_v48, %v2151_v57 }
 0xcc2   :  { %v3671_v31 = vpop.f32.mrf.mxu0 }
 0xcc3   :  { %6767 = vst [vmem:[#allocation57_spill] sm:$0xff] %v5802_v34  ;;  %v2155_v20 = vsel %vm330_vm1, %v5802_v34, -inf }
 0xcc4   :  { %2156 = vmax.xlane.f32.xlu1 %v2155_v20 }
 0xd4d   :  { %v5806_v11 = vpop.xlane.xlu1 %2156 }
 0xd4e   :  { %6768 = vst [vmem:[#allocation59_spill] sm:$0xff] %v5806_v11  ;;  %vm2195_vm6 = vcmp.eq.f32.partialorder %v5802_v34, %v5806_v11  ;;  %v6769_v34 = vmov 1.0   ;;  %v6053_v11 = vld [vmem:[#allocation9 + $0x3f0] sm:$0xff] }
 0xd4f   :  { %v2196_v55 = vsel %vm2195_vm6, %v5206_v60, 128  ;;  %6807 = vst [vmem:[#allocation27_spill] sm:$0xff] %v6053_v11 }
 0xd50   :  { %v2197_v53 = vsel %vm330_vm1, %v2196_v55, 2147483647  ;;  %v5815_v55 = vld [vmem:[#allocation10 + $0x78] sm:$0xff] }
 0xd51   :  { %v2199_v54 = vshra.s32 %v2197_v53, 16  ;;  %v2198_v5 = vand.u32 65535, %v2197_v53  ;;  %v5822_v53 = vld [vmem:[#allocation10 + $0x70] sm:$0xff] }
 0xd53   :  { %v2201_v4 = vcvt.s32.f32 %v2199_v54  ;;  %v2200_v48 = vcvt.s32.f32 %v2198_v5  ;;  %v6797_v54 = vld [vmem:[#allocation53_spill] sm:$0xff] }
 0xd55   :  { %2202 = vmin.xlane.f32.xlu0 %v2201_v4 }
 0xdde   :  { %v2203_v57 = vpop.xlane.xlu0 %2202 }
 0xddf   :  { %vm2204_vm7 = vcmp.eq.f32.partialorder %v2201_v4, %v2203_v57  ;;  %v2209_v1 = vcvt.f32.s32 %v2203_v57  ;;  %v6798_v57 = vld [vmem:[#allocation55_spill] sm:$0xff] }
 0xde0   :  { %v2205_v31 = vsel %vm2204_vm7, %v2200_v48, inf }
 0xde1   :  { %2206 = vmin.xlane.f32.xlu1 %v2205_v31  ;;  %v2210_v51 = vshll.u32 %v2209_v1, 16 }
 0xe6a   :  { %v2207_v20 = vpop.xlane.xlu1 %2206 }
 0xe6b   :  { %v2208_v19 = vcvt.f32.s32 %v2207_v20 }
 0xe6d   :  { %v2211_v30 = vadd.s32 %v2210_v51, %v2208_v19  ;;  %v6796_v19 = vld [vmem:[#allocation113_spill] sm:$0xff] }
 0xe6f   :  { %vm2212_vm8 = vcmp.eq.s32.totalorder %v5206_v60, %v2211_v30  ;;  %v5828_v30 = vld [vmem:[#allocation10 + $0x68] sm:$0xff] }
 0xe70   :  { %3077 = vmatmul.mubr.msk.f32.vlgmr.msra.gmra.mxu1 %vm2212_vm8, %v6769_v34  ;;  %3078 = vmatmul.mubr.msk.f32.vlgmr.msra.gmra.mxu0 %vm2212_vm8, %v6769_v34 }
 0xe71   :  { %3673 = vmatpush3.msra.mxu1 %v5815_v55  ;;  %3704 = vmatprep.mubr.msk.f32.mxu1 %vm4222_vm0, %v6540_v0 }
 0xe72   :  { %3674 = vmatprep.subr.mxu1 %v6540_v0  ;;  %2503 = vmatpush1.msra.mxu0 %v5224_v50  ;;  %v5834_v50 = vld [vmem:[#allocation10 + $0x60] sm:$0xff] }
 0xe73   :  { %3675 = vmatpush3.msra.mxu1 %v5822_v53  ;;  %2504 = vmatprep.subr.mxu0 %v5230_v56  ;;  %v5840_v56 = vld [vmem:[#allocation10 + $0x58] sm:$0xff] }
 0xe74   :  { %3676 = vmatprep.subr.mxu1 %v6540_v0  ;;  %2505 = vmatpush1.msra.mxu0 %v5236_v58  ;;  %v5846_v58 = vld [vmem:[#allocation10 + $0x50] sm:$0xff] }
 0xe75   :  { %3677 = vmatpush3.msra.mxu1 %v5828_v30  ;;  %2506 = vmatprep.subr.mxu0 %v5240_v25  ;;  %v5852_v25 = vld [vmem:[#allocation10 + $0x48] sm:$0xff] }
 0xe76   :  { %3678 = vmatprep.subr.mxu1 %v6540_v0  ;;  %2507 = vmatpush1.msra.mxu0 %v5246_v28  ;;  %v5858_v28 = vld [vmem:[#allocation10 + $0x40] sm:$0xff] }
 0xe77   :  { %3679 = vmatpush3.msra.mxu1 %v5834_v50  ;;  %2508 = vmatprep.subr.mxu0 %v5252_v29  ;;  %v5864_v29 = vld [vmem:[#allocation10 + $0x38] sm:$0xff] }
 0xe78   :  { %3680 = vmatprep.subr.mxu1 %v6540_v0  ;;  %2509 = vmatpush1.msra.mxu0 %v5258_v33  ;;  %v5870_v33 = vld [vmem:[#allocation10 + $0x30] sm:$0xff] }
 0xe79   :  { %3681 = vmatpush3.msra.mxu1 %v5840_v56  ;;  %2510 = vmatprep.subr.mxu0 %v5264_v35  ;;  %v5876_v35 = vld [vmem:[#allocation10 + $0x28] sm:$0xff] }
 0xe7a   :  { %3682 = vmatprep.subr.mxu1 %v6540_v0  ;;  %2511 = vmatpush1.msra.mxu0 %v5270_v49  ;;  %v5882_v49 = vld [vmem:[#allocation10 + $0x20] sm:$0xff] }
 0xe7b   :  { %3683 = vmatpush3.msra.mxu1 %v5846_v58  ;;  %2512 = vmatprep.subr.mxu0 %v5276_v3  ;;  %v5888_v3 = vld [vmem:[#allocation10 + $0x18] sm:$0xff] }
 0xe7c   :  { %3684 = vmatprep.subr.mxu1 %v6540_v0  ;;  %2513 = vmatpush1.msra.mxu0 %v5282_v36  ;;  %v6772_v36 = vld [vmem:[#allocation65_spill] sm:$0xff] }
 0xe7d   :  { %3685 = vmatpush3.msra.mxu1 %v5852_v25  ;;  %2514 = vmatprep.subr.mxu0 %v5288_v38  ;;  %v6773_v38 = vld [vmem:[#allocation67_spill] sm:$0xff] }
 0xe7e   :  { %3686 = vmatprep.subr.mxu1 %v6540_v0  ;;  %2515 = vmatpush1.msra.mxu0 %v5294_v40  ;;  %v6776_v40 = vld [vmem:[#allocation73_spill] sm:$0xff] }
 0xe7f   :  { %3687 = vmatpush3.msra.mxu1 %v5858_v28  ;;  %2516 = vmatprep.subr.mxu0 %v5300_v41  ;;  %v6778_v41 = vld [vmem:[#allocation77_spill] sm:$0xff] }
 0xe80   :  { %3688 = vmatprep.subr.mxu1 %v6540_v0  ;;  %2517 = vmatpush1.msra.mxu0 %v5306_v43  ;;  %v6780_v43 = vld [vmem:[#allocation81_spill] sm:$0xff] }
 0xe81   :  { %3689 = vmatpush3.msra.mxu1 %v5864_v29  ;;  %2518 = vmatprep.subr.mxu0 %v5312_v44  ;;  %v6782_v44 = vld [vmem:[#allocation85_spill] sm:$0xff] }
 0xe82   :  { %3690 = vmatprep.subr.mxu1 %v6540_v0  ;;  %2519 = vmatpush1.msra.mxu0 %v5318_v6  ;;  %v6784_v6 = vld [vmem:[#allocation89_spill] sm:$0xff] }
 0xe83   :  { %3691 = vmatpush3.msra.mxu1 %v5870_v33  ;;  %2520 = vmatprep.subr.mxu0 %v5324_v46  ;;  %v6786_v46 = vld [vmem:[#allocation93_spill] sm:$0xff] }
 0xe84   :  { %3692 = vmatprep.subr.mxu1 %v6540_v0  ;;  %2521 = vmatpush1.msra.mxu0 %v5330_v47  ;;  %v6788_v47 = vld [vmem:[#allocation97_spill] sm:$0xff] }
 0xe85   :  { %3693 = vmatpush3.msra.mxu1 %v5876_v35  ;;  %2522 = vmatprep.subr.mxu0 %v5336_v7  ;;  %v5900_v7 = vld [vmem:[#allocation10 + $0x8] sm:$0xff] }
 0xe86   :  { %3694 = vmatprep.subr.mxu1 %v6540_v0  ;;  %2523 = vmatpush1.msra.mxu0 %v5342_v26  ;;  %v5894_v26 = vld [vmem:[#allocation10 + $0x10] sm:$0xff]  ;;  %6770 = vst [vmem:[#allocation61_spill] sm:$0xff] %v5900_v7 }
 0xe87   :  { %3695 = vmatpush3.msra.mxu1 %v5882_v49  ;;  %2524 = vmatprep.subr.mxu0 %v5348_v45  ;;  %v6783_v45 = vld [vmem:[#allocation87_spill] sm:$0xff] }
 0xe88   :  { %3696 = vmatprep.subr.mxu1 %v6540_v0  ;;  %2525 = vmatpush1.msra.mxu0 %v5354_v8  ;;  %v6785_v8 = vld [vmem:[#allocation91_spill] sm:$0xff] }
 0xe89   :  { %3697 = vmatpush3.msra.mxu1 %v5888_v3  ;;  %2526 = vmatprep.subr.mxu0 %v5360_v2  ;;  %v6787_v2 = vld [vmem:[#allocation95_spill] sm:$0xff] }
 0xe8a   :  { %3698 = vmatprep.subr.mxu1 %v6540_v0  ;;  %2527 = vmatpush1.msra.mxu0 %v5366_v63  ;;  %v5906_v63 = vld [vmem:[#allocation10] sm:$0xff] }
 0xe8b   :  { %3699 = vmatpush3.msra.mxu1 %v5894_v26  ;;  %2528 = vmatprep.subr.mxu0 %v5372_v62  ;;  %6771 = vst [vmem:[#allocation63_spill] sm:$0xff] %v5906_v63  ;;  %v5910_v62 = vld [vmem:[#allocation9 + $0x1f8] sm:$0xff] }
 0xe8c   :  { %3700 = vmatprep.subr.mxu1 %v6540_v0  ;;  %2529 = vmatpush1.msra.mxu0 %v5378_v18  ;;  %v6781_v18 = vld [vmem:[#allocation83_spill] sm:$0xff] }
 0xe8d   :  { %3701 = vmatpush3.msra.mxu1 %v5900_v7  ;;  %2530 = vmatprep.subr.mxu0 %v5384_v42  ;;  %v6779_v42 = vld [vmem:[#allocation79_spill] sm:$0xff] }
 0xe8e   :  { %3702 = vmatprep.subr.mxu1 %v6540_v0  ;;  %2531 = vmatpush1.msra.mxu0 %v5390_v12  ;;  %v6777_v12 = vld [vmem:[#allocation75_spill] sm:$0xff] }
 0xe8f   :  { %3703 = vmatpush3.msra.mxu1 %v5906_v63  ;;  %2532 = vmatprep.subr.mxu0 %v5396_v39  ;;  %v6774_v39 = vld [vmem:[#allocation69_spill] sm:$0xff] }
 0xe90   :  { %2573 = vmatprep.subr.mxu1 %v5910_v62  ;;  %2533 = vmatpush1.msra.mxu0 %v5402_v37  ;;  %v6775_v37 = vld [vmem:[#allocation71_spill] sm:$0xff] }
 0xe91   :  { %2534 = vmatprep.subr.mxu0 %v6672_v52  ;;  %v6789_v52 = vld [vmem:[#allocation99_spill] sm:$0xff] }
 0xe92   :  { %2535 = vmatpush2.msra.mxu0 %v6673_v9  ;;  %v6790_v9 = vld [vmem:[#allocation101_spill] sm:$0xff] }
 0xe93   :  { %2536 = vmatprep.subr.mxu0 %v6674_v10  ;;  %v6791_v10 = vld [vmem:[#allocation103_spill] sm:$0xff] }
 0xe94   :  { %2537 = vmatpush2.msra.mxu0 %v6675_v13  ;;  %v6792_v13 = vld [vmem:[#allocation105_spill] sm:$0xff] }
 0xe95   :  { %2538 = vmatprep.subr.mxu0 %v6676_v14  ;;  %v6793_v14 = vld [vmem:[#allocation107_spill] sm:$0xff] }
 0xe96   :  { %2539 = vmatpush2.msra.mxu0 %v6677_v15  ;;  %v6794_v15 = vld [vmem:[#allocation109_spill] sm:$0xff] }
 0xe97   :  { %2540 = vmatprep.subr.mxu0 %v6678_v16  ;;  %v6795_v16 = vld [vmem:[#allocation111_spill] sm:$0xff] }
 0xe98   :  { %2541 = vmatpush2.msra.mxu0 %v6772_v36 }
 0xe99   :  { %2542 = vmatprep.subr.mxu0 %v6773_v38 }
 0xe9a   :  { %2543 = vmatpush2.msra.mxu0 %v6774_v39 }
 0xe9b   :  { %2544 = vmatprep.subr.mxu0 %v6775_v37 }
 0xe9c   :  { %2545 = vmatpush2.msra.mxu0 %v6776_v40 }
 0xe9d   :  { %2546 = vmatprep.subr.mxu0 %v6777_v12 }
 0xe9e   :  { %2547 = vmatpush2.msra.mxu0 %v6778_v41 }
 0xe9f   :  { %2548 = vmatprep.subr.mxu0 %v6779_v42 }
 0xea0   :  { %2549 = vmatpush2.msra.mxu0 %v6780_v43 }
 0xea1   :  { %2550 = vmatprep.subr.mxu0 %v6781_v18 }
 0xea2   :  { %2551 = vmatpush2.msra.mxu0 %v6782_v44 }
 0xea3   :  { %2552 = vmatprep.subr.mxu0 %v6783_v45 }
 0xea4   :  { %2553 = vmatpush2.msra.mxu0 %v6784_v6 }
 0xea5   :  { %2554 = vmatprep.subr.mxu0 %v6785_v8 }
 0xea6   :  { %2555 = vmatpush2.msra.mxu0 %v6786_v46 }
 0xea7   :  { %2556 = vmatprep.subr.mxu0 %v6787_v2 }
 0xea8   :  { %2557 = vmatpush2.msra.mxu0 %v6788_v47  ;;  %v5957_v47 = vld [vmem:[#allocation9 + $0x1f0] sm:$0xff] }
 0xea9   :  { %2558 = vmatprep.subr.mxu0 %v6789_v52  ;;  %v5960_v52 = vld [vmem:[#allocation9 + $0x1d8] sm:$0xff] }
 0xeaa   :  { %2559 = vmatpush2.msra.mxu0 %v6790_v9  ;;  %v5963_v9 = vld [vmem:[#allocation9 + $0x1d0] sm:$0xff] }
 0xeab   :  { %2560 = vmatprep.subr.mxu0 %v6791_v10  ;;  %v5969_v10 = vld [vmem:[#allocation9 + $0x1b0] sm:$0xff] }
 0xeac   :  { %2561 = vmatpush2.msra.mxu0 %v6792_v13  ;;  %v5972_v13 = vld [vmem:[#allocation9 + $0x198] sm:$0xff] }
 0xead   :  { %2562 = vmatprep.subr.mxu0 %v6793_v14  ;;  %v5975_v14 = vld [vmem:[#allocation9 + $0x190] sm:$0xff] }
 0xeae   :  { %2563 = vmatpush2.msra.mxu0 %v6794_v15  ;;  %v5978_v15 = vld [vmem:[#allocation9 + $0x178] sm:$0xff] }
 0xeaf   :  { %2564 = vmatprep.subr.mxu0 %v6795_v16  ;;  %v5981_v16 = vld [vmem:[#allocation9 + $0x170] sm:$0xff] }
 0xeb0   :  { %2565 = vmatpush2.msra.mxu0 %v6796_v19  ;;  %v5984_v19 = vld [vmem:[#allocation9 + $0x158] sm:$0xff] }
 0xeb1   :  { %3707 = vmatprep.subr.mxu0 %v6540_v0 }
 0xf30   :  { %v2281_v5 = vpop.f32.mrf.mxu1  ;;  %v2352_v20 = vpop.f32.mrf.mxu0 }
 0xf31   :  { %v2282_v51 = vadd.f32 %v2281_v5, %v6797_v54  ;;  %v2353_v12 = vadd.f32 %v2352_v20, %v5727_v22  ;;  %v5987_v5 = vld [vmem:[#allocation9 + $0x150] sm:$0xff] }
 0xf32   :  { %v2283_v4 = vpop.f32.mrf.mxu1  ;;  %v2354_v38 = vpop.f32.mrf.mxu0  ;;  %v6005_v20 = vld [vmem:[#allocation9 + $0xf0] sm:$0xff] }
 0xf33   :  { %v2357_v1 = vmul.f32 0.5, %v2282_v51  ;;  %v2284_v48 = vadd.f32 %v2283_v4, %v6798_v57  ;;  %v2355_v37 = vadd.f32 %v2354_v38, %v5725_v24  ;;  %v5990_v51 = vld [vmem:[#allocation9 + $0x138] sm:$0xff]  ;;  %v6011_v38 = vld [vmem:[#allocation9 + $0xd0] sm:$0xff] }
 0xf34   :  { %v5996_v4 = vld [vmem:[#allocation9 + $0x118] sm:$0xff] }
 0xf35   :  { %3849 = vtanh.f32 %v2357_v1  ;;  %v2361_v31 = vmul.f32 0.5, %v2284_v48  ;;  %v5993_v1 = vld [vmem:[#allocation9 + $0x130] sm:$0xff] }
 0xf36   :  { %v5999_v48 = vld [vmem:[#allocation9 + $0x110] sm:$0xff] }
 0xf37   :  { %3851 = vtanh.f32 %v2361_v31  ;;  %v6002_v31 = vld [vmem:[#allocation9 + $0xf8] sm:$0xff] }
 0xf42   :  { %v3850_v36 = vpop.eup %3849 }
 0xf43   :  { %v2359_v39 = vmul.f32 0.5, %v3850_v36  ;;  %v6008_v36 = vld [vmem:[#allocation9 + $0xd8] sm:$0xff] }
 0xf44   :  { %v3852_v43 = vpop.eup %3851 }
 0xf45   :  { %v2360_v40 = vadd.f32 0.5, %v2359_v39  ;;  %v2363_v18 = vmul.f32 0.5, %v3852_v43  ;;  %v6014_v39 = vld [vmem:[#allocation9 + $0xb8] sm:$0xff] }
 0xf46   :  { %v6032_v43 = vld [vmem:[#allocation9 + $0x58] sm:$0xff] }
 0xf47   :  { %v2365_v41 = vmul.f32 %v2360_v40, %v2355_v37  ;;  %v2364_v44 = vadd.f32 0.5, %v2363_v18  ;;  %v6017_v37 = vld [vmem:[#allocation9 + $0xb0] sm:$0xff]  ;;  %v6020_v40 = vld [vmem:[#allocation9 + $0x98] sm:$0xff]  ;;  %6800 = vst [vmem:[#allocation24_spill] sm:$0xff] %v6032_v43 }
 0xf48   :  { %v6035_v18 = vld [vmem:[#allocation9 + $0x50] sm:$0xff] }
 0xf49   :  { %v2366_v42 = vadd.f32 %v2365_v41, %v2353_v12  ;;  %v2368_v45 = vsub.f32 1.0, %v2364_v44  ;;  %v2370_v8 = vmul.f32 %v2364_v44, %v5732_v17  ;;  %v5966_v17 = vld [vmem:[#allocation9 + $0x1b8] sm:$0xff]  ;;  %v6023_v12 = vld [vmem:[#allocation9 + $0x90] sm:$0xff]  ;;  %6801 = vst [vmem:[#allocation17_spill] sm:$0xff] %v6035_v18 }
 0xf4a   :  { %v6026_v41 = vld [vmem:[#allocation9 + $0x78] sm:$0xff] }
 0xf4b   :  { %3853 = vtanh.f32 %v2366_v42  ;;  %v6029_v42 = vld [vmem:[#allocation9 + $0x70] sm:$0xff]  ;;  %v6038_v44 = vld [vmem:[#allocation9 + $0x38] sm:$0xff] }
 0xf4c   :  { %6799 = vst [vmem:[#allocation16_spill] sm:$0xff] %v6029_v42  ;;  %6802 = vst [vmem:[#allocation18_spill] sm:$0xff] %v6038_v44 }
 0xf58   :  { %v3854_v6 = vpop.eup %3853 }
 0xf59   :  { %v2369_v46 = vmul.f32 %v3854_v6, %v2368_v45  ;;  %v6041_v45 = vld [vmem:[#allocation9 + $0x30] sm:$0xff]  ;;  %v6044_v6 = vld [vmem:[#allocation9 + $0x18] sm:$0xff] }
 0xf5a   :  { %6803 = vst [vmem:[#allocation19_spill] sm:$0xff] %v6041_v45  ;;  %6804 = vst [vmem:[#allocation20_spill] sm:$0xff] %v6044_v6 }
 0xf5b   :  { %v5952_v2 = vadd.f32 %v2370_v8, %v2369_v46  ;;  %v6047_v8 = vld [vmem:[#allocation9 + $0x10] sm:$0xff]  ;;  %v6050_v46 = vld [vmem:[#allocation9 + $0x3f8] sm:$0xff] }
 0xf5c   :  { %6805 = vst [vmem:[#allocation25_spill] sm:$0xff] %v6047_v8  ;;  %6806 = vst [vmem:[#allocation26_spill] sm:$0xff] %v6050_v46 }
 0xf5d   :  { %3705 = vmatmul.mubr.f32.vlgmr.msra.gmra.mxu1 %v5952_v2  ;;  %2566 = vmatprep.mubr.f32.mxu0 %v5952_v2 }
 0xf5e   :  { %2637 = vmatprep.mubr.f32.mxu1 %v5952_v2  ;;  %2574 = vmatpush1.msra.mxu1 %v5957_v47 }
 0xf5f   :  { %2575 = vmatprep.subr.mxu1 %v5960_v52 }
 0xf60   :  { %2576 = vmatpush1.msra.mxu1 %v5963_v9 }
 0xf61   :  { %2577 = vmatprep.subr.mxu1 %v5966_v17 }
 0xf62   :  { %2578 = vmatpush1.msra.mxu1 %v5969_v10 }
 0xf63   :  { %2579 = vmatprep.subr.mxu1 %v5972_v13 }
 0xf64   :  { %2580 = vmatpush1.msra.mxu1 %v5975_v14 }
 0xf65   :  { %2581 = vmatprep.subr.mxu1 %v5978_v15 }
 0xf66   :  { %2582 = vmatpush1.msra.mxu1 %v5981_v16 }
 0xf67   :  { %2583 = vmatprep.subr.mxu1 %v5984_v19 }
 0xf68   :  { %2584 = vmatpush1.msra.mxu1 %v5987_v5 }
 0xf69   :  { %2585 = vmatprep.subr.mxu1 %v5990_v51 }
 0xf6a   :  { %2586 = vmatpush1.msra.mxu1 %v5993_v1 }
 0xf6b   :  { %2587 = vmatprep.subr.mxu1 %v5996_v4 }
 0xf6c   :  { %2588 = vmatpush1.msra.mxu1 %v5999_v48 }
 0xf6d   :  { %2589 = vmatprep.subr.mxu1 %v6002_v31 }
 0xf6e   :  { %2590 = vmatpush1.msra.mxu1 %v6005_v20 }
 0xf6f   :  { %2591 = vmatprep.subr.mxu1 %v6008_v36 }
 0xf70   :  { %2592 = vmatpush1.msra.mxu1 %v6011_v38 }
 0xf71   :  { %2593 = vmatprep.subr.mxu1 %v6014_v39 }
 0xf72   :  { %2594 = vmatpush1.msra.mxu1 %v6017_v37 }
 0xf73   :  { %2595 = vmatprep.subr.mxu1 %v6020_v40 }
 0xf74   :  { %2596 = vmatpush1.msra.mxu1 %v6023_v12 }
 0xf75   :  { %2597 = vmatprep.subr.mxu1 %v6026_v41 }
 0xf76   :  { %2598 = vmatpush1.msra.mxu1 %v6029_v42 }
 0xf77   :  { %2599 = vmatprep.subr.mxu1 %v6032_v43 }
 0xf78   :  { %2600 = vmatpush1.msra.mxu1 %v6035_v18 }
 0xf79   :  { %2601 = vmatprep.subr.mxu1 %v6038_v44  ;;  %v6056_v44 = vld [vmem:[#allocation9 + $0x3d8] sm:$0xff] }
 0xf7a   :  { %2602 = vmatpush1.msra.mxu1 %v6041_v45  ;;  %6808 = vst [vmem:[#allocation28_spill] sm:$0xff] %v6056_v44  ;;  %v6059_v45 = vld [vmem:[#allocation9 + $0x3d0] sm:$0xff] }
 0xf7b   :  { %2603 = vmatprep.subr.mxu1 %v6044_v6  ;;  %6809 = vst [vmem:[#allocation29_spill] sm:$0xff] %v6059_v45  ;;  %v6062_v6 = vld [vmem:[#allocation9 + $0x3b8] sm:$0xff] }
 0xf7c   :  { %2604 = vmatpush1.msra.mxu1 %v6047_v8  ;;  %6810 = vst [vmem:[#allocation30_spill] sm:$0xff] %v6062_v6  ;;  %v6065_v8 = vld [vmem:[#allocation9 + $0x3b0] sm:$0xff] }
 0xf7d   :  { %2605 = vmatprep.subr.mxu1 %v6050_v46  ;;  %6811 = vst [vmem:[#allocation31_spill] sm:$0xff] %v6065_v8  ;;  %v6068_v46 = vld [vmem:[#allocation9 + $0x398] sm:$0xff] }
 0xf7e   :  { %2606 = vmatpush2.msra.mxu1 %v6053_v11  ;;  %6812 = vst [vmem:[#allocation32_spill] sm:$0xff] %v6068_v46 }
 0xf7f   :  { %2607 = vmatprep.subr.mxu1 %v6056_v44  ;;  %v6816_v44 = vld [vmem:[#allocation84_spill] sm:$0xff] }
 0xf80   :  { %2608 = vmatpush2.msra.mxu1 %v6059_v45  ;;  %v6814_v45 = vld [vmem:[#allocation80_spill] sm:$0xff] }
 0xf81   :  { %2609 = vmatprep.subr.mxu1 %v6062_v6  ;;  %v6813_v6 = vld [vmem:[#allocation78_spill] sm:$0xff] }
 0xf82   :  { %2610 = vmatpush2.msra.mxu1 %v6065_v8  ;;  %v6815_v8 = vld [vmem:[#allocation82_spill] sm:$0xff] }
 0xf83   :  { %2611 = vmatprep.subr.mxu1 %v6068_v46  ;;  %v6817_v46 = vld [vmem:[#allocation86_spill] sm:$0xff] }
 0xf84   :  { %2612 = vmatpush2.msra.mxu1 %v6742_v32  ;;  %v6818_v32 = vld [vmem:[#allocation88_spill] sm:$0xff] }
 0xf85   :  { %2613 = vmatprep.subr.mxu1 %v6743_v23  ;;  %v6819_v23 = vld [vmem:[#allocation90_spill] sm:$0xff] }
 0xf86   :  { %2614 = vmatpush2.msra.mxu1 %v6744_v27  ;;  %v6820_v27 = vld [vmem:[#allocation92_spill] sm:$0xff] }
 0xf87   :  { %2615 = vmatprep.subr.mxu1 %v6745_v59  ;;  %v6821_v59 = vld [vmem:[#allocation94_spill] sm:$0xff] }
 0xf88   :  { %2616 = vmatpush2.msra.mxu1 %v6746_v61  ;;  %v6822_v61 = vld [vmem:[#allocation96_spill] sm:$0xff] }
 0xf89   :  { %2617 = vmatprep.subr.mxu1 %v6747_v21  ;;  %v6823_v21 = vld [vmem:[#allocation98_spill] sm:$0xff] }
 0xf8a   :  { %2618 = vmatpush2.msra.mxu1 %v6813_v6  ;;  %v6824_v6 = vld [vmem:[#allocation100_spill] sm:$0xff] }
 0xf8b   :  { %2619 = vmatprep.subr.mxu1 %v6814_v45  ;;  %v6825_v45 = vld [vmem:[#allocation102_spill] sm:$0xff] }
 0xf8c   :  { %2620 = vmatpush2.msra.mxu1 %v6815_v8  ;;  %v6826_v8 = vld [vmem:[#allocation104_spill] sm:$0xff] }
 0xf8d   :  { %2621 = vmatprep.subr.mxu1 %v6816_v44  ;;  %v6827_v44 = vld [vmem:[#allocation106_spill] sm:$0xff] }
 0xf8e   :  { %2622 = vmatpush2.msra.mxu1 %v6817_v46  ;;  %v6828_v46 = vld [vmem:[#allocation108_spill] sm:$0xff] }
 0xf8f   :  { %2623 = vmatprep.subr.mxu1 %v6818_v32  ;;  %v6829_v32 = vld [vmem:[#allocation110_spill] sm:$0xff] }
 0xf90   :  { %2624 = vmatpush2.msra.mxu1 %v6819_v23  ;;  %v6830_v23 = vld [vmem:[#allocation112_spill] sm:$0xff] }
 0xf91   :  { %2625 = vmatprep.subr.mxu1 %v6820_v27  ;;  %v6831_v27 = vld [vmem:[#allocation114_spill] sm:$0xff] }
 0xf92   :  { %2626 = vmatpush2.msra.mxu1 %v6821_v59  ;;  %v3991_v59 = vld [vmem:[#allocation9 + $0x1e8] sm:$0xff] }
 0xf93   :  { %2627 = vmatprep.subr.mxu1 %v6822_v61 }
 0xf94   :  { %2628 = vmatpush2.msra.mxu1 %v6823_v21  ;;  %v6099_v21 = vld [vmem:[%s6320_s9] ss:$0 sm:$0xff] }
 0xf95   :  { %2629 = vmatprep.subr.mxu1 %v6824_v6  ;;  %6832 = vst [vmem:[#allocation33_spill] sm:$0xff] %v6099_v21 }
 0xf96   :  { %2630 = vmatpush2.msra.mxu1 %v6825_v45 }
 0xf97   :  { %2631 = vmatprep.subr.mxu1 %v6826_v8 }
 0xf98   :  { %2632 = vmatpush2.msra.mxu1 %v6827_v44 }
 0xf99   :  { %2633 = vmatprep.subr.mxu1 %v6828_v46 }
 0xf9a   :  { %2634 = vmatpush2.msra.mxu1 %v6829_v32 }
 0xf9b   :  { %2635 = vmatprep.subr.mxu1 %v6830_v23 }
 0xf9c   :  { %2636 = vmatpush2.msra.mxu1 %v6831_v27 }
 0xf9d   :  { %2789 = vmatprep.subr.mxu1 %v3991_v59 }
0x101d   :  { %v2438_v61 = vpop.f32.mrf.mxu1 }
0x101e   :  { %v6102_v6 = vadd.f32 %v6099_v21, %v2438_v61 }
0x101f   :  { %v3706_v45 = vpop.f32.mrf.mxu1 }
0x1020   :  { %v2442_v8 = vsel %vm330_vm1, %v6102_v6, -inf }
0x1021   :  { %2443 = vmax.xlane.f32.xlu0 %v2442_v8 }
0x10aa   :  { %v6106_v44 = vpop.xlane.xlu0 %2443 }
0x10ab   :  { %vm2482_vm9 = vcmp.eq.f32.partialorder %v6102_v6, %v6106_v44 }
0x10ac   :  { %v2483_v46 = vsel %vm2482_vm9, %v5206_v60, 128 }
0x10ad   :  { %v2484_v32 = vsel %vm330_vm1, %v2483_v46, 2147483647  ;;  %v3998_v46 = vld [vmem:[#allocation9 + $0x188] sm:$0xff] }
0x10ae   :  { %v2486_v23 = vshra.s32 %v2484_v32, 16  ;;  %v2485_v59 = vand.u32 65535, %v2484_v32  ;;  %v3999_v32 = vld [vmem:[#allocation9 + $0x180] sm:$0xff] }
0x10b0   :  { %v2488_v27 = vcvt.s32.f32 %v2486_v23  ;;  %v2487_v21 = vcvt.s32.f32 %v2485_v59  ;;  %v4000_v23 = vld [vmem:[#allocation9 + $0x168] sm:$0xff] }
0x10b1   :  { %v4002_v59 = vld [vmem:[#allocation9 + $0x148] sm:$0xff] }
0x10b2   :  { %2489 = vmin.xlane.f32.xlu1 %v2488_v27 }
0x113b   :  { %v2490_v61 = vpop.xlane.xlu1 %2489 }
0x113c   :  { %vm2491_vm10 = vcmp.eq.f32.partialorder %v2488_v27, %v2490_v61  ;;  %v2496_v11 = vcvt.f32.s32 %v2490_v61  ;;  %v4001_v27 = vld [vmem:[#allocation9 + $0x160] sm:$0xff] }
0x113d   :  { %v2492_v45 = vsel %vm2491_vm10, %v2487_v21, inf  ;;  %v3993_v21 = vld [vmem:[#allocation9 + $0x1e0] sm:$0xff] }
0x113e   :  { %2493 = vmin.xlane.f32.xlu0 %v2492_v45  ;;  %v2497_v18 = vshll.u32 %v2496_v11, 16  ;;  %v3994_v11 = vld [vmem:[#allocation9 + $0x1c8] sm:$0xff]  ;;  %v4003_v61 = vld [vmem:[#allocation9 + $0x140] sm:$0xff] }
0x113f   :  { %v4004_v45 = vld [vmem:[#allocation9 + $0x128] sm:$0xff] }
0x11c7   :  { %v2494_v8 = vpop.xlane.xlu0 %2493 }
0x11c8   :  { %v2495_v43 = vcvt.f32.s32 %v2494_v8  ;;  %v4005_v8 = vld [vmem:[#allocation9 + $0x120] sm:$0xff] }
0x11ca   :  { %v2498_v42 = vadd.s32 %v2497_v18, %v2495_v43  ;;  %v3996_v43 = vld [vmem:[#allocation9 + $0x1a8] sm:$0xff]  ;;  %v3997_v18 = vld [vmem:[#allocation9 + $0x1a0] sm:$0xff] }
0x11cc   :  { %vm2499_vm11 = vcmp.eq.s32.totalorder %v5206_v60, %v2498_v42  ;;  %v3995_v42 = vld [vmem:[#allocation9 + $0x1c0] sm:$0xff] }
0x11cd   :  { %3082 = vmatmul.mubr.msk.f32.vlgmr.msra.gmra.mxu0 %vm2499_vm11, %v6769_v34  ;;  %3083 = vmatmul.mubr.msk.f32.vlgmr.msra.gmra.mxu1 %vm2499_vm11, %v6769_v34 }
0x11ce   :  { %3708 = vmatpush3.msra.mxu0 %v5815_v55  ;;  %3739 = vmatprep.mubr.msk.f32.mxu0 %vm4222_vm0, %v6540_v0 }
0x11cf   :  { %3709 = vmatprep.subr.mxu0 %v6540_v0  ;;  %2790 = vmatpush1.msra.mxu1 %v3993_v21  ;;  %v4006_v21 = vld [vmem:[#allocation9 + $0x108] sm:$0xff] }
0x11d0   :  { %3710 = vmatpush3.msra.mxu0 %v5822_v53  ;;  %2791 = vmatprep.subr.mxu1 %v3994_v11  ;;  %v4007_v11 = vld [vmem:[#allocation9 + $0x100] sm:$0xff] }
0x11d1   :  { %3711 = vmatprep.subr.mxu0 %v6540_v0  ;;  %2792 = vmatpush1.msra.mxu1 %v3995_v42  ;;  %v4008_v42 = vld [vmem:[#allocation9 + $0xe8] sm:$0xff] }
0x11d2   :  { %3712 = vmatpush3.msra.mxu0 %v5828_v30  ;;  %2793 = vmatprep.subr.mxu1 %v3996_v43  ;;  %v4009_v43 = vld [vmem:[#allocation9 + $0xe0] sm:$0xff] }
0x11d3   :  { %3713 = vmatprep.subr.mxu0 %v6540_v0  ;;  %2794 = vmatpush1.msra.mxu1 %v3997_v18  ;;  %v4010_v18 = vld [vmem:[#allocation9 + $0xc8] sm:$0xff] }
0x11d4   :  { %3714 = vmatpush3.msra.mxu0 %v5834_v50  ;;  %2795 = vmatprep.subr.mxu1 %v3998_v46  ;;  %v4011_v46 = vld [vmem:[#allocation9 + $0xc0] sm:$0xff] }
0x11d5   :  { %3715 = vmatprep.subr.mxu0 %v6540_v0  ;;  %2796 = vmatpush1.msra.mxu1 %v3999_v32  ;;  %v4012_v32 = vld [vmem:[#allocation9 + $0xa8] sm:$0xff] }
0x11d6   :  { %3716 = vmatpush3.msra.mxu0 %v5840_v56  ;;  %2797 = vmatprep.subr.mxu1 %v4000_v23  ;;  %v4013_v23 = vld [vmem:[#allocation9 + $0xa0] sm:$0xff] }
0x11d7   :  { %3717 = vmatprep.subr.mxu0 %v6540_v0  ;;  %2798 = vmatpush1.msra.mxu1 %v4001_v27  ;;  %v4014_v27 = vld [vmem:[#allocation9 + $0x88] sm:$0xff] }
0x11d8   :  { %3718 = vmatpush3.msra.mxu0 %v5846_v58  ;;  %2799 = vmatprep.subr.mxu1 %v4002_v59  ;;  %v4015_v59 = vld [vmem:[#allocation9 + $0x80] sm:$0xff] }
0x11d9   :  { %3719 = vmatprep.subr.mxu0 %v6540_v0  ;;  %2800 = vmatpush1.msra.mxu1 %v4003_v61  ;;  %v4016_v61 = vld [vmem:[#allocation9 + $0x68] sm:$0xff] }
0x11da   :  { %3720 = vmatpush3.msra.mxu0 %v5852_v25  ;;  %2801 = vmatprep.subr.mxu1 %v4004_v45  ;;  %v4017_v45 = vld [vmem:[#allocation9 + $0x60] sm:$0xff] }
0x11db   :  { %3721 = vmatprep.subr.mxu0 %v6540_v0  ;;  %2802 = vmatpush1.msra.mxu1 %v4005_v8  ;;  %v4018_v8 = vld [vmem:[#allocation9 + $0x48] sm:$0xff] }
0x11dc   :  { %3722 = vmatpush3.msra.mxu0 %v5858_v28  ;;  %2803 = vmatprep.subr.mxu1 %v4006_v21  ;;  %v4019_v21 = vld [vmem:[#allocation9 + $0x40] sm:$0xff] }
0x11dd   :  { %3723 = vmatprep.subr.mxu0 %v6540_v0  ;;  %2804 = vmatpush1.msra.mxu1 %v4007_v11  ;;  %v4020_v11 = vld [vmem:[#allocation9 + $0x28] sm:$0xff] }
0x11de   :  { %3724 = vmatpush3.msra.mxu0 %v5864_v29  ;;  %2805 = vmatprep.subr.mxu1 %v4008_v42  ;;  %v4021_v42 = vld [vmem:[#allocation9 + $0x20] sm:$0xff] }
0x11df   :  { %3725 = vmatprep.subr.mxu0 %v6540_v0  ;;  %2806 = vmatpush1.msra.mxu1 %v4009_v43  ;;  %v4022_v43 = vld [vmem:[#allocation9 + $0x8] sm:$0xff] }
0x11e0   :  { %3726 = vmatpush3.msra.mxu0 %v5870_v33  ;;  %2807 = vmatprep.subr.mxu1 %v4010_v18  ;;  %v4023_v18 = vld [vmem:[#allocation9] sm:$0xff] }
0x11e1   :  { %3727 = vmatprep.subr.mxu0 %v6540_v0  ;;  %2808 = vmatpush1.msra.mxu1 %v4011_v46  ;;  %v4024_v46 = vld [vmem:[#allocation9 + $0x3e8] sm:$0xff] }
0x11e2   :  { %3728 = vmatpush3.msra.mxu0 %v5876_v35  ;;  %2809 = vmatprep.subr.mxu1 %v4012_v32  ;;  %v4025_v32 = vld [vmem:[#allocation9 + $0x3e0] sm:$0xff] }
0x11e3   :  { %3729 = vmatprep.subr.mxu0 %v6540_v0  ;;  %2810 = vmatpush1.msra.mxu1 %v4013_v23  ;;  %v4026_v23 = vld [vmem:[#allocation9 + $0x3c8] sm:$0xff] }
0x11e4   :  { %3730 = vmatpush3.msra.mxu0 %v5882_v49  ;;  %2811 = vmatprep.subr.mxu1 %v4014_v27  ;;  %v4027_v27 = vld [vmem:[#allocation9 + $0x3c0] sm:$0xff] }
0x11e5   :  { %3731 = vmatprep.subr.mxu0 %v6540_v0  ;;  %2812 = vmatpush1.msra.mxu1 %v4015_v59  ;;  %v4028_v59 = vld [vmem:[#allocation9 + $0x3a8] sm:$0xff] }
0x11e6   :  { %3732 = vmatpush3.msra.mxu0 %v5888_v3  ;;  %2813 = vmatprep.subr.mxu1 %v4016_v61  ;;  %v4029_v61 = vld [vmem:[#allocation9 + $0x3a0] sm:$0xff] }
0x11e7   :  { %3733 = vmatprep.subr.mxu0 %v6540_v0  ;;  %2814 = vmatpush1.msra.mxu1 %v4017_v45  ;;  %v4030_v45 = vld [vmem:[#allocation9 + $0x388] sm:$0xff] }
0x11e8   :  { %3734 = vmatpush3.msra.mxu0 %v5894_v26  ;;  %2815 = vmatprep.subr.mxu1 %v4018_v8  ;;  %v4031_v8 = vld [vmem:[#allocation9 + $0x380] sm:$0xff] }
0x11e9   :  { %3735 = vmatprep.subr.mxu0 %v6540_v0  ;;  %2816 = vmatpush1.msra.mxu1 %v4019_v21  ;;  %v4032_v21 = vld [vmem:[#allocation9 + $0x368] sm:$0xff] }
0x11ea   :  { %3736 = vmatpush3.msra.mxu0 %v5900_v7  ;;  %2817 = vmatprep.subr.mxu1 %v4020_v11  ;;  %v4034_v11 = vld [vmem:[#allocation9 + $0x348] sm:$0xff] }
0x11eb   :  { %3737 = vmatprep.subr.mxu0 %v6540_v0  ;;  %2818 = vmatpush1.msra.mxu1 %v4021_v42  ;;  %v4035_v42 = vld [vmem:[#allocation9 + $0x340] sm:$0xff] }
0x11ec   :  { %3738 = vmatpush3.msra.mxu0 %v5906_v63  ;;  %2819 = vmatprep.subr.mxu1 %v4022_v43  ;;  %v4036_v43 = vld [vmem:[#allocation9 + $0x328] sm:$0xff] }
0x11ed   :  { %2860 = vmatprep.subr.mxu0 %v5910_v62  ;;  %2820 = vmatpush1.msra.mxu1 %v4023_v18  ;;  %v4033_v62 = vld [vmem:[#allocation9 + $0x360] sm:$0xff] }
0x11ee   :  { %2821 = vmatprep.subr.mxu1 %v4024_v46  ;;  %v4037_v18 = vld [vmem:[#allocation9 + $0x320] sm:$0xff]  ;;  %v4038_v46 = vld [vmem:[#allocation9 + $0x308] sm:$0xff] }
0x11ef   :  { %2822 = vmatpush2.msra.mxu1 %v4025_v32  ;;  %v4039_v32 = vld [vmem:[#allocation9 + $0x300] sm:$0xff] }
0x11f0   :  { %2823 = vmatprep.subr.mxu1 %v4026_v23  ;;  %v4040_v23 = vld [vmem:[#allocation9 + $0x2e8] sm:$0xff] }
0x11f1   :  { %2824 = vmatpush2.msra.mxu1 %v4027_v27  ;;  %v4041_v27 = vld [vmem:[#allocation9 + $0x2e0] sm:$0xff] }
0x11f2   :  { %2825 = vmatprep.subr.mxu1 %v4028_v59  ;;  %v4042_v59 = vld [vmem:[#allocation9 + $0x2c8] sm:$0xff] }
0x11f3   :  { %2826 = vmatpush2.msra.mxu1 %v4029_v61  ;;  %v4043_v61 = vld [vmem:[#allocation9 + $0x2c0] sm:$0xff] }
0x11f4   :  { %2827 = vmatprep.subr.mxu1 %v4030_v45  ;;  %v4044_v45 = vld [vmem:[#allocation9 + $0x2a8] sm:$0xff] }
0x11f5   :  { %2828 = vmatpush2.msra.mxu1 %v4031_v8  ;;  %v4045_v8 = vld [vmem:[#allocation9 + $0x2a0] sm:$0xff] }
0x11f6   :  { %2829 = vmatprep.subr.mxu1 %v4032_v21  ;;  %v4046_v21 = vld [vmem:[#allocation9 + $0x288] sm:$0xff] }
0x11f7   :  { %2830 = vmatpush2.msra.mxu1 %v4033_v62  ;;  %v4047_v62 = vld [vmem:[#allocation9 + $0x280] sm:$0xff] }
0x11f8   :  { %2831 = vmatprep.subr.mxu1 %v4034_v11  ;;  %v4048_v11 = vld [vmem:[#allocation9 + $0x268] sm:$0xff] }
0x11f9   :  { %2832 = vmatpush2.msra.mxu1 %v4035_v42  ;;  %v4049_v42 = vld [vmem:[#allocation9 + $0x260] sm:$0xff] }
0x11fa   :  { %2833 = vmatprep.subr.mxu1 %v4036_v43  ;;  %v4050_v43 = vld [vmem:[#allocation9 + $0x248] sm:$0xff] }
0x11fb   :  { %2834 = vmatpush2.msra.mxu1 %v4037_v18  ;;  %v4051_v18 = vld [vmem:[#allocation9 + $0x240] sm:$0xff] }
0x11fc   :  { %2835 = vmatprep.subr.mxu1 %v4038_v46  ;;  %v4052_v46 = vld [vmem:[#allocation9 + $0x228] sm:$0xff] }
0x11fd   :  { %2836 = vmatpush2.msra.mxu1 %v4039_v32  ;;  %v4053_v32 = vld [vmem:[#allocation9 + $0x220] sm:$0xff] }
0x11fe   :  { %2837 = vmatprep.subr.mxu1 %v4040_v23  ;;  %v4054_v23 = vld [vmem:[#allocation9 + $0x208] sm:$0xff] }
0x11ff   :  { %2838 = vmatpush2.msra.mxu1 %v4041_v27  ;;  %v4055_v27 = vld [vmem:[#allocation9 + $0x200] sm:$0xff] }
0x1200   :  { %2839 = vmatprep.subr.mxu1 %v4042_v59 }
0x1201   :  { %2840 = vmatpush2.msra.mxu1 %v4043_v61 }
0x1202   :  { %2841 = vmatprep.subr.mxu1 %v4044_v45 }
0x1203   :  { %2842 = vmatpush2.msra.mxu1 %v4045_v8 }
0x1204   :  { %2843 = vmatprep.subr.mxu1 %v4046_v21 }
0x1205   :  { %2844 = vmatpush2.msra.mxu1 %v4047_v62 }
0x1206   :  { %2845 = vmatprep.subr.mxu1 %v4048_v11 }
0x1207   :  { %2846 = vmatpush2.msra.mxu1 %v4049_v42 }
0x1208   :  { %2847 = vmatprep.subr.mxu1 %v4050_v43 }
0x1209   :  { %2848 = vmatpush2.msra.mxu1 %v4051_v18 }
0x120a   :  { %2849 = vmatprep.subr.mxu1 %v4052_v46 }
0x120b   :  { %2850 = vmatpush2.msra.mxu1 %v4053_v32 }
0x120c   :  { %2851 = vmatprep.subr.mxu1 %v4054_v23 }
0x120d   :  { %2852 = vmatpush2.msra.mxu1 %v4055_v27 }
0x120e   :  { %3742 = vmatprep.subr.mxu1 %v6540_v0 }
0x128d   :  { %v2568_v59 = vpop.f32.mrf.mxu0  ;;  %v2639_v11 = vpop.f32.mrf.mxu1 }
0x128e   :  { %v2569_v61 = vadd.f32 %v2568_v59, %v6797_v54  ;;  %v2640_v23 = vadd.f32 %v2639_v11, %v5727_v22  ;;  %v4070_v11 = vld [vmem:[#allocation9 + $0x2b0] sm:$0xff] }
0x128f   :  { %v2570_v8 = vpop.f32.mrf.mxu0  ;;  %v2641_v43 = vpop.f32.mrf.mxu1 }
0x1290   :  { %v2644_v45 = vmul.f32 0.5, %v2569_v61  ;;  %v2571_v21 = vadd.f32 %v2570_v8, %v6798_v57  ;;  %v2642_v46 = vadd.f32 %v2641_v43, %v5725_v24  ;;  %v4072_v43 = vld [vmem:[#allocation9 + $0x290] sm:$0xff] }
0x1292   :  { %3855 = vtanh.f32 %v2644_v45  ;;  %v2648_v62 = vmul.f32 0.5, %v2571_v21 }
0x1294   :  { %3857 = vtanh.f32 %v2648_v62 }
0x129f   :  { %v3856_v42 = vpop.eup %3855 }
0x12a0   :  { %v2646_v18 = vmul.f32 0.5, %v3856_v42  ;;  %v4071_v42 = vld [vmem:[#allocation9 + $0x298] sm:$0xff] }
0x12a1   :  { %v3858_v59 = vpop.eup %3857 }
0x12a2   :  { %v2647_v32 = vadd.f32 0.5, %v2646_v18  ;;  %v2650_v61 = vmul.f32 0.5, %v3858_v59  ;;  %v4073_v18 = vld [vmem:[#allocation9 + $0x278] sm:$0xff]  ;;  %v4078_v59 = vld [vmem:[#allocation9 + $0x230] sm:$0xff] }
0x12a4   :  { %v2652_v27 = vmul.f32 %v2647_v32, %v2642_v46  ;;  %v2651_v54 = vadd.f32 0.5, %v2650_v61  ;;  %v4074_v46 = vld [vmem:[#allocation9 + $0x270] sm:$0xff]  ;;  %v4075_v32 = vld [vmem:[#allocation9 + $0x258] sm:$0xff] }
0x12a5   :  { %v4079_v61 = vld [vmem:[#allocation9 + $0x218] sm:$0xff] }
0x12a6   :  { %v2653_v63 = vadd.f32 %v2652_v27, %v2640_v23  ;;  %v2655_v45 = vsub.f32 1.0, %v2651_v54  ;;  %v2657_v8 = vmul.f32 %v2651_v54, %v5952_v2  ;;  %v6835_v54 = vld [vmem:[#allocation17_spill] sm:$0xff]  ;;  %v6836_v2 = vld [vmem:[#allocation18_spill] sm:$0xff]  ;;  %v4077_v27 = vld [vmem:[#allocation9 + $0x238] sm:$0xff] }
0x12a7   :  { %v4076_v23 = vld [vmem:[#allocation9 + $0x250] sm:$0xff] }
0x12a8   :  { %3859 = vtanh.f32 %v2653_v63  ;;  %v6834_v63 = vld [vmem:[#allocation24_spill] sm:$0xff] }
0x12b5   :  { %v3860_v7 = vpop.eup %3859 }
0x12b6   :  { %v2656_v21 = vmul.f32 %v3860_v7, %v2655_v45  ;;  %v6833_v7 = vld [vmem:[#allocation16_spill] sm:$0xff]  ;;  %v4080_v45 = vld [vmem:[#allocation9 + $0x210] sm:$0xff] }
0x12b8   :  { %v6155_v62 = vadd.f32 %v2657_v8, %v2656_v21  ;;  %v6847_v21 = vld [vmem:[#allocation33_spill] sm:$0xff] }
0x12ba   :  { %3740 = vmatmul.mubr.f32.vlgmr.msra.gmra.mxu0 %v6155_v62  ;;  %2853 = vmatprep.mubr.f32.mxu1 %v6155_v62 }
0x12bb   :  { %2924 = vmatprep.mubr.f32.mxu0 %v6155_v62  ;;  %2861 = vmatpush1.msra.mxu0 %v5957_v47  ;;  %v6837_v47 = vld [vmem:[#allocation19_spill] sm:$0xff] }
0x12bc   :  { %2862 = vmatprep.subr.mxu0 %v5960_v52  ;;  %v6838_v52 = vld [vmem:[#allocation20_spill] sm:$0xff] }
0x12bd   :  { %2863 = vmatpush1.msra.mxu0 %v5963_v9  ;;  %v6839_v9 = vld [vmem:[#allocation25_spill] sm:$0xff] }
0x12be   :  { %2864 = vmatprep.subr.mxu0 %v5966_v17  ;;  %v6840_v17 = vld [vmem:[#allocation26_spill] sm:$0xff] }
0x12bf   :  { %2865 = vmatpush1.msra.mxu0 %v5969_v10  ;;  %v6841_v10 = vld [vmem:[#allocation27_spill] sm:$0xff] }
0x12c0   :  { %2866 = vmatprep.subr.mxu0 %v5972_v13  ;;  %v6842_v13 = vld [vmem:[#allocation28_spill] sm:$0xff] }
0x12c1   :  { %2867 = vmatpush1.msra.mxu0 %v5975_v14  ;;  %v6843_v14 = vld [vmem:[#allocation29_spill] sm:$0xff] }
0x12c2   :  { %2868 = vmatprep.subr.mxu0 %v5978_v15  ;;  %v6844_v15 = vld [vmem:[#allocation30_spill] sm:$0xff] }
0x12c3   :  { %2869 = vmatpush1.msra.mxu0 %v5981_v16  ;;  %v6845_v16 = vld [vmem:[#allocation31_spill] sm:$0xff] }
0x12c4   :  { %2870 = vmatprep.subr.mxu0 %v5984_v19  ;;  %v6846_v19 = vld [vmem:[#allocation32_spill] sm:$0xff] }
0x12c5   :  { %2871 = vmatpush1.msra.mxu0 %v5987_v5  ;;  %v4056_v5 = vld [vmem:[#allocation9 + $0x390] sm:$0xff] }
0x12c6   :  { %2872 = vmatprep.subr.mxu0 %v5990_v51  ;;  %v4057_v51 = vld [vmem:[#allocation9 + $0x378] sm:$0xff] }
0x12c7   :  { %2873 = vmatpush1.msra.mxu0 %v5993_v1  ;;  %v4058_v1 = vld [vmem:[#allocation9 + $0x370] sm:$0xff] }
0x12c8   :  { %2874 = vmatprep.subr.mxu0 %v5996_v4  ;;  %v4059_v4 = vld [vmem:[#allocation9 + $0x358] sm:$0xff] }
0x12c9   :  { %2875 = vmatpush1.msra.mxu0 %v5999_v48  ;;  %v4060_v48 = vld [vmem:[#allocation9 + $0x350] sm:$0xff] }
0x12ca   :  { %2876 = vmatprep.subr.mxu0 %v6002_v31  ;;  %v4061_v31 = vld [vmem:[#allocation9 + $0x338] sm:$0xff] }
0x12cb   :  { %2877 = vmatpush1.msra.mxu0 %v6005_v20  ;;  %v4062_v20 = vld [vmem:[#allocation9 + $0x330] sm:$0xff] }
0x12cc   :  { %2878 = vmatprep.subr.mxu0 %v6008_v36  ;;  %v4063_v36 = vld [vmem:[#allocation9 + $0x318] sm:$0xff] }
0x12cd   :  { %2879 = vmatpush1.msra.mxu0 %v6011_v38  ;;  %v4064_v38 = vld [vmem:[#allocation9 + $0x310] sm:$0xff] }
0x12ce   :  { %2880 = vmatprep.subr.mxu0 %v6014_v39  ;;  %v4065_v39 = vld [vmem:[#allocation9 + $0x2f8] sm:$0xff] }
0x12cf   :  { %2881 = vmatpush1.msra.mxu0 %v6017_v37  ;;  %v4066_v37 = vld [vmem:[#allocation9 + $0x2f0] sm:$0xff] }
0x12d0   :  { %2882 = vmatprep.subr.mxu0 %v6020_v40  ;;  %v4067_v40 = vld [vmem:[#allocation9 + $0x2d8] sm:$0xff] }
0x12d1   :  { %2883 = vmatpush1.msra.mxu0 %v6023_v12  ;;  %v4068_v12 = vld [vmem:[#allocation9 + $0x2d0] sm:$0xff] }
0x12d2   :  { %2884 = vmatprep.subr.mxu0 %v6026_v41  ;;  %v4069_v41 = vld [vmem:[#allocation9 + $0x2b8] sm:$0xff] }
0x12d3   :  { %2885 = vmatpush1.msra.mxu0 %v6833_v7 }
0x12d4   :  { %2886 = vmatprep.subr.mxu0 %v6834_v63 }
0x12d5   :  { %2887 = vmatpush1.msra.mxu0 %v6835_v54 }
0x12d6   :  { %2888 = vmatprep.subr.mxu0 %v6836_v2 }
0x12d7   :  { %2889 = vmatpush1.msra.mxu0 %v6837_v47 }
0x12d8   :  { %2890 = vmatprep.subr.mxu0 %v6838_v52 }
0x12d9   :  { %2891 = vmatpush1.msra.mxu0 %v6839_v9 }
0x12da   :  { %2892 = vmatprep.subr.mxu0 %v6840_v17 }
0x12db   :  { %2893 = vmatpush2.msra.mxu0 %v6841_v10  ;;  %v6848_v10 = vld [vmem:[#allocation23_spill] sm:$0xff] }
0x12dc   :  { %2894 = vmatprep.subr.mxu0 %v6842_v13  ;;  %v6849_v13 = vld [vmem:[#allocation22_spill] sm:$0xff] }
0x12dd   :  { %2895 = vmatpush2.msra.mxu0 %v6843_v14  ;;  %v1850_v14 = vsub.f32 %v6849_v13, %v6848_v10 }
0x12de   :  { %2896 = vmatprep.subr.mxu0 %v6844_v15 }
0x12df   :  { %2897 = vmatpush2.msra.mxu0 %v6845_v16  ;;  %v1851_v15 = vmul.f32 1.442695, %v1850_v14  ;;  %v2445_v16 = vsub.f32 %v6102_v6, %v6106_v44 }
0x12e0   :  { %2898 = vmatprep.subr.mxu0 %v6846_v19 }
0x12e1   :  { %2899 = vmatpush2.msra.mxu0 %v4056_v5  ;;  %3861 = vpow2.f32 %v1851_v15  ;;  %v2446_v19 = vmul.f32 1.442695, %v2445_v16 }
0x12e2   :  { %2900 = vmatprep.subr.mxu0 %v4057_v51 }
0x12e3   :  { %2901 = vmatpush2.msra.mxu0 %v4058_v1  ;;  %3863 = vpow2.f32 %v2446_v19 }
0x12e4   :  { %2902 = vmatprep.subr.mxu0 %v4059_v4 }
0x12e5   :  { %2903 = vmatpush2.msra.mxu0 %v4060_v48 }
0x12e6   :  { %2904 = vmatprep.subr.mxu0 %v4061_v31 }
0x12e7   :  { %2905 = vmatpush2.msra.mxu0 %v4062_v20 }
0x12e8   :  { %2906 = vmatprep.subr.mxu0 %v4063_v36 }
0x12e9   :  { %2907 = vmatpush2.msra.mxu0 %v4064_v38 }
0x12ea   :  { %2908 = vmatprep.subr.mxu0 %v4065_v39 }
0x12eb   :  { %2909 = vmatpush2.msra.mxu0 %v4066_v37 }
0x12ec   :  { %2910 = vmatprep.subr.mxu0 %v4067_v40 }
0x12ed   :  { %2911 = vmatpush2.msra.mxu0 %v4068_v12 }
0x12ee   :  { %2912 = vmatprep.subr.mxu0 %v4069_v41  ;;  %v3862_v48 = vpop.eup %3861 }
0x12ef   :  { %2913 = vmatpush2.msra.mxu0 %v4070_v11  ;;  %v1853_v31 = vsel %vm330_vm1, %v3862_v48, 0.0 }
0x12f0   :  { %2914 = vmatprep.subr.mxu0 %v4071_v42  ;;  %v3864_v20 = vpop.eup %3863 }
0x12f1   :  { %2915 = vmatpush2.msra.mxu0 %v4072_v43  ;;  %v2448_v36 = vsel %vm330_vm1, %v3864_v20, 0.0 }
0x12f2   :  { %2916 = vmatprep.subr.mxu0 %v4073_v18 }
0x12f3   :  { %2917 = vmatpush2.msra.mxu0 %v4074_v46 }
0x12f4   :  { %2918 = vmatprep.subr.mxu0 %v4075_v32 }
0x12f5   :  { %2919 = vmatpush2.msra.mxu0 %v4076_v23 }
0x12f6   :  { %2920 = vmatprep.subr.mxu0 %v4077_v27 }
0x12f7   :  { %2921 = vmatpush2.msra.mxu0 %v4078_v59 }
0x12f8   :  { %2922 = vmatprep.subr.mxu0 %v4079_v61 }
0x12f9   :  { %2923 = vmatpush2.msra.mxu0 %v4080_v45 }
0x137a   :  { %v2725_v8 = vpop.f32.mrf.mxu0 }
0x137b   :  { %v6199_v7 = vadd.f32 %v6847_v21, %v2725_v8 }
0x137c   :  { %v3741_v63 = vpop.f32.mrf.mxu0 }
0x137d   :  { %v2729_v54 = vsel %vm330_vm1, %v6199_v7, -inf }
0x137e   :  { %2730 = vmax.xlane.f32.xlu1 %v2729_v54 }
0x1407   :  { %v6203_v2 = vpop.xlane.xlu1 %2730 }
0x1408   :  { %vm2769_vm12 = vcmp.eq.f32.partialorder %v6199_v7, %v6203_v2 }
0x1409   :  { %v2770_v47 = vsel %vm2769_vm12, %v5206_v60, 128 }
0x140a   :  { %v2771_v52 = vsel %vm330_vm1, %v2770_v47, 2147483647 }
0x140b   :  { %v2773_v9 = vshra.s32 %v2771_v52, 16  ;;  %v2772_v5 = vand.u32 65535, %v2771_v52 }
0x140d   :  { %v2775_v17 = vcvt.s32.f32 %v2773_v9  ;;  %v2774_v1 = vcvt.s32.f32 %v2772_v5  ;;  %v6854_v5 = vld [vmem:[#allocation59_spill] sm:$0xff] }
0x140f   :  { %2776 = vmin.xlane.f32.xlu0 %v2775_v17 }
0x1498   :  { %v2777_v51 = vpop.xlane.xlu0 %2776 }
0x1499   :  { %vm2778_vm13 = vcmp.eq.f32.partialorder %v2775_v17, %v2777_v51  ;;  %v2783_v38 = vcvt.f32.s32 %v2777_v51  ;;  %v6855_v51 = vld [vmem:[#allocation57_spill] sm:$0xff] }
0x149a   :  { %v2779_v4 = vsel %vm2778_vm13, %v2774_v1, inf  ;;  %v2158_v1 = vsub.f32 %v6855_v51, %v6854_v5 }
0x149b   :  { %2780 = vmin.xlane.f32.xlu1 %v2779_v4  ;;  %v2784_v37 = vshll.u32 %v2783_v38, 16 }
0x149f   :  { %1854 = vadd.xlane.f32.xlu1 %v1853_v31 }
0x14a3   :  { %2449 = vadd.xlane.f32.xlu1 %v2448_v36 }
0x1524   :  { %v2781_v39 = vpop.xlane.xlu1 %2780 }
0x1525   :  { %v2782_v40 = vcvt.f32.s32 %v2781_v39 }
0x1527   :  { %v2785_v12 = vadd.s32 %v2784_v37, %v2782_v40 }
0x1528   :  { %v1855_v41 = vpop.xlane.xlu1 %1854 }
0x1529   :  { %vm2786_vm14 = vcmp.eq.s32.totalorder %v5206_v60, %v2785_v12  ;;  %3865 = vlog2.f32 %v1855_v41  ;;  %v4224_v60 = vmov 1966171168  }
0x152a   :  { %3087 = vmatmul.mubr.msk.f32.vlgmr.msra.gmra.mxu1 %vm2786_vm14, %v6769_v34  ;;  %3088 = vmatmul.mubr.msk.f32.vlgmr.msra.gmra.mxu0 %vm2786_vm14, %v6769_v34  ;;  %v1862_v42 = vunpack.c.l.s4 %v4224_v60 }
0x152b   :  { %3743 = vmatpush3.msra.mxu1 %v5815_v55  ;;  %3774 = vmatprep.mubr.msk.f32.mxu1 %vm4222_vm0, %v6540_v0 }
0x152c   :  { %v2450_v11 = vpop.xlane.xlu1 %2449  ;;  %3744 = vmatprep.subr.mxu1 %v6540_v0  ;;  %v1863_v34 = vunpack.c.0.s8 %v1862_v42 }
0x152d   :  { %3867 = vlog2.f32 %v2450_v11  ;;  %3745 = vmatpush3.msra.mxu1 %v5822_v53 }
0x152e   :  { %3746 = vmatprep.subr.mxu1 %v6540_v0 }
0x152f   :  { %3747 = vmatpush3.msra.mxu1 %v5828_v30  ;;  %v6850_v30 = vld [vmem:[#allocation51_spill] sm:$0xff] }
0x1530   :  { %3748 = vmatprep.subr.mxu1 %v6540_v0  ;;  %v6235_v43 = vsub.s32 %v1863_v34, %v6850_v30 }
0x1531   :  { %3749 = vmatpush3.msra.mxu1 %v5834_v50 }
0x1532   :  { %3750 = vmatprep.subr.mxu1 %v6540_v0 }
0x1533   :  { %3751 = vmatpush3.msra.mxu1 %v5840_v56 }
0x1534   :  { %3752 = vmatprep.subr.mxu1 %v6540_v0 }
0x1535   :  { %3753 = vmatpush3.msra.mxu1 %v5846_v58 }
0x1536   :  { %v3866_v55 = vpop.eup %3865  ;;  %3754 = vmatprep.subr.mxu1 %v6540_v0 }
0x1537   :  { %v1857_v53 = vmul.f32 0.6931472, %v3866_v55  ;;  %3755 = vmatpush3.msra.mxu1 %v5852_v25 }
0x1538   :  { %3756 = vmatprep.subr.mxu1 %v6540_v0 }
0x1539   :  { %v1858_v50 = vadd.f32 %v1857_v53, %v6848_v10  ;;  %3757 = vmatpush3.msra.mxu1 %v5858_v28 }
0x153a   :  { %v3868_v56 = vpop.eup %3867  ;;  %3758 = vmatprep.subr.mxu1 %v6540_v0 }
0x153b   :  { %v1859_v58 = vsub.f32 %v6849_v13, %v1858_v50  ;;  %v2452_v18 = vmul.f32 0.6931472, %v3868_v56  ;;  %3759 = vmatpush3.msra.mxu1 %v5864_v29 }
0x153c   :  { %3760 = vmatprep.subr.mxu1 %v6540_v0 }
0x153d   :  { %v1867_v25 = vrot.slane %v1859_v58, %v6235_v43  ;;  %v2453_v46 = vadd.f32 %v2452_v18, %v6106_v44  ;;  %3761 = vmatpush3.msra.mxu1 %v5870_v33  ;;  %v6853_v44 = vld [vmem:[#allocation53_spill] sm:$0xff] }
0x153e   :  { %3762 = vmatprep.subr.mxu1 %v6540_v0 }
0x153f   :  { %v1868_v32 = vcombine.high %v1867_v25, %v1867_v25  ;;  %3069 = vst.sshfl [vmem:[%s6321_s10] sm:$0x1 pattern:$0x73625140] %v1867_v25  ;;  %v2454_v28 = vsub.f32 %v6102_v6, %v2453_v46  ;;  %3763 = vmatpush3.msra.mxu1 %v5876_v35  ;;  %v6851_v35 = vld [vmem:[#allocation61_spill] sm:$0xff] }
0x1540   :  { %3764 = vmatprep.subr.mxu1 %v6540_v0 }
0x1541   :  { %3070 = vst.sshfl [vmem:[%s6321_s10 + $0x8] sm:$0x1 pattern:$0x73625140] %v1868_v32  ;;  %v2462_v29 = vrot.slane %v2454_v28, %v6235_v43  ;;  %3765 = vmatpush3.msra.mxu1 %v5882_v49  ;;  %v6852_v49 = vld [vmem:[#allocation63_spill] sm:$0xff] }
0x1542   :  { %3766 = vmatprep.subr.mxu1 %v6540_v0 }
0x1543   :  { %v2463_v33 = vcombine.high %v2462_v29, %v2462_v29  ;;  %3079 = vst.sshfl [vmem:[%s6321_s10 + $0x2] sm:$0x1 pattern:$0x73625140] %v2462_v29  ;;  %3767 = vmatpush3.msra.mxu1 %v5888_v3 }
0x1544   :  { %3768 = vmatprep.subr.mxu1 %v6540_v0 }
0x1545   :  { %3080 = vst.sshfl [vmem:[%s6321_s10 + $0xa] sm:$0x1 pattern:$0x73625140] %v2463_v33  ;;  %3769 = vmatpush3.msra.mxu1 %v5894_v26 }
0x1546   :  { %3770 = vmatprep.subr.mxu1 %v6540_v0 }
0x1547   :  { %3771 = vmatpush3.msra.mxu1 %v6851_v35 }
0x1548   :  { %3772 = vmatprep.subr.mxu1 %v6540_v0 }
0x1549   :  { %3773 = vmatpush3.msra.mxu1 %v6852_v49 }
0x15ea   :  { %v2855_v6 = vpop.f32.mrf.mxu1  ;;  %v2926_v45 = vpop.f32.mrf.mxu0 }
0x15eb   :  { %v2856_v23 = vadd.f32 %v2855_v6, %v6853_v44  ;;  %v2927_v0 = vadd.f32 %v2926_v45, %v5727_v22  ;;  %v2732_v22 = vsub.f32 %v6199_v7, %v6203_v2 }
0x15ec   :  { %v2857_v27 = vpop.f32.mrf.mxu1  ;;  %v2928_v8 = vpop.f32.mrf.mxu0 }
0x15ed   :  { %v2931_v3 = vmul.f32 0.5, %v2856_v23  ;;  %v2858_v59 = vadd.f32 %v2857_v27, %v6798_v57  ;;  %v2929_v54 = vadd.f32 %v2928_v8, %v5725_v24  ;;  %v2159_v24 = vmul.f32 1.442695, %v2158_v1 }
0x15ee   :  { %v2733_v4 = vmul.f32 1.442695, %v2732_v22 }
0x15ef   :  { %3869 = vtanh.f32 %v2931_v3  ;;  %v2935_v61 = vmul.f32 0.5, %v2858_v59 }
0x15f1   :  { %3871 = vtanh.f32 %v2935_v61 }
0x15fc   :  { %v3870_v26 = vpop.eup %3869 }
0x15fd   :  { %v2933_v63 = vmul.f32 0.5, %v3870_v26 }
0x15fe   :  { %v3872_v17 = vpop.eup %3871 }
0x15ff   :  { %v2934_v47 = vadd.f32 0.5, %v2933_v63  ;;  %v2937_v10 = vmul.f32 0.5, %v3872_v17 }
0x1601   :  { %v2939_v52 = vmul.f32 %v2934_v47, %v2929_v54  ;;  %v2938_v13 = vadd.f32 0.5, %v2937_v10 }
0x1603   :  { %v2940_v9 = vadd.f32 %v2939_v52, %v2927_v0  ;;  %v2942_v14 = vsub.f32 1.0, %v2938_v13  ;;  %v2944_v57 = vmul.f32 %v2938_v13, %v6155_v62 }
0x1605   :  { %3873 = vtanh.f32 %v2940_v9 }
0x1606   :  { %3875 = vpow2.f32 %v2159_v24 }
0x1607   :  { %3877 = vpow2.f32 %v2733_v4 }
0x1612   :  { %v3874_v15 = vpop.eup %3873 }
0x1613   :  { %v2943_v16 = vmul.f32 %v3874_v15, %v2942_v14  ;;  %v3876_v62 = vpop.eup %3875 }
0x1614   :  { %v2161_v38 = vsel %vm330_vm1, %v3876_v62, 0.0  ;;  %v3878_v39 = vpop.eup %3877 }
0x1615   :  { %v2945_v19 = vadd.f32 %v2944_v57, %v2943_v16  ;;  %v2735_v37 = vsel %vm330_vm1, %v3878_v39, 0.0 }
0x1617   :  { %3775 = vmatmul.mubr.f32.vlgmr.msra.gmra.mxu1 %v2945_v19 }
0x16d7   :  { %v3012_v48 = vpop.f32.mrf.mxu1 }
0x16d8   :  { %v3013_v31 = vadd.f32 %v6847_v21, %v3012_v48 }
0x16d9   :  { %v3776_v20 = vpop.f32.mrf.mxu1 }
0x16da   :  { %v3016_v36 = vsel %vm330_vm1, %v3013_v31, -inf }
0x16db   :  { %3017 = vmax.xlane.f32.xlu0 %v3016_v36 }
0x16df   :  { %2162 = vadd.xlane.f32.xlu0 %v2161_v38 }
0x16e3   :  { %2736 = vadd.xlane.f32.xlu0 %v2735_v37 }
0x1764   :  { %v3018_v40 = vpop.xlane.xlu0 %3017 }
0x1765   :  { %v3019_v12 = vsub.f32 %v3013_v31, %v3018_v40 }
0x1767   :  { %v3020_v41 = vmul.f32 1.442695, %v3019_v12 }
0x1768   :  { %v2163_v11 = vpop.xlane.xlu0 %2162 }
0x1769   :  { %3879 = vpow2.f32 %v3020_v41 }
0x176a   :  { %3881 = vlog2.f32 %v2163_v11 }
0x176c   :  { %v2737_v60 = vpop.xlane.xlu0 %2736 }
0x176d   :  { %3883 = vlog2.f32 %v2737_v60 }
0x1776   :  { %v3880_v21 = vpop.eup %3879 }
0x1777   :  { %v3882_v42 = vpop.eup %3881  ;;  %v3022_v34 = vsel %vm330_vm1, %v3880_v21, 0.0 }
0x1778   :  { %v2165_v55 = vmul.f32 0.6931472, %v3882_v42  ;;  %3023 = vadd.xlane.f32.xlu1 %v3022_v34 }
0x177a   :  { %v3884_v53 = vpop.eup %3883  ;;  %v2166_v30 = vadd.f32 %v2165_v55, %v6854_v5 }
0x177b   :  { %v2739_v50 = vmul.f32 0.6931472, %v3884_v53 }
0x177c   :  { %v2167_v56 = vsub.f32 %v6855_v51, %v2166_v30 }
0x177d   :  { %v2740_v58 = vadd.f32 %v2739_v50, %v6203_v2 }
0x177e   :  { %v2175_v18 = vrot.slane %v2167_v56, %v6235_v43 }
0x177f   :  { %v2741_v25 = vsub.f32 %v6199_v7, %v2740_v58 }
0x1780   :  { %v2176_v46 = vcombine.high %v2175_v18, %v2175_v18  ;;  %3074 = vst.sshfl [vmem:[%s6321_s10 + $0x1] sm:$0x1 pattern:$0x73625140] %v2175_v18 }
0x1781   :  { %v2749_v32 = vrot.slane %v2741_v25, %v6235_v43 }
0x1782   :  { %3075 = vst.sshfl [vmem:[%s6321_s10 + $0x9] sm:$0x1 pattern:$0x73625140] %v2176_v46 }
0x1783   :  { %v2750_v28 = vcombine.high %v2749_v32, %v2749_v32  ;;  %3084 = vst.sshfl [vmem:[%s6321_s10 + $0x3] sm:$0x1 pattern:$0x73625140] %v2749_v32 }
0x1785   :  { %3085 = vst.sshfl [vmem:[%s6321_s10 + $0xb] sm:$0x1 pattern:$0x73625140] %v2750_v28 }
0x1801   :  { %v3024_v7 = vpop.xlane.xlu1 %3023 }
0x1802   :  { %3885 = vlog2.f32 %v3024_v7 }
0x180f   :  { %v3886_v2 = vpop.eup %3885 }
0x1810   :  { %v3026_v29 = vmul.f32 0.6931472, %v3886_v2 }
0x1812   :  { %v3027_v33 = vadd.f32 %v3026_v29, %v3018_v40 }
0x1814   :  { %v3028_v35 = vsub.f32 %v3013_v31, %v3027_v33 }
0x1816   :  { %v3036_v49 = vrot.slane %v3028_v35, %v6235_v43 }
0x1818   :  { %v3037_v6 = vcombine.high %v3036_v49, %v3036_v49  ;;  %3089 = vst.sshfl [vmem:[%s6321_s10 + $0x4] sm:$0x1 pattern:$0x73625140] %v3036_v49 }
0x181a   :  { %3090 = vst.sshfl [vmem:[%s6321_s10 + $0xc] sm:$0x1 pattern:$0x73625140] %v3037_v6 }
0x181b   :  { %3060 = vsyncpa [#allocation3], 1 }
0x181c   :  { %3061 = vsyncpa [#allocation5], 1 }
0x181d   :  { %3062 = vsyncpa [#allocation8], 1 }
0x181e   :  { %3063 = vsyncpa [#allocation11], 1 }

</bundles_post_ra>
